<compile_context>
chip_gen: v5e
topology: v5e:2x2
jax: 0.10.0
libtpu: 0.0.40
codegen_flags: <defaults>
</compile_context>

<pallas_src>
import functools
import math

import jax
import jax.numpy as jnp
from jax import lax
from jax.experimental import pallas as pl
from jax.experimental.pallas import tpu as pltpu

DIS_FILTER_SIZES = [1, 2, 3, 4, 5, 6, 7, 8, 9, 10, 15, 20, 32]
DIS_NUM_FILTERS  = [100, 200, 200, 200, 200, 100, 100, 100, 100, 100, 160, 160, 160]
F_TOTAL = sum(DIS_NUM_FILTERS)                 # 1880
KMAX    = max(DIS_FILTER_SIZES)                # 32
K_SPLIT = 10                                   # filter sizes <= K_SPLIT -> "small" slab
K1      = K_SPLIT                              # taps kept for the small slab
F1      = sum(nf for k, nf in zip(DIS_FILTER_SIZES, DIS_NUM_FILTERS) if k <= K_SPLIT)  # 1400
F2      = F_TOTAL - F1                         # 480
F1_PAD  = pl.cdiv(F1, 128) * 128               # 1408
F2_PAD  = pl.cdiv(F2, 128) * 128               # 512
OUT_PAD = 128                                  # Linear output padded 2 -> 128 lanes


def _relu_mask_maxpool(conv, bias, vlen, bt, L):
    """bias-add, ReLU, per-filter valid-position mask, MaxPool1d over time.

    conv : (bt*L, F) f32   bias : (1, F) f32   vlen : (1, F) int32
    Correct because ReLU output >= 0 and every filter has >= 1 valid position
    (guaranteed by max_seq_len >= KMAX, asserted in the wrapper).
    """
    F = conv.shape[-1]
    act = jnp.maximum(conv + bias, 0.0).reshape(bt, L, F)
    t = lax.broadcasted_iota(jnp.int32, (L, F), 0)          # time index per row
    act = jnp.where((t < vlen)[None, :, :], act, 0.0)       # mask built in-kernel
    return jnp.max(act, axis=1)                              # (bt, F)


def convnet_kernel(xu_ref, w1_ref, b1_ref, v1_ref, wo1_ref,
                   w2_ref, b2_ref, v2_ref, wo2_ref, bout_ref, out_ref):
    """One batch tile per grid step; all weights VMEM resident (constant index maps).

    xu_ref  : (bt*L, KMAX*C) bf16  im2col'd padded activations (batch tile)
    w1_ref  : (K1*C, F1_PAD) bf16  conv weights, filter sizes <= 10
    w2_ref  : (KMAX*C,F2_PAD)bf16  conv weights, filter sizes {15,20,32}
    b*_ref  : (1, F*_PAD)    f32   conv biases
    v*_ref  : (1, F*_PAD)    i32   valid conv-output length per filter (0 for pad cols)
    wo*_ref : (2, F*_PAD)    f32   final Linear weight slices (lane-dense, unpadded rows)
    bout_ref: (1, OUT_PAD)   f32   final Linear bias (padded with zeros)
    out_ref : (bt, OUT_PAD)  f32   logits in lanes 0:2
    """
    bt = out_ref.shape[0]
    L = xu_ref.shape[0] // bt
    k1c = w1_ref.shape[0]

    xu = xu_ref[...]                                         # (bt*L, KMAX*C) bf16
    # Group 1 (k<=10): contract only over the first K1*C taps of the unfold.
    conv1 = jnp.dot(xu[:, :k1c], w1_ref[...],
                    preferred_element_type=jnp.float32)      # (bt*L, F1_PAD)
    # Group 2 (k in {15,20,32}): contract over all KMAX*C taps.
    conv2 = jnp.dot(xu, w2_ref[...],
                    preferred_element_type=jnp.float32)      # (bt*L, F2_PAD)

    pooled1 = _relu_mask_maxpool(conv1, b1_ref[...], v1_ref[...], bt, L)
    pooled2 = _relu_mask_maxpool(conv2, b2_ref[...], v2_ref[...], bt, L)

    # Fused Linear(1880, 2) against the small unpadded-row weight slabs.
    dn = (((1,), (1,)), ((), ()))
    res = (lax.dot_general(pooled1, wo1_ref[...], dn,
                           preferred_element_type=jnp.float32)
           + lax.dot_general(pooled2, wo2_ref[...], dn,
                             preferred_element_type=jnp.float32))   # (bt, 2)

    # Lane-dense 128-wide store; logits + bias live in lanes 0:2.
    out_ref[...] = jnp.broadcast_to(bout_ref[...], out_ref.shape)
    out_ref[:, 0:2] = out_ref[:, 0:2] + res


def init_params(key, hidden, dtype=jnp.float32):
    """Deterministic PyTorch-default-style (uniform +-1/sqrt(fan_in)) init."""
    n_blocks = len(DIS_FILTER_SIZES)
    keys = jax.random.split(key, 2 * n_blocks + 2)
    conv_w, conv_b = [], []
    for i, (k, nf) in enumerate(zip(DIS_FILTER_SIZES, DIS_NUM_FILTERS)):
        bound = 1.0 / math.sqrt(hidden * k)
        conv_w.append(jax.random.uniform(keys[2 * i], (nf, hidden, k),
                                         minval=-bound, maxval=bound, dtype=dtype))
        conv_b.append(jax.random.uniform(keys[2 * i + 1], (nf,),
                                         minval=-bound, maxval=bound, dtype=dtype))
    lb = 1.0 / math.sqrt(F_TOTAL)
    lin_w = jax.random.uniform(keys[-2], (2, F_TOTAL), minval=-lb, maxval=lb, dtype=dtype)
    lin_b = jax.random.uniform(keys[-1], (2,), minval=-lb, maxval=lb, dtype=dtype)
    return {"conv_w": conv_w, "conv_b": conv_b, "lin_w": lin_w, "lin_b": lin_b}


def pack_params(params, hidden, max_seq_len):
    """Pack conv/linear weights ONCE (outside the jitted per-call path).

    Two im2col weight slabs grouped by filter size (bf16), per-group biases,
    per-filter valid-length vectors (int32), and the final Linear weight as
    two small lane-dense (2, F*_PAD) f32 slices.
    """
    C, L = hidden, max_seq_len
    w1 = jnp.zeros((K1, C, F1_PAD), jnp.float32)
    b1 = jnp.zeros((1, F1_PAD), jnp.float32)
    v1 = jnp.zeros((1, F1_PAD), jnp.int32)
    wo1 = jnp.zeros((2, F1_PAD), jnp.float32)
    w2 = jnp.zeros((KMAX, C, F2_PAD), jnp.float32)
    b2 = jnp.zeros((1, F2_PAD), jnp.float32)
    v2 = jnp.zeros((1, F2_PAD), jnp.int32)
    wo2 = jnp.zeros((2, F2_PAD), jnp.float32)
    bout = jnp.zeros((1, OUT_PAD), jnp.float32).at[0, :2].set(params["lin_b"])

    off1 = off2 = lin_col = 0
    for (k, nf), w, b in zip(zip(DIS_FILTER_SIZES, DIS_NUM_FILTERS),
                             params["conv_w"], params["conv_b"]):
        wt = jnp.transpose(w, (2, 1, 0))                       # (k, C, nf)
        lw = params["lin_w"][:, lin_col:lin_col + nf]          # (2, nf)
        if k <= K_SPLIT:
            w1 = w1.at[:k, :, off1:off1 + nf].set(wt)
            b1 = b1.at[0, off1:off1 + nf].set(b)
            v1 = v1.at[0, off1:off1 + nf].set(L - k + 1)
            wo1 = wo1.at[:, off1:off1 + nf].set(lw)
            off1 += nf
        else:
            w2 = w2.at[:k, :, off2:off2 + nf].set(wt)
            b2 = b2.at[0, off2:off2 + nf].set(b)
            v2 = v2.at[0, off2:off2 + nf].set(L - k + 1)
            wo2 = wo2.at[:, off2:off2 + nf].set(lw)
            off2 += nf
        lin_col += nf

    # (K, C, F) -> (K*C, F): k-major / c-minor, matching the x unfold below.
    w1 = w1.reshape(K1 * C, F1_PAD).astype(jnp.bfloat16)
    w2 = w2.reshape(KMAX * C, F2_PAD).astype(jnp.bfloat16)
    return {"w1": w1, "b1": b1, "v1": v1, "wo1": wo1,
            "w2": w2, "b2": b2, "v2": v2, "wo2": wo2, "bout": bout}


@functools.partial(jax.jit, static_argnames=("max_seq_len", "batch_tile"))
def convnet_forward(x, packed, *, max_seq_len, batch_tile=None):
    """x: (B, seq_len, hidden) f32, packed: output of pack_params -> (B, 2) f32."""
    B, S, C = x.shape
    L = max_seq_len
    assert L >= KMAX, "max_seq_len must be >= largest filter size (32)"
    assert S <= L, "input sequence longer than max_seq_len"
    # Batch tile = one grid step; default = whole batch (grid=(1,)).  For real
    # batches pick a multiple of 8 so the "parallel" axis can shard across
    # v7x's two TensorCores while the constant-index weight blocks stay resident.
    bt = B if batch_tile is None else batch_tile
    assert B % bt == 0

    # F.pad to max_seq_len plus KMAX-1 extra zeros so every KMAX-tap window is in-bounds.
    x_pad = jnp.pad(x.astype(jnp.float32), ((0, 0), (0, L + KMAX - 1 - S), (0, 0)))
    # im2col: x_unf[b*L + t, k*C + c] = x_pad[b, t + k, c]
    idx = jnp.arange(L)[:, None] + jnp.arange(KMAX)[None, :]          # (L, KMAX)
    x_unf = x_pad[:, idx, :].reshape(B * L, KMAX * C).astype(jnp.bfloat16)

    out = pl.pallas_call(
        convnet_kernel,
        out_shape=jax.ShapeDtypeStruct((B, OUT_PAD), jnp.float32),
        grid_spec=pltpu.PrefetchScalarGridSpec(
            num_scalar_prefetch=0,
            grid=(B // bt,),
            in_specs=[
                pl.BlockSpec((bt * L, KMAX * C), lambda i: (i, 0)),   # xu (batch tile)
                pl.BlockSpec((K1 * C, F1_PAD),   lambda i: (0, 0)),   # w1
                pl.BlockSpec((1, F1_PAD),        lambda i: (0, 0)),   # b1
                pl.BlockSpec((1, F1_PAD),        lambda i: (0, 0)),   # v1
                pl.BlockSpec((2, F1_PAD),        lambda i: (0, 0)),   # wo1
                pl.BlockSpec((KMAX * C, F2_PAD), lambda i: (0, 0)),   # w2
                pl.BlockSpec((1, F2_PAD),        lambda i: (0, 0)),   # b2
                pl.BlockSpec((1, F2_PAD),        lambda i: (0, 0)),   # v2
                pl.BlockSpec((2, F2_PAD),        lambda i: (0, 0)),   # wo2
                pl.BlockSpec((1, OUT_PAD),       lambda i: (0, 0)),   # bout
            ],
            out_specs=pl.BlockSpec((bt, OUT_PAD), lambda i: (i, 0)),
        ),
        compiler_params=pltpu.CompilerParams(
            dimension_semantics=("parallel",)),
    )(x_unf, packed["w1"], packed["b1"], packed["v1"], packed["wo1"],
      packed["w2"], packed["b2"], packed["v2"], packed["wo2"], packed["bout"])
    return out[:, :2]


def reference_forward(x, params, *, max_seq_len):
    """Pure-JAX reference matching the PyTorch module in eval mode."""
    B, S, C = x.shape
    L = max_seq_len
    xt = jnp.transpose(x, (0, 2, 1))                        # (B, C, S)
    xt = jnp.pad(xt, ((0, 0), (0, 0), (0, L - S)))          # (B, C, L)
    feats = []
    for w, b in zip(params["conv_w"], params["conv_b"]):
        y = lax.conv_general_dilated(
            xt, w, window_strides=(1,), padding="VALID",
            dimension_numbers=("NCH", "OIH", "NCH"))
        y = jnp.maximum(y + b[None, :, None], 0.0)
        feats.append(jnp.max(y, axis=2))                    # MaxPool1d over full length
    pooled = jnp.concatenate(feats, axis=1)                 # (B, 1880)
    return pooled @ params["lin_w"].T + params["lin_b"]


if __name__ == "__main__":
    HIDDEN = 16       # hidden_state_size
    MAX_SEQ_LEN = 32  # must be >= largest filter size (32)
    B, SEQ = 2, 8     # actual input seq < max_seq_len exercises the padding path

    key = jax.random.PRNGKey(0)
    k_param, k_x = jax.random.split(key)
    params = init_params(k_param, HIDDEN)
    packed = pack_params(params, HIDDEN, MAX_SEQ_LEN)   # packed ONCE, outside jit
    x = jax.random.normal(k_x, (B, SEQ, HIDDEN), dtype=jnp.float32)

    out = convnet_forward(x, packed, max_seq_len=MAX_SEQ_LEN)
    out = jax.block_until_ready(out)

    ref = reference_forward(x, params, max_seq_len=MAX_SEQ_LEN)
    assert out.shape == (B, 2), out.shape
    assert jnp.allclose(out, ref, atol=2e-2, rtol=2e-2), (out, ref)

    print("KERNEL_OK")
</pallas_src>

<mosaic_0001>
module attributes {stable_mosaic.version = 11 : i64} {
  func.func @convnet_kernel(%arg0: i32, %arg1: memref<64x512xbf16, #tpu.memory_space<vmem>>, %arg2: memref<160x1408xbf16, #tpu.memory_space<vmem>>, %arg3: memref<1x1408xf32, #tpu.memory_space<vmem>>, %arg4: memref<1x1408xi32, #tpu.memory_space<vmem>>, %arg5: memref<2x1408xf32, #tpu.memory_space<vmem>>, %arg6: memref<512x512xbf16, #tpu.memory_space<vmem>>, %arg7: memref<1x512xf32, #tpu.memory_space<vmem>>, %arg8: memref<1x512xi32, #tpu.memory_space<vmem>>, %arg9: memref<2x512xf32, #tpu.memory_space<vmem>>, %arg10: memref<1x128xf32, #tpu.memory_space<vmem>>, %arg11: memref<2x128xf32, #tpu.memory_space<vmem>>) attributes {dimension_semantics = [#tpu.dimension_semantics<parallel>], iteration_bounds = array<i64: 1>, scalar_prefetch = 0 : i64, scratch_operands = 0 : i64, tpu.core_type = #tpu.core_type<tc>, window_params = [{transform_indices = @transform_0, window_bounds = array<i64: 64, 512>}, {pipeline_mode = #tpu.pipeline_mode<synchronous>, transform_indices = @transform_1, window_bounds = array<i64: 160, 1408>}, {pipeline_mode = #tpu.pipeline_mode<synchronous>, transform_indices = @transform_2, window_bounds = array<i64: 1, 1408>}, {pipeline_mode = #tpu.pipeline_mode<synchronous>, transform_indices = @transform_3, window_bounds = array<i64: 1, 1408>}, {pipeline_mode = #tpu.pipeline_mode<synchronous>, transform_indices = @transform_4, window_bounds = array<i64: 2, 1408>}, {pipeline_mode = #tpu.pipeline_mode<synchronous>, transform_indices = @transform_5, window_bounds = array<i64: 512, 512>}, {pipeline_mode = #tpu.pipeline_mode<synchronous>, transform_indices = @transform_6, window_bounds = array<i64: 1, 512>}, {pipeline_mode = #tpu.pipeline_mode<synchronous>, transform_indices = @transform_7, window_bounds = array<i64: 1, 512>}, {pipeline_mode = #tpu.pipeline_mode<synchronous>, transform_indices = @transform_8, window_bounds = array<i64: 2, 512>}, {pipeline_mode = #tpu.pipeline_mode<synchronous>, transform_indices = @transform_9, window_bounds = array<i64: 1, 128>}, {transform_indices = @transform_10, window_bounds = array<i64: 2, 128>}]} {
    %c0 = arith.constant 0 : index
    %c0_0 = arith.constant 0 : index
    %0 = vector.load %arg1[%c0, %c0_0] : memref<64x512xbf16, #tpu.memory_space<vmem>>, vector<64x512xbf16>
    %1 = vector.extract_strided_slice %0 {offsets = [0, 0], sizes = [64, 160], strides = [1, 1]} : vector<64x512xbf16> to vector<64x160xbf16>
    %c0_1 = arith.constant 0 : index
    %c0_2 = arith.constant 0 : index
    %2 = vector.load %arg2[%c0_1, %c0_2] : memref<160x1408xbf16, #tpu.memory_space<vmem>>, vector<160x1408xbf16>
    %cst = arith.constant dense<0.000000e+00> : vector<64x1408xf32>
    %3 = tpu.matmul %1, %2, %cst {dimension_numbers = #tpu.dot_dimension_numbers<[1], [0], [0], [1], [0, 0, 1, 1], [], []>} : vector<64x160xbf16>, vector<160x1408xbf16>, vector<64x1408xf32> -> vector<64x1408xf32>
    %c0_3 = arith.constant 0 : index
    %c0_4 = arith.constant 0 : index
    %4 = vector.load %arg6[%c0_3, %c0_4] : memref<512x512xbf16, #tpu.memory_space<vmem>>, vector<512x512xbf16>
    %cst_5 = arith.constant dense<0.000000e+00> : vector<64x512xf32>
    %5 = tpu.matmul %0, %4, %cst_5 {dimension_numbers = #tpu.dot_dimension_numbers<[1], [0], [0], [1], [0, 0, 1, 1], [], []>} : vector<64x512xbf16>, vector<512x512xbf16>, vector<64x512xf32> -> vector<64x512xf32>
    %c0_6 = arith.constant 0 : index
    %c0_7 = arith.constant 0 : index
    %6 = vector.load %arg3[%c0_6, %c0_7] : memref<1x1408xf32, #tpu.memory_space<vmem>>, vector<1x1408xf32>
    %c0_8 = arith.constant 0 : index
    %c0_9 = arith.constant 0 : index
    %7 = vector.load %arg4[%c0_8, %c0_9] : memref<1x1408xi32, #tpu.memory_space<vmem>>, vector<1x1408xi32>
    %8 = vector.broadcast %6 : vector<1x1408xf32> to vector<64x1408xf32>
    %9 = arith.addf %3, %8 : vector<64x1408xf32>
    %cst_10 = arith.constant 0.000000e+00 : f32
    %10 = vector.broadcast %cst_10 : f32 to vector<64x1408xf32>
    %11 = arith.maximumf %9, %10 : vector<64x1408xf32>
    %12 = vector.shape_cast %11 : vector<64x1408xf32> to vector<2x32x1408xf32>
    %13 = tpu.iota {dimensions = array<i32: 0>} : vector<32x1408xi32>
    %14 = vector.broadcast %7 : vector<1x1408xi32> to vector<32x1408xi32>
    %15 = arith.cmpi slt, %13, %14 : vector<32x1408xi32>
    %16 = vector.shape_cast %15 : vector<32x1408xi1> to vector<1x32x1408xi1>
    %cst_11 = arith.constant 0.000000e+00 : f32
    %17 = vector.shape_cast %16 : vector<1x32x1408xi1> to vector<1x32x1408xi1>
    %18 = vector.broadcast %17 : vector<1x32x1408xi1> to vector<2x32x1408xi1>
    %19 = vector.broadcast %cst_11 : f32 to vector<2x32x1408xf32>
    %20 = arith.select %18, %12, %19 : vector<2x32x1408xi1>, vector<2x32x1408xf32>
    %cst_12 = arith.constant dense<0xFF800000> : vector<2x1408xf32>
    %21 = vector.multi_reduction <maximumf>, %20, %cst_12 [1] : vector<2x32x1408xf32> to vector<2x1408xf32>
    %c0_13 = arith.constant 0 : index
    %c0_14 = arith.constant 0 : index
    %22 = vector.load %arg7[%c0_13, %c0_14] : memref<1x512xf32, #tpu.memory_space<vmem>>, vector<1x512xf32>
    %c0_15 = arith.constant 0 : index
    %c0_16 = arith.constant 0 : index
    %23 = vector.load %arg8[%c0_15, %c0_16] : memref<1x512xi32, #tpu.memory_space<vmem>>, vector<1x512xi32>
    %24 = vector.broadcast %22 : vector<1x512xf32> to vector<64x512xf32>
    %25 = arith.addf %5, %24 : vector<64x512xf32>
    %cst_17 = arith.constant 0.000000e+00 : f32
    %26 = vector.broadcast %cst_17 : f32 to vector<64x512xf32>
    %27 = arith.maximumf %25, %26 : vector<64x512xf32>
    %28 = vector.shape_cast %27 : vector<64x512xf32> to vector<2x32x512xf32>
    %29 = tpu.iota {dimensions = array<i32: 0>} : vector<32x512xi32>
    %30 = vector.broadcast %23 : vector<1x512xi32> to vector<32x512xi32>
    %31 = arith.cmpi slt, %29, %30 : vector<32x512xi32>
    %32 = vector.shape_cast %31 : vector<32x512xi1> to vector<1x32x512xi1>
    %cst_18 = arith.constant 0.000000e+00 : f32
    %33 = vector.shape_cast %32 : vector<1x32x512xi1> to vector<1x32x512xi1>
    %34 = vector.broadcast %33 : vector<1x32x512xi1> to vector<2x32x512xi1>
    %35 = vector.broadcast %cst_18 : f32 to vector<2x32x512xf32>
    %36 = arith.select %34, %28, %35 : vector<2x32x512xi1>, vector<2x32x512xf32>
    %cst_19 = arith.constant dense<0xFF800000> : vector<2x512xf32>
    %37 = vector.multi_reduction <maximumf>, %36, %cst_19 [1] : vector<2x32x512xf32> to vector<2x512xf32>
    %c0_20 = arith.constant 0 : index
    %c0_21 = arith.constant 0 : index
    %38 = vector.load %arg5[%c0_20, %c0_21] : memref<2x1408xf32, #tpu.memory_space<vmem>>, vector<2x1408xf32>
    %cst_22 = arith.constant dense<0.000000e+00> : vector<2x2xf32>
    %39 = tpu.matmul %21, %38, %cst_22 {dimension_numbers = #tpu.dot_dimension_numbers<[1], [1], [0], [0], [0, 0, 1, 0], [], []>} : vector<2x1408xf32>, vector<2x1408xf32>, vector<2x2xf32> -> vector<2x2xf32>
    %c0_23 = arith.constant 0 : index
    %c0_24 = arith.constant 0 : index
    %40 = vector.load %arg9[%c0_23, %c0_24] : memref<2x512xf32, #tpu.memory_space<vmem>>, vector<2x512xf32>
    %cst_25 = arith.constant dense<0.000000e+00> : vector<2x2xf32>
    %41 = tpu.matmul %37, %40, %cst_25 {dimension_numbers = #tpu.dot_dimension_numbers<[1], [1], [0], [0], [0, 0, 1, 0], [], []>} : vector<2x512xf32>, vector<2x512xf32>, vector<2x2xf32> -> vector<2x2xf32>
    %42 = arith.addf %39, %41 : vector<2x2xf32>
    %c0_26 = arith.constant 0 : index
    %c0_27 = arith.constant 0 : index
    %43 = vector.load %arg10[%c0_26, %c0_27] : memref<1x128xf32, #tpu.memory_space<vmem>>, vector<1x128xf32>
    %44 = vector.shape_cast %43 : vector<1x128xf32> to vector<1x128xf32>
    %45 = vector.broadcast %44 : vector<1x128xf32> to vector<2x128xf32>
    %c0_28 = arith.constant 0 : index
    %c0_29 = arith.constant 0 : index
    %46 = vector.load %arg11[%c0_28, %c0_29] : memref<2x128xf32, #tpu.memory_space<vmem>>, vector<2x128xf32>
    tpu.vector_store %arg11[%c0_28, %c0_29], %45 {strides = array<i32>} : memref<2x128xf32, #tpu.memory_space<vmem>>, vector<2x128xf32>,
    %c0_30 = arith.constant 0 : index
    %c0_31 = arith.constant 0 : index
    %47 = vector.load %arg11[%c0_30, %c0_31] : memref<2x128xf32, #tpu.memory_space<vmem>>, vector<2x2xf32>
    %48 = arith.addf %47, %42 : vector<2x2xf32>
    %c0_32 = arith.constant 0 : index
    %c0_33 = arith.constant 0 : index
    %49 = vector.load %arg11[%c0_32, %c0_33] : memref<2x128xf32, #tpu.memory_space<vmem>>, vector<2x2xf32>
    tpu.vector_store %arg11[%c0_32, %c0_33], %48 {strides = array<i32>} : memref<2x128xf32, #tpu.memory_space<vmem>>, vector<2x2xf32>,
    return
  }
  func.func @transform_0(%arg0: i32) -> (i32, i32) {
    %c0_i32 = arith.constant 0 : i32
    %c0_i32_0 = arith.constant 0 : i32
    return %arg0, %c0_i32 : i32, i32
  }
  func.func @transform_1(%arg0: i32) -> (i32, i32) {
    %c0_i32 = arith.constant 0 : i32
    %c0_i32_0 = arith.constant 0 : i32
    %c0_i32_1 = arith.constant 0 : i32
    return %c0_i32, %c0_i32_0 : i32, i32
  }
  func.func @transform_2(%arg0: i32) -> (i32, i32) {
    %c0_i32 = arith.constant 0 : i32
    %c0_i32_0 = arith.constant 0 : i32
    %c0_i32_1 = arith.constant 0 : i32
    return %c0_i32, %c0_i32_0 : i32, i32
  }
  func.func @transform_3(%arg0: i32) -> (i32, i32) {
    %c0_i32 = arith.constant 0 : i32
    %c0_i32_0 = arith.constant 0 : i32
    %c0_i32_1 = arith.constant 0 : i32
    return %c0_i32, %c0_i32_0 : i32, i32
  }
  func.func @transform_4(%arg0: i32) -> (i32, i32) {
    %c0_i32 = arith.constant 0 : i32
    %c0_i32_0 = arith.constant 0 : i32
    %c0_i32_1 = arith.constant 0 : i32
    return %c0_i32, %c0_i32_0 : i32, i32
  }
  func.func @transform_5(%arg0: i32) -> (i32, i32) {
    %c0_i32 = arith.constant 0 : i32
    %c0_i32_0 = arith.constant 0 : i32
    %c0_i32_1 = arith.constant 0 : i32
    return %c0_i32, %c0_i32_0 : i32, i32
  }
  func.func @transform_6(%arg0: i32) -> (i32, i32) {
    %c0_i32 = arith.constant 0 : i32
    %c0_i32_0 = arith.constant 0 : i32
    %c0_i32_1 = arith.constant 0 : i32
    return %c0_i32, %c0_i32_0 : i32, i32
  }
  func.func @transform_7(%arg0: i32) -> (i32, i32) {
    %c0_i32 = arith.constant 0 : i32
    %c0_i32_0 = arith.constant 0 : i32
    %c0_i32_1 = arith.constant 0 : i32
    return %c0_i32, %c0_i32_0 : i32, i32
  }
  func.func @transform_8(%arg0: i32) -> (i32, i32) {
    %c0_i32 = arith.constant 0 : i32
    %c0_i32_0 = arith.constant 0 : i32
    %c0_i32_1 = arith.constant 0 : i32
    return %c0_i32, %c0_i32_0 : i32, i32
  }
  func.func @transform_9(%arg0: i32) -> (i32, i32) {
    %c0_i32 = arith.constant 0 : i32
    %c0_i32_0 = arith.constant 0 : i32
    %c0_i32_1 = arith.constant 0 : i32
    return %c0_i32, %c0_i32_0 : i32, i32
  }
  func.func @transform_10(%arg0: i32) -> (i32, i32) {
    %c0_i32 = arith.constant 0 : i32
    %c0_i32_0 = arith.constant 0 : i32
    return %arg0, %c0_i32 : i32, i32
  }
}

</mosaic_0001>

<bundles_post_ra>
// kernel: convnet_forward.1
= control target key start
LH: loop header
LB: loop body
LE: loop exit
PB: predicated region body
PF: predicated region fallthrough
CT: control target
= control target key end

     0   :  { %vm925_vm0 = vcmask 261120   ;;  %s7996_s0 = inlined_call_operand.vmem [shape: bf16[64,512], index: 0, kind: input, shape index: {}]   ;;  %s7997_s1 = inlined_call_operand.vmem [shape: bf16[160,1408], index: 1, kind: input, shape index: {}]   ;;  %s7998_s2 = inlined_call_operand.vmem [shape: f32[1,1408], index: 2, kind: input, shape index: {}]   ;;  %s7999_s3 = inlined_call_operand.vmem [shape: s32[1,1408], index: 3, kind: input, shape index: {}]   ;;  %s8000_s4 = inlined_call_operand.vmem [shape: f32[2,1408], index: 4, kind: input, shape index: {}]   ;;  %s8001_s5 = inlined_call_operand.vmem [shape: bf16[512,512], index: 5, kind: input, shape index: {}]   ;;  %s8002_s6 = inlined_call_operand.vmem [shape: f32[1,512], index: 6, kind: input, shape index: {}]   ;;  %s8003_s7 = inlined_call_operand.vmem [shape: s32[1,512], index: 7, kind: input, shape index: {}]   ;;  %s8004_s8 = inlined_call_operand.vmem [shape: f32[2,512], index: 8, kind: input, shape index: {}]   ;;  %s8005_s9 = inlined_call_operand.vmem [shape: f32[1,128], index: 9, kind: input, shape index: {}]   ;;  %s8006_s10 = inlined_call_operand.hbm [shape: f32[2,128], index: 10, kind: output, shape index: {}]  }
   0x1   :  { %v4216_v0 = vld [vmem:[%s7997_s1 + $0x268] sm:$0xf]  ;;  %v5032_v1 = vld [vmem:[%s7997_s1 + $0x290] sm:$0xf0]  ;;  %v4304_v2 = vld [vmem:[%s7997_s1 + $0x318] sm:$0xf] }
   0x2   :  { %v4217_v3 = vor.u32 %v5032_v1, %v4216_v0  ;;  %v5054_v4 = vld [vmem:[%s7997_s1 + $0x340] sm:$0xf0]  ;;  %v5027_v5 = vld [vmem:[%s7997_s1 + $0x26c] sm:$0xf]  ;;  %v4218_v6 = vld [vmem:[%s7997_s1 + $0x294] sm:$0xf0] }
   0x3   :  { %v4305_v7 = vor.u32 %v5054_v4, %v4304_v2  ;;  %v4221_v8 = vor.u32 %v5027_v5, %v4218_v6  ;;  %v5049_v9 = vld [vmem:[%s7997_s1 + $0x31c] sm:$0xf]  ;;  %v4306_v10 = vld [vmem:[%s7997_s1 + $0x344] sm:$0xf0]  ;;  %v4172_v11 = vld [vmem:[%s7997_s1 + $0x210] sm:$0xf] }
   0x4   :  { %938 = vmatpush.bf16.msra.mxu0 %v4217_v3  ;;  %v4309_v12 = vor.u32 %v5049_v9, %v4306_v10  ;;  %v5021_v13 = vld [vmem:[%s7997_s1 + $0x238] sm:$0xf0]  ;;  %v4260_v14 = vld [vmem:[%s7997_s1 + $0x2c0] sm:$0xf]  ;;  %v5043_v15 = vld [vmem:[%s7997_s1 + $0x2e8] sm:$0xf0] }
   0x5   :  { %973 = vmatpush.bf16.msra.mxu1 %v4305_v7  ;;  %996 = vmatpush.bf16.msra.mxu2 %v4221_v8  ;;  %v4173_v16 = vor.u32 %v5021_v13, %v4172_v11  ;;  %v4261_v17 = vor.u32 %v5043_v15, %v4260_v14  ;;  %v5016_v18 = vld [vmem:[%s7997_s1 + $0x214] sm:$0xf]  ;;  %v4174_v19 = vld [vmem:[%s7997_s1 + $0x23c] sm:$0xf0]  ;;  %v5038_v20 = vld [vmem:[%s7997_s1 + $0x2c4] sm:$0xf] }
   0x6   :  { %1031 = vmatpush.bf16.msra.mxu3 %v4309_v12  ;;  %v4177_v21 = vor.u32 %v5016_v18, %v4174_v19  ;;  %v4262_v22 = vld [vmem:[%s7997_s1 + $0x2ec] sm:$0xf0]  ;;  %v4934_v23 = vld [vmem:[%s7996_s0 + $0x4] sm:$0xf]  ;;  %v3878_v24 = vld [vmem:[%s7996_s0 + $0x10] sm:$0xf0] }
   0x7   :  { %v4265_v25 = vor.u32 %v5038_v20, %v4262_v22  ;;  %v4312_v26 = vld [vmem:[%s7997_s1 + $0x320] sm:$0xf]  ;;  %v5055_v27 = vld [vmem:[%s7997_s1 + $0x348] sm:$0xf0]  ;;  %v5334_v28 = vor.u32 %v4934_v23, %v3878_v24  ;;  %v4128_v30 = vld [vmem:[%s7997_s1 + $0x1b8] sm:$0xf] }
   0x8   :  { %939 = vmatpush.bf16.msra.mxu0 %v4173_v16  ;;  %v4313_v29 = vor.u32 %v5055_v27, %v4312_v26  ;;  %v5010_v31 = vld [vmem:[%s7997_s1 + $0x1e0] sm:$0xf0]  ;;  %v5005_v32 = vld [vmem:[%s7997_s1 + $0x1bc] sm:$0xf]  ;;  %v4130_v34 = vld [vmem:[%s7997_s1 + $0x1e4] sm:$0xf0] }
   0x9   :  { %974 = vmatpush.bf16.msra.mxu1 %v4261_v17  ;;  %997 = vmatpush.bf16.msra.mxu2 %v4177_v21  ;;  %v4129_v33 = vor.u32 %v5010_v31, %v4128_v30  ;;  %v4224_v35 = vld [vmem:[%s7997_s1 + $0x270] sm:$0xf]  ;;  %v5033_v36 = vld [vmem:[%s7997_s1 + $0x298] sm:$0xf0]  ;;  %v4133_v37 = vor.u32 %v5005_v32, %v4130_v34  ;;  %v4084_v39 = vld [vmem:[%s7997_s1 + $0x160] sm:$0xf] }
   0xa   :  { %1032 = vmatpush.bf16.msra.mxu3 %v4265_v25  ;;  %v4225_v38 = vor.u32 %v5033_v36, %v4224_v35  ;;  %v4999_v40 = vld [vmem:[%s7997_s1 + $0x188] sm:$0xf0]  ;;  %v4994_v41 = vld [vmem:[%s7997_s1 + $0x164] sm:$0xf]  ;;  %v4086_v42 = vld [vmem:[%s7997_s1 + $0x18c] sm:$0xf0] }
   0xb   :  { %v4085_v43 = vor.u32 %v4999_v40, %v4084_v39  ;;  %v4180_v44 = vld [vmem:[%s7997_s1 + $0x218] sm:$0xf]  ;;  %v4089_v45 = vor.u32 %v4994_v41, %v4086_v42  ;;  %v4040_v46 = vld [vmem:[%s7997_s1 + $0x108] sm:$0xf]  ;;  %v4988_v47 = vld [vmem:[%s7997_s1 + $0x130] sm:$0xf0] }
   0xc   :  { %4346 = vmatmul.msk.bf16.vlgmr.msra.gmra.mxu1 %vm925_vm0, %v5334_v28  ;;  %940 = vmatpush.bf16.msra.mxu0 %v4129_v33  ;;  %v5022_v48 = vld [vmem:[%s7997_s1 + $0x240] sm:$0xf0]  ;;  %v4983_v49 = vld [vmem:[%s7997_s1 + $0x10c] sm:$0xf]  ;;  %v4042_v50 = vld [vmem:[%s7997_s1 + $0x134] sm:$0xf0]  ;;  %v4041_v52 = vor.u32 %v4988_v47, %v4040_v46 }
   0xd   :  { %4350 = vmatmul.msk.bf16.vlgmr.msra.gmra.mxu3 %vm925_vm0, %v5334_v28  ;;  %998 = vmatpush.bf16.msra.mxu2 %v4133_v37  ;;  %v4181_v51 = vor.u32 %v5022_v48, %v4180_v44  ;;  %v4136_v53 = vld [vmem:[%s7997_s1 + $0x1c0] sm:$0xf]  ;;  %v4045_v54 = vor.u32 %v4983_v49, %v4042_v50  ;;  %v3996_v55 = vld [vmem:[%s7997_s1 + $0xb0] sm:$0xf]  ;;  %v4977_v56 = vld [vmem:[%s7997_s1 + $0xd8] sm:$0xf0] }
   0xe   :  { %1089 = vmatpush.bf16.msrb.mxu3 %v4313_v29  ;;  %1054 = vmatpush.bf16.msrb.mxu1 %v4225_v38  ;;  %v5011_v57 = vld [vmem:[%s7997_s1 + $0x1e8] sm:$0xf0]  ;;  %v4972_v58 = vld [vmem:[%s7997_s1 + $0xb4] sm:$0xf]  ;;  %v3998_v59 = vld [vmem:[%s7997_s1 + $0xdc] sm:$0xf0]  ;;  %v3997_v63 = vor.u32 %v4977_v56, %v3996_v55 }
   0xf   :  { %v4137_v60 = vor.u32 %v5011_v57, %v4136_v53  ;;  %v4092_v61 = vld [vmem:[%s7997_s1 + $0x168] sm:$0xf]  ;;  %v5000_v62 = vld [vmem:[%s7997_s1 + $0x190] sm:$0xf0]  ;;  %v4938_v0 = vld [vmem:[%s7996_s0 + $0x24] sm:$0xf]  ;;  %v4001_v3 = vor.u32 %v4972_v58, %v3998_v59 }
  0x10   :  { %941 = vmatpush.bf16.msra.mxu0 %v4085_v43  ;;  %v3886_v1 = vld [vmem:[%s7996_s0 + $0x30] sm:$0xf0]  ;;  %v4268_v2 = vld [vmem:[%s7997_s1 + $0x2c8] sm:$0xf]  ;;  %v3952_v4 = vld [vmem:[%s7997_s1 + $0x58] sm:$0xf]  ;;  %v4093_v9 = vor.u32 %v5000_v62, %v4092_v61 }
  0x11   :  { %999 = vmatpush.bf16.msra.mxu2 %v4089_v45  ;;  %v4966_v5 = vld [vmem:[%s7997_s1 + $0x80] sm:$0xf0]  ;;  %v5044_v6 = vld [vmem:[%s7997_s1 + $0x2f0] sm:$0xf0]  ;;  %v4961_v7 = vld [vmem:[%s7997_s1 + $0x5c] sm:$0xf]  ;;  %v5442_v13 = vor.u32 %v4938_v0, %v3886_v1 }
  0x12   :  { %1055 = vmatpush.bf16.msrb.mxu1 %v4181_v51  ;;  %v3954_v8 = vld [vmem:[%s7997_s1 + $0x84] sm:$0xf0]  ;;  %v4269_v10 = vor.u32 %v5044_v6, %v4268_v2  ;;  %v4048_v11 = vld [vmem:[%s7997_s1 + $0x110] sm:$0xf]  ;;  %v4989_v12 = vld [vmem:[%s7997_s1 + $0x138] sm:$0xf0]  ;;  %v3953_v14 = vor.u32 %v4966_v5, %v3952_v4 }
  0x14   :  { %942 = vmatpush.bf16.msra.mxu0 %v4041_v52  ;;  %1090 = vmatpush.bf16.msrb.mxu3 %v4269_v10 }
  0x15   :  { %1000 = vmatpush.bf16.msra.mxu2 %v4045_v54 }
  0x16   :  { %1056 = vmatpush.bf16.msrb.mxu1 %v4137_v60 }
  0x18   :  { %943 = vmatpush.bf16.msra.mxu0 %v3997_v63 }
  0x19   :  { %15 = vsyncpa [#allocation3], 0  ;;  %1001 = vmatpush.bf16.msra.mxu2 %v4001_v3  ;;  %v3957_v15 = vor.u32 %v4961_v7, %v3954_v8  ;;  %v3908_v16 = vld [vmem:[%s7997_s1] sm:$0xf]  ;;  %v4955_v17 = vld [vmem:[%s7997_s1 + $0x28] sm:$0xf0]  ;;  %v4049_v20 = vor.u32 %v4989_v12, %v4048_v11 }
  0x1a   :  { %v4950_v18 = vld [vmem:[%s7997_s1 + $0x4] sm:$0xf]  ;;  %v3910_v19 = vld [vmem:[%s7997_s1 + $0x2c] sm:$0xf0]  ;;  %1057 = vmatpush.bf16.msrb.mxu1 %v4093_v9  ;;  %v4004_v21 = vld [vmem:[%s7997_s1 + $0xb8] sm:$0xf]  ;;  %v3909_v23 = vor.u32 %v4955_v17, %v3908_v16 }
  0x1b   :  { %v4978_v22 = vld [vmem:[%s7997_s1 + $0xe0] sm:$0xf0]  ;;  %v3876_v24 = vld [vmem:[%s7996_s0] sm:$0xf]  ;;  %v4936_v25 = vld [vmem:[%s7996_s0 + $0xc] sm:$0xf0]  ;;  %v3913_v26 = vor.u32 %v4950_v18, %v3910_v19 }
  0x1c   :  { %4347 = vmatmul.msk.bf16.gmra.mxu1 %vm925_vm0, %v5442_v13  ;;  %944 = vmatpush.bf16.msra.mxu0 %v3953_v14  ;;  %v4005_v27 = vor.u32 %v4978_v22, %v4004_v21  ;;  %v5472_v29 = vor.u32 %v4936_v25, %v3876_v24  ;;  %v3960_v30 = vld [vmem:[%s7997_s1 + $0x60] sm:$0xf]  ;;  %v4967_v31 = vld [vmem:[%s7997_s1 + $0x88] sm:$0xf0]  ;;  %v4942_v33 = vld [vmem:[%s7996_s0 + $0x44] sm:$0xf] }
  0x1d   :  { %4351 = vmatmul.msk.bf16.gmra.mxu3 %vm925_vm0, %v5442_v13  ;;  %1002 = vmatpush.bf16.msra.mxu2 %v3957_v15  ;;  %v3961_v32 = vor.u32 %v4967_v31, %v3960_v30  ;;  %v3894_v34 = vld [vmem:[%s7996_s0 + $0x50] sm:$0xf0]  ;;  %v4226_v36 = vld [vmem:[%s7997_s1 + $0x29c] sm:$0xf0]  ;;  %v3916_v38 = vld [vmem:[%s7997_s1 + $0x8] sm:$0xf] }
  0x1e   :  { %1058 = vmatpush.bf16.msrb.mxu1 %v4049_v20  ;;  %v5028_v35 = vld [vmem:[%s7997_s1 + $0x274] sm:$0xf]  ;;  %v5050_v40 = vld [vmem:[%s7997_s1 + $0x324] sm:$0xf]  ;;  %v4314_v41 = vld [vmem:[%s7997_s1 + $0x34c] sm:$0xf0]  ;;  %v5512_v47 = vor.u32 %v4942_v33, %v3894_v34 }
  0x1f   :  { %v4229_v37 = vor.u32 %v5028_v35, %v4226_v36  ;;  %v4956_v39 = vld [vmem:[%s7997_s1 + $0x30] sm:$0xf0]  ;;  %v5017_v42 = vld [vmem:[%s7997_s1 + $0x21c] sm:$0xf]  ;;  %v4182_v43 = vld [vmem:[%s7997_s1 + $0x244] sm:$0xf0]  ;;  %v4317_v45 = vor.u32 %v5050_v40, %v4314_v41 }
  0x20   :  { %945 = vmatpush.bf16.msra.mxu0 %v3909_v23  ;;  %v3917_v44 = vor.u32 %v4956_v39, %v3916_v38  ;;  %v4185_v46 = vor.u32 %v5017_v42, %v4182_v43  ;;  %v5006_v48 = vld [vmem:[%s7997_s1 + $0x1c4] sm:$0xf]  ;;  %v4138_v49 = vld [vmem:[%s7997_s1 + $0x1ec] sm:$0xf0]  ;;  %v3884_v50 = vld [vmem:[%s7996_s0 + $0x20] sm:$0xf] }
  0x21   :  { %1003 = vmatpush.bf16.msra.mxu2 %v3913_v26  ;;  %v4940_v51 = vld [vmem:[%s7996_s0 + $0x2c] sm:$0xf0]  ;;  %v4141_v52 = vor.u32 %v5006_v48, %v4138_v49  ;;  %v4320_v53 = vld [vmem:[%s7997_s1 + $0x328] sm:$0xf]  ;;  %v5056_v54 = vld [vmem:[%s7997_s1 + $0x350] sm:$0xf0] }
  0x22   :  { %1059 = vmatpush.bf16.msrb.mxu1 %v4005_v27  ;;  %v4232_v55 = vld [vmem:[%s7997_s1 + $0x278] sm:$0xf]  ;;  %v4321_v56 = vor.u32 %v5056_v54, %v4320_v53  ;;  %v5034_v57 = vld [vmem:[%s7997_s1 + $0x2a0] sm:$0xf0]  ;;  %v4995_v58 = vld [vmem:[%s7997_s1 + $0x16c] sm:$0xf]  ;;  %v5548_v60 = vor.u32 %v4940_v51, %v3884_v50 }
  0x23   :  { %946 = vmatmul.bf16.vlgmr.msra.gmra.mxu0 %v5472_v29  ;;  %v4094_v59 = vld [vmem:[%s7997_s1 + $0x194] sm:$0xf0]  ;;  %v4233_v61 = vor.u32 %v5034_v57, %v4232_v55  ;;  %v4984_v63 = vld [vmem:[%s7997_s1 + $0x114] sm:$0xf]  ;;  %v4050_v0 = vld [vmem:[%s7997_s1 + $0x13c] sm:$0xf0] }
  0x24   :  { %1004 = vmatmul.bf16.vlgmr.msra.gmra.mxu2 %v5472_v29  ;;  %1112 = vmatpush.bf16.msrb.mxu0 %v4229_v37  ;;  %v4097_v62 = vor.u32 %v4995_v58, %v4094_v59  ;;  %v4053_v1 = vor.u32 %v4984_v63, %v4050_v0  ;;  %v4188_v2 = vld [vmem:[%s7997_s1 + $0x220] sm:$0xf]  ;;  %v5023_v3 = vld [vmem:[%s7997_s1 + $0x248] sm:$0xf0]  ;;  %v4973_v4 = vld [vmem:[%s7997_s1 + $0xbc] sm:$0xf] }
  0x25   :  { %1147 = vmatpush.bf16.msrb.mxu2 %v4317_v45  ;;  %1205 = vmatpush.bf16.msra.mxu3 %v4321_v56  ;;  %v4946_v5 = vld [vmem:[%s7996_s0 + $0x64] sm:$0xf]  ;;  %v3902_v6 = vld [vmem:[%s7996_s0 + $0x70] sm:$0xf0]  ;;  %v4189_v7 = vor.u32 %v5023_v3, %v4188_v2  ;;  %v4006_v8 = vld [vmem:[%s7997_s1 + $0xe4] sm:$0xf0] }
  0x26   :  { %1060 = vmatpush.bf16.msrb.mxu1 %v3961_v32  ;;  %v4009_v9 = vor.u32 %v4973_v4, %v4006_v8  ;;  %v5576_v10 = vor.u32 %v4946_v5, %v3902_v6  ;;  %v4962_v11 = vld [vmem:[%s7997_s1 + $0x64] sm:$0xf]  ;;  %v3962_v12 = vld [vmem:[%s7997_s1 + $0x8c] sm:$0xf0]  ;;  %v3892_v14 = vld [vmem:[%s7996_s0 + $0x40] sm:$0xf] }
  0x27   :  { %v4944_v15 = vld [vmem:[%s7996_s0 + $0x4c] sm:$0xf0]  ;;  %v3965_v16 = vor.u32 %v4962_v11, %v3962_v12  ;;  %v4144_v17 = vld [vmem:[%s7997_s1 + $0x1c8] sm:$0xf]  ;;  %v5012_v18 = vld [vmem:[%s7997_s1 + $0x1f0] sm:$0xf0] }
  0x28   :  { %1113 = vmatpush.bf16.msrb.mxu0 %v4185_v46  ;;  %v4951_v19 = vld [vmem:[%s7997_s1 + $0xc] sm:$0xf]  ;;  %v4145_v20 = vor.u32 %v5012_v18, %v4144_v17  ;;  %v3918_v21 = vld [vmem:[%s7997_s1 + $0x34] sm:$0xf0]  ;;  %v5612_v24 = vor.u32 %v4944_v15, %v3892_v14  ;;  %v4100_v27 = vld [vmem:[%s7997_s1 + $0x170] sm:$0xf] }
  0x29   :  { %v5039_v22 = vld [vmem:[%s7997_s1 + $0x2cc] sm:$0xf]  ;;  %v4270_v23 = vld [vmem:[%s7997_s1 + $0x2f4] sm:$0xf0]  ;;  %v3921_v25 = vor.u32 %v4951_v19, %v3918_v21  ;;  %v5001_v30 = vld [vmem:[%s7997_s1 + $0x198] sm:$0xf0] }
  0x2a   :  { %1061 = vmatpush.bf16.msrb.mxu1 %v3917_v44  ;;  %v4273_v26 = vor.u32 %v5039_v22, %v4270_v23  ;;  %v4101_v31 = vor.u32 %v5001_v30, %v4100_v27  ;;  %v3900_v32 = vld [vmem:[%s7996_s0 + $0x60] sm:$0xf]  ;;  %v4948_v33 = vld [vmem:[%s7996_s0 + $0x6c] sm:$0xf0]  ;;  %v5045_v35 = vld [vmem:[%s7997_s1 + $0x2f8] sm:$0xf0] }
  0x2b   :  { %v4276_v34 = vld [vmem:[%s7997_s1 + $0x2d0] sm:$0xf]  ;;  %v4056_v36 = vld [vmem:[%s7997_s1 + $0x118] sm:$0xf]  ;;  %v4990_v38 = vld [vmem:[%s7997_s1 + $0x140] sm:$0xf0]  ;;  %v5643_v39 = vor.u32 %v4948_v33, %v3900_v32 }
  0x2c   :  { %4348 = vmatmul.msk.bf16.gmra.mxu1 %vm925_vm0, %v5512_v47  ;;  %1114 = vmatpush.bf16.msrb.mxu0 %v4141_v52  ;;  %v4277_v37 = vor.u32 %v5045_v35, %v4276_v34  ;;  %v4057_v40 = vor.u32 %v4990_v38, %v4056_v36  ;;  %v4012_v41 = vld [vmem:[%s7997_s1 + $0xc0] sm:$0xf]  ;;  %v4979_v42 = vld [vmem:[%s7997_s1 + $0xe8] sm:$0xf0]  ;;  %v3968_v44 = vld [vmem:[%s7997_s1 + $0x68] sm:$0xf] }
  0x2d   :  { %4352 = vmatmul.msk.bf16.gmra.mxu3 %vm925_vm0, %v5512_v47  ;;  %1148 = vmatpush.bf16.msrb.mxu2 %v4273_v26  ;;  %v4013_v43 = vor.u32 %v4979_v42, %v4012_v41  ;;  %v4968_v45 = vld [vmem:[%s7997_s1 + $0x90] sm:$0xf0]  ;;  %v5029_v48 = vld [vmem:[%s7997_s1 + $0x27c] sm:$0xf]  ;;  %v4234_v49 = vld [vmem:[%s7997_s1 + $0x2a4] sm:$0xf0] }
  0x2e   :  { %1170 = vmatpush.bf16.msra.mxu1 %v4233_v61  ;;  %1206 = vmatpush.bf16.msra.mxu3 %v4277_v37  ;;  %v3969_v46 = vor.u32 %v4968_v45, %v3968_v44  ;;  %v4237_v50 = vor.u32 %v5029_v48, %v4234_v49  ;;  %v3924_v51 = vld [vmem:[%s7997_s1 + $0x10] sm:$0xf]  ;;  %v4957_v52 = vld [vmem:[%s7997_s1 + $0x38] sm:$0xf0]  ;;  %v5051_v53 = vld [vmem:[%s7997_s1 + $0x32c] sm:$0xf] }
  0x2f   :  { %v3925_v54 = vor.u32 %v4957_v52, %v3924_v51  ;;  %v4322_v55 = vld [vmem:[%s7997_s1 + $0x354] sm:$0xf0]  ;;  %v5018_v57 = vld [vmem:[%s7997_s1 + $0x224] sm:$0xf]  ;;  %v4190_v58 = vld [vmem:[%s7997_s1 + $0x24c] sm:$0xf0] }
  0x30   :  { %1115 = vmatpush.bf16.msrb.mxu0 %v4097_v62  ;;  %v4325_v56 = vor.u32 %v5051_v53, %v4322_v55  ;;  %v4193_v59 = vor.u32 %v5018_v57, %v4190_v58  ;;  %v5007_v61 = vld [vmem:[%s7997_s1 + $0x1cc] sm:$0xf]  ;;  %v4146_v62 = vld [vmem:[%s7997_s1 + $0x1f4] sm:$0xf0]  ;;  %v4328_v0 = vld [vmem:[%s7997_s1 + $0x330] sm:$0xf] }
  0x31   :  { %v4149_v63 = vor.u32 %v5007_v61, %v4146_v62  ;;  %v4996_v3 = vld [vmem:[%s7997_s1 + $0x174] sm:$0xf]  ;;  %v4102_v4 = vld [vmem:[%s7997_s1 + $0x19c] sm:$0xf0]  ;;  %v5035_v6 = vld [vmem:[%s7997_s1 + $0x2a8] sm:$0xf0]  ;;  %v1664_v61 = vlaneseq }
  0x32   :  { %1171 = vmatpush.bf16.msra.mxu1 %v4189_v7  ;;  %1263 = vmatpush.bf16.msra.mxu2 %v4325_v56  ;;  %v4240_v5 = vld [vmem:[%s7997_s1 + $0x280] sm:$0xf]  ;;  %v4105_v7 = vor.u32 %v4996_v3, %v4102_v4  ;;  %v4058_v11 = vld [vmem:[%s7997_s1 + $0x144] sm:$0xf0]  ;;  %v4974_v14 = vld [vmem:[%s7997_s1 + $0xc4] sm:$0xf] }
  0x33   :  { %951 = vmatmul.bf16.gmra.mxu0 %v5548_v60  ;;  %v4241_v8 = vor.u32 %v5035_v6, %v4240_v5  ;;  %v4014_v15 = vld [vmem:[%s7997_s1 + $0xec] sm:$0xf0]  ;;  %v5024_v17 = vld [vmem:[%s7997_s1 + $0x250] sm:$0xf0]  ;;  %v3970_v21 = vld [vmem:[%s7997_s1 + $0x94] sm:$0xf0] }
  0x34   :  { %1009 = vmatmul.bf16.gmra.mxu2 %v5548_v60  ;;  %1116 = vmatpush.bf16.msrb.mxu0 %v4053_v1  ;;  %v5057_v1 = vld [vmem:[%s7997_s1 + $0x358] sm:$0xf0]  ;;  %v4017_v18 = vor.u32 %v4974_v14, %v4014_v15  ;;  %v4952_v23 = vld [vmem:[%s7997_s1 + $0x14] sm:$0xf]  ;;  %v4152_v27 = vld [vmem:[%s7997_s1 + $0x1d0] sm:$0xf] }
  0x35   :  { %v4329_v2 = vor.u32 %v5057_v1, %v4328_v0  ;;  %v5040_v26 = vld [vmem:[%s7997_s1 + $0x2d4] sm:$0xf]  ;;  %v5013_v30 = vld [vmem:[%s7997_s1 + $0x1f8] sm:$0xf0]  ;;  %v4278_v33 = vld [vmem:[%s7997_s1 + $0x2fc] sm:$0xf0] }
  0x36   :  { %1172 = vmatpush.bf16.msra.mxu1 %v4145_v20  ;;  %v4963_v20 = vld [vmem:[%s7997_s1 + $0x6c] sm:$0xf]  ;;  %v4153_v32 = vor.u32 %v5013_v30, %v4152_v27  ;;  %v4281_v34 = vor.u32 %v5040_v26, %v4278_v33  ;;  %v4108_v36 = vld [vmem:[%s7997_s1 + $0x178] sm:$0xf]  ;;  %v5002_v37 = vld [vmem:[%s7997_s1 + $0x1a0] sm:$0xf0] }
  0x37   :  { %v3973_v22 = vor.u32 %v4963_v20, %v3970_v21  ;;  %v4109_v38 = vor.u32 %v5002_v37, %v4108_v36  ;;  %v4284_v41 = vld [vmem:[%s7997_s1 + $0x2d8] sm:$0xf]  ;;  %v5046_v42 = vld [vmem:[%s7997_s1 + $0x300] sm:$0xf0]  ;;  %v4064_v45 = vld [vmem:[%s7997_s1 + $0x120] sm:$0xf] }
  0x38   :  { %1117 = vmatpush.bf16.msrb.mxu0 %v4009_v9  ;;  %v4985_v9 = vld [vmem:[%s7997_s1 + $0x11c] sm:$0xf]  ;;  %1264 = vmatpush.bf16.msra.mxu2 %v4281_v34  ;;  %v4285_v44 = vor.u32 %v5046_v42, %v4284_v41  ;;  %v5798_v51 = vld [vmem:[%s7998_s2] sm:$0xff]  ;;  %v4020_v53 = vld [vmem:[%s7997_s1 + $0xc8] sm:$0xf]  ;;  %vm3457_vm13 = vcmask 1041409  }
  0x39   :  { %v4061_v12 = vor.u32 %v4985_v9, %v4058_v11  ;;  %v5804_v52 = vperm.slane %v5798_v51, 0  ;;  %v4969_v0 = vld [vmem:[%s7997_s1 + $0x98] sm:$0xf0]  ;;  %v5030_v1 = vld [vmem:[%s7997_s1 + $0x284] sm:$0xf]  ;;  %s3865_s26 = sshll.u32 %s8006_s10, 4  ;;  %s3866_s26 = int_to_ptr.hbm [resolvable:$true] %s3865_s26 }
  0x3a   :  { %1173 = vmatpush.bf16.msra.mxu1 %v4101_v31  ;;  %v4242_v4 = vld [vmem:[%s7997_s1 + $0x2ac] sm:$0xf0]  ;;  %v5838_v5 = vld [vmem:[%s7999_s3] sm:$0xff]  ;;  %v3932_v9 = vld [vmem:[%s7997_s1 + $0x18] sm:$0xf] }
  0x3b   :  { %v4245_v6 = vor.u32 %v5030_v1, %v4242_v4  ;;  %v4958_v11 = vld [vmem:[%s7997_s1 + $0x40] sm:$0xf0]  ;;  %v4198_v20 = vld [vmem:[%s7997_s1 + $0x254] sm:$0xf0]  ;;  %v5008_v30 = vld [vmem:[%s7997_s1 + $0x1d4] sm:$0xf] }
  0x3c   :  { %4349 = vmatmul.msk.bf16.gmra.mxu1 %vm925_vm0, %v5576_v10  ;;  %1118 = vmatpush.bf16.msrb.mxu0 %v3965_v16  ;;  %v4196_v16 = vld [vmem:[%s7997_s1 + $0x228] sm:$0xf]  ;;  %v5880_v34 = vperm.slane %v5838_v5, 1  ;;  %v4330_v41 = vld [vmem:[%s7997_s1 + $0x35c] sm:$0xf0] }
  0x3d   :  { %4353 = vmatmul.msk.bf16.gmra.mxu3 %vm925_vm0, %v5576_v10  ;;  %v4197_v19 = vor.u32 %v5024_v17, %v4196_v16 }
  0x3e   :  { %1174 = vmatpush.bf16.msra.mxu1 %v4057_v40 }
  0x40   :  { %1119 = vmatpush.bf16.msrb.mxu0 %v3921_v25  ;;  %v3926_v25 = vld [vmem:[%s7997_s1 + $0x3c] sm:$0xf0] }
  0x41   :  { %v3929_v31 = vor.u32 %v4952_v23, %v3926_v25 }
  0x42   :  { %1175 = vmatpush.bf16.msra.mxu1 %v4013_v43 }
  0x43   :  { %956 = vmatmul.bf16.gmra.mxu0 %v5612_v24 }
  0x44   :  { %1014 = vmatmul.bf16.gmra.mxu2 %v5612_v24  ;;  %1228 = vmatpush.bf16.msra.mxu0 %v4237_v50 }
  0x46   :  { %1176 = vmatpush.bf16.msra.mxu1 %v3969_v46  ;;  %v4991_v46 = vld [vmem:[%s7997_s1 + $0x148] sm:$0xf0] }
  0x47   :  { %v4065_v49 = vor.u32 %v4991_v46, %v4064_v45 }
  0x48   :  { %1229 = vmatpush.bf16.msra.mxu0 %v4193_v59 }
  0x4a   :  { %1177 = vmatpush.bf16.msra.mxu1 %v3925_v54  ;;  %v4980_v54 = vld [vmem:[%s7997_s1 + $0xf0] sm:$0xf0] }
  0x4b   :  { %v4021_v57 = vor.u32 %v4980_v54, %v4020_v53  ;;  %v5058_v53 = vld [vmem:[%s7997_s1 + $0x360] sm:$0xf0]  ;;  %v4997_v54 = vld [vmem:[%s7997_s1 + $0x17c] sm:$0xf] }
  0x4c   :  { %1062 = vmatmul.bf16.vlgmr.msrb.gmra.mxu1 %v5472_v29  ;;  %1230 = vmatpush.bf16.msra.mxu0 %v4149_v63  ;;  %v3976_v63 = vld [vmem:[%s7997_s1 + $0x70] sm:$0xf] }
  0x4d   :  { %4354 = vmatmul.msk.bf16.vlgmr.msrb.gmra.mxu3 %vm925_vm0, %v5334_v28  ;;  %v3977_v3 = vor.u32 %v4969_v0, %v3976_v63 }
  0x4e   :  { %1321 = vmatpush.bf16.msrb.mxu3 %v4329_v2  ;;  %1286 = vmatpush.bf16.msrb.mxu1 %v4241_v8  ;;  %v5830_v2 = vperm.slane %v5798_v51, 1 }
  0x50   :  { %1231 = vmatpush.bf16.msra.mxu0 %v4105_v7  ;;  %v5840_v7 = vshrl.u32 %v1664_v61, 7  ;;  %v4110_v61 = vld [vmem:[%s7997_s1 + $0x1a4] sm:$0xf0] }
  0x51   :  { %v4113_v0 = vor.u32 %v4997_v54, %v4110_v61  ;;  %v5025_v54 = vld [vmem:[%s7997_s1 + $0x258] sm:$0xf0] }
  0x52   :  { %1287 = vmatpush.bf16.msrb.mxu1 %v4197_v19  ;;  %1322 = vmatpush.bf16.msrb.mxu3 %v4285_v44  ;;  %v5855_v17 = vadd.s32 8, %v5840_v7  ;;  %v5019_v19 = vld [vmem:[%s7997_s1 + $0x22c] sm:$0xf]  ;;  %vm1681_vm3 = vcmp.lt.s32.totalorder %v5840_v7, %v5880_v34 }
  0x53   :  { %961 = vmatmul.bf16.gmra.mxu0 %v5643_v39  ;;  %v4201_v23 = vor.u32 %v5019_v19, %v4198_v20  ;;  %v5036_v19 = vld [vmem:[%s7997_s1 + $0x2b0] sm:$0xf0] }
  0x54   :  { %1019 = vmatmul.bf16.gmra.mxu2 %v5643_v39  ;;  %1232 = vmatpush.bf16.msra.mxu0 %v4061_v12  ;;  %v5849_v12 = vperm.slane %v5838_v5, 0  ;;  %vm1692_vm4 = vcmp.lt.s32.totalorder %v5855_v17, %v5880_v34 }
  0x56   :  { %1288 = vmatpush.bf16.msrb.mxu1 %v4153_v32  ;;  %vm1680_vm1 = vcmp.lt.s32.totalorder %v5840_v7, %v5849_v12  ;;  %vm1691_vm2 = vcmp.lt.s32.totalorder %v5855_v17, %v5849_v12 }
  0x58   :  { %1233 = vmatpush.bf16.msra.mxu0 %v4017_v18  ;;  %v3933_v18 = vor.u32 %v4958_v11, %v3932_v9 }
  0x5a   :  { %1289 = vmatpush.bf16.msrb.mxu1 %v4109_v38 }
  0x5c   :  { %1067 = vmatmul.bf16.gmra.mxu1 %v5548_v60  ;;  %1234 = vmatpush.bf16.msra.mxu0 %v3973_v22 }
  0x5d   :  { %4355 = vmatmul.msk.bf16.gmra.mxu3 %vm925_vm0, %v5442_v13 }
  0x5e   :  { %1290 = vmatpush.bf16.msrb.mxu1 %v4065_v49  ;;  %v4336_v49 = vld [vmem:[%s7997_s1 + $0x338] sm:$0xf] }
  0x60   :  { %1235 = vmatpush.bf16.msra.mxu0 %v3929_v31  ;;  %v4154_v31 = vld [vmem:[%s7997_s1 + $0x1fc] sm:$0xf0] }
  0x61   :  { %v4157_v32 = vor.u32 %v5008_v30, %v4154_v31  ;;  %v4975_v30 = vld [vmem:[%s7997_s1 + $0xcc] sm:$0xf]  ;;  %v4022_v31 = vld [vmem:[%s7997_s1 + $0xf4] sm:$0xf0] }
  0x62   :  { %1291 = vmatpush.bf16.msrb.mxu1 %v4021_v57 }
  0x63   :  { %1120 = vmatmul.bf16.vlgmr.msrb.gmra.mxu0 %v5472_v29 }
  0x64   :  { %4358 = vmatmul.msk.bf16.vlgmr.msrb.gmra.mxu2 %vm925_vm0, %v5334_v28  ;;  %1344 = vmatpush.bf16.msrb.mxu0 %v4245_v6 }
  0x66   :  { %1292 = vmatpush.bf16.msrb.mxu1 %v3977_v3  ;;  %v4986_v3 = vld [vmem:[%s7997_s1 + $0x124] sm:$0xf] }
  0x68   :  { %1345 = vmatpush.bf16.msrb.mxu0 %v4201_v23 }
  0x6a   :  { %1293 = vmatpush.bf16.msrb.mxu1 %v3933_v18  ;;  %v4248_v18 = vld [vmem:[%s7997_s1 + $0x288] sm:$0xf] }
  0x6c   :  { %1072 = vmatmul.bf16.gmra.mxu1 %v5612_v24  ;;  %1346 = vmatpush.bf16.msrb.mxu0 %v4157_v32 }
  0x6d   :  { %4356 = vmatmul.msk.bf16.gmra.mxu3 %vm925_vm0, %v5512_v47 }
  0x70   :  { %1347 = vmatpush.bf16.msrb.mxu0 %v4113_v0  ;;  %v4953_v0 = vld [vmem:[%s7997_s1 + $0x1c] sm:$0xf] }
  0x73   :  { %1125 = vmatmul.bf16.gmra.mxu0 %v5548_v60 }
  0x74   :  { %4359 = vmatmul.msk.bf16.gmra.mxu2 %vm925_vm0, %v5442_v13 }
  0x7c   :  { %1077 = vmatmul.bf16.gmra.mxu1 %v5643_v39 }
  0x7d   :  { %4357 = vmatmul.msk.bf16.gmra.mxu3 %vm925_vm0, %v5576_v10 }
  0x83   :  { %1130 = vmatmul.bf16.gmra.mxu0 %v5612_v24 }
  0x84   :  { %4360 = vmatmul.msk.bf16.gmra.mxu2 %vm925_vm0, %v5512_v47 }
  0x89   :  { %v976_v35 = vpop.f32.mrf.mxu1 }
  0x8c   :  { %1178 = vmatmul.bf16.vlgmr.msra.gmra.mxu1 %v5472_v29 }
  0x8d   :  { %4362 = vmatmul.msk.bf16.vlgmr.msra.gmra.mxu3 %vm925_vm0, %v5334_v28 }
  0x90   :  { %v1034_v40 = vpop.f32.mrf.mxu3 }
  0x91   :  { %v978_v43 = vpop.f32.mrf.mxu1 }
  0x93   :  { %1135 = vmatmul.bf16.gmra.mxu0 %v5643_v39 }
  0x94   :  { %4361 = vmatmul.msk.bf16.gmra.mxu2 %vm925_vm0, %v5576_v10 }
  0x98   :  { %v5791_v48 = vpop.f32.mrf.mxu3 }
  0x99   :  { %v5793_v50 = vpop.f32.mrf.mxu1 }
  0x9c   :  { %1183 = vmatmul.bf16.gmra.mxu1 %v5548_v60 }
  0x9d   :  { %4363 = vmatmul.msk.bf16.gmra.mxu3 %vm925_vm0, %v5442_v13 }
  0xa0   :  { %v5812_v55 = vpop.f32.mrf.mxu3  ;;  %v947_v56 = vpop.f32.mrf.mxu0 }
  0xa1   :  { %v948_v58 = vadd.f32 %v947_v56, %v5804_v52  ;;  %v5815_v59 = vpop.f32.mrf.mxu1 }
  0xa3   :  { %v977_v62 = vadd.f32 %v976_v35, %v948_v58  ;;  %1236 = vmatmul.bf16.vlgmr.msra.gmra.mxu0 %v5472_v29  ;;  %v5883_v35 = vadd.s32 16, %v5840_v7  ;;  %v4337_v58 = vor.u32 %v5058_v53, %v4336_v49  ;;  %v4204_v53 = vld [vmem:[%s7997_s1 + $0x230] sm:$0xf] }
  0xa4   :  { %4366 = vmatmul.msk.bf16.vlgmr.msra.gmra.mxu2 %vm925_vm0, %v5334_v28 }
  0xa5   :  { %v1576_v26 = vmax.f32 %v977_v62, 0.0  ;;  %1437 = vmatpush.bf16.msra.mxu3 %v4337_v58  ;;  %vm1702_vm5 = vcmp.lt.s32.totalorder %v5883_v35, %v5849_v12  ;;  %vm1703_vm6 = vcmp.lt.s32.totalorder %v5883_v35, %v5880_v34 }
  0xa7   :  { %v1005_v8 = vpop.f32.mrf.mxu2  ;;  %v1812_v36 = vsel %vm1680_vm1, %v1576_v26, 0.0  ;;  %v5951_v26 = vadd.s32 24, %v5840_v7 }
  0xa8   :  { %v1006_v14 = vadd.f32 %v1005_v8, %v5830_v2  ;;  %v5852_v15 = vpop.f32.mrf.mxu3  ;;  %v949_v16 = vpop.f32.mrf.mxu0 }
  0xa9   :  { %v950_v21 = vadd.f32 %v949_v16, %v5804_v52  ;;  %v5864_v22 = vpop.f32.mrf.mxu1  ;;  %vm1713_vm7 = vcmp.lt.s32.totalorder %v5951_v26, %v5849_v12  ;;  %vm1714_vm8 = vcmp.lt.s32.totalorder %v5951_v26, %v5880_v34  ;;  %v5020_v34 = vld [vmem:[%s7997_s1 + $0x234] sm:$0xf] }
  0xaa   :  { %v1035_v25 = vadd.f32 %v1034_v40, %v1006_v14  ;;  %v5052_v40 = vld [vmem:[%s7997_s1 + $0x334] sm:$0xf] }
  0xab   :  { %v979_v27 = vadd.f32 %v978_v43, %v950_v21  ;;  %v4333_v46 = vor.u32 %v5052_v40, %v4330_v41  ;;  %v4964_v40 = vld [vmem:[%s7997_s1 + $0x74] sm:$0xf]  ;;  %v3978_v41 = vld [vmem:[%s7997_s1 + $0x9c] sm:$0xf0] }
  0xac   :  { %1188 = vmatmul.bf16.gmra.mxu1 %v5612_v24  ;;  %v1577_v62 = vmax.f32 %v1035_v25, 0.0 }
  0xad   :  { %v1587_v33 = vmax.f32 %v979_v27, 0.0  ;;  %4364 = vmatmul.msk.bf16.gmra.mxu3 %vm925_vm0, %v5512_v47  ;;  %1379 = vmatpush.bf16.msrb.mxu2 %v4333_v46  ;;  %v4249_v27 = vor.u32 %v5036_v19, %v4248_v18 }
  0xae   :  { %v1813_v8 = vsel %vm1681_vm3, %v1577_v62, 0.0 }
  0xaf   :  { %v1823_v37 = vsel %vm1691_vm2, %v1587_v33, 0.0  ;;  %v1007_v38 = vpop.f32.mrf.mxu2  ;;  %1402 = vmatpush.bf16.msra.mxu1 %v4249_v27 }
  0xb0   :  { %v1900_v42 = vmax.f32 %v1812_v36, %v1823_v37  ;;  %v1008_v43 = vadd.f32 %v1007_v38, %v5830_v2  ;;  %v5898_v44 = vpop.f32.mrf.mxu3  ;;  %v952_v45 = vpop.f32.mrf.mxu0  ;;  %v4025_v36 = vor.u32 %v4975_v30, %v4022_v31 }
  0xb1   :  { %v953_v56 = vadd.f32 %v952_v45, %v5804_v52  ;;  %v5910_v57 = vpop.f32.mrf.mxu1 }
  0xb2   :  { %v1037_v63 = vadd.f32 %v5791_v48, %v1008_v43  ;;  %v4066_v48 = vld [vmem:[%s7997_s1 + $0x14c] sm:$0xf0] }
  0xb3   :  { %v982_v1 = vadd.f32 %v5793_v50, %v953_v56  ;;  %1241 = vmatmul.bf16.gmra.mxu0 %v5548_v60  ;;  %v4069_v50 = vor.u32 %v4986_v3, %v4066_v48  ;;  %v5041_v3 = vld [vmem:[%s7997_s1 + $0x2dc] sm:$0xf] }
  0xb4   :  { %v1588_v4 = vmax.f32 %v1037_v63, 0.0  ;;  %4367 = vmatmul.msk.bf16.gmra.mxu2 %vm925_vm0, %v5442_v13  ;;  %v4205_v63 = vor.u32 %v5025_v54, %v4204_v53 }
  0xb5   :  { %v1598_v6 = vmax.f32 %v982_v1, 0.0  ;;  %1348 = vmatpush.bf16.msrb.mxu0 %v4069_v50  ;;  %v3934_v1 = vld [vmem:[%s7997_s1 + $0x44] sm:$0xf0] }
  0xb6   :  { %v1824_v9 = vsel %vm1692_vm4, %v1588_v4, 0.0  ;;  %v3937_v50 = vor.u32 %v4953_v0, %v3934_v1  ;;  %1403 = vmatpush.bf16.msra.mxu1 %v4205_v63 }
  0xb7   :  { %v1909_v11 = vmax.f32 %v1813_v8, %v1824_v9  ;;  %v1834_v14 = vsel %vm1702_vm5, %v1598_v6, 0.0  ;;  %v1010_v16 = vpop.f32.mrf.mxu2  ;;  %v4286_v6 = vld [vmem:[%s7997_s1 + $0x304] sm:$0xf0] }
  0xb8   :  { %v1901_v20 = vmax.f32 %v1900_v42, %v1834_v14  ;;  %v1011_v21 = vadd.f32 %v1010_v16, %v5830_v2  ;;  %v5948_v23 = vpop.f32.mrf.mxu3  ;;  %v954_v25 = vpop.f32.mrf.mxu0  ;;  %v4289_v9 = vor.u32 %v5041_v3, %v4286_v6 }
  0xb9   :  { %v955_v32 = vadd.f32 %v954_v25, %v5804_v52  ;;  %v5960_v33 = vpop.f32.mrf.mxu1  ;;  %1349 = vmatpush.bf16.msrb.mxu0 %v4025_v36  ;;  %v6026_v25 = vperm.slane %v5798_v51, 2 }
  0xba   :  { %v1040_v37 = vadd.f32 %v5812_v55, %v1011_v21  ;;  %v3981_v55 = vor.u32 %v4964_v40, %v3978_v41  ;;  %1380 = vmatpush.bf16.msrb.mxu2 %v4289_v9  ;;  %v5014_v41 = vld [vmem:[%s7997_s1 + $0x200] sm:$0xf0]  ;;  %v4116_v9 = vld [vmem:[%s7997_s1 + $0x180] sm:$0xf] }
  0xbb   :  { %v984_v38 = vadd.f32 %v5815_v59, %v955_v32 }
  0xbc   :  { %v1599_v42 = vmax.f32 %v1040_v37, 0.0  ;;  %1193 = vmatmul.bf16.gmra.mxu1 %v5643_v39 }
  0xbd   :  { %v1609_v43 = vmax.f32 %v984_v38, 0.0  ;;  %4365 = vmatmul.msk.bf16.gmra.mxu3 %vm925_vm0, %v5576_v10  ;;  %1350 = vmatpush.bf16.msrb.mxu0 %v3981_v55 }
  0xbe   :  { %v1835_v59 = vsel %vm1703_vm6, %v1599_v42, 0.0 }
  0xbf   :  { %v1910_v45 = vmax.f32 %v1909_v11, %v1835_v59  ;;  %v1845_v46 = vsel %vm1713_vm7, %v1609_v43, 0.0  ;;  %v1012_v49 = vpop.f32.mrf.mxu2 }
  0xc0   :  { %v5989_v56 = vmax.f32 %v1901_v20, %v1845_v46  ;;  %v1013_v58 = vadd.f32 %v1012_v49, %v5830_v2  ;;  %v5992_v61 = vpop.f32.mrf.mxu3  ;;  %v957_v62 = vpop.f32.mrf.mxu0 }
  0xc1   :  { %v958_v48 = vadd.f32 %v957_v62, %v5804_v52  ;;  %v6004_v4 = vpop.f32.mrf.mxu1  ;;  %1351 = vmatpush.bf16.msrb.mxu0 %v3937_v50 }
  0xc2   :  { %v1042_v8 = vadd.f32 %v5852_v15, %v1013_v58 }
  0xc3   :  { %v987_v11 = vadd.f32 %v5864_v22, %v958_v48  ;;  %1246 = vmatmul.bf16.gmra.mxu0 %v5612_v24 }
  0xc4   :  { %v1610_v14 = vmax.f32 %v1042_v8, 0.0  ;;  %4368 = vmatmul.msk.bf16.gmra.mxu2 %vm925_vm0, %v5512_v47 }
  0xc5   :  { %v1620_v31 = vmax.f32 %v987_v11, 0.0  ;;  %v5003_v11 = vld [vmem:[%s7997_s1 + $0x1a8] sm:$0xf0] }
  0xc6   :  { %v1846_v16 = vsel %vm1714_vm8, %v1610_v14, 0.0 }
  0xc7   :  { %v6019_v15 = vmax.f32 %v1910_v45, %v1846_v16  ;;  %v1015_v18 = vpop.f32.mrf.mxu2  ;;  %v1856_v38 = vsel %vm1680_vm1, %v1620_v31, 0.0 }
  0xc8   :  { %v1016_v19 = vadd.f32 %v1015_v18, %v5830_v2  ;;  %v6022_v20 = vpop.f32.mrf.mxu3  ;;  %v959_v22 = vpop.f32.mrf.mxu0 }
  0xc9   :  { %v960_v21 = vadd.f32 %v959_v22, %v5804_v52  ;;  %v1063_v27 = vpop.f32.mrf.mxu1  ;;  %v4117_v22 = vor.u32 %v5003_v11, %v4116_v9 }
  0xca   :  { %v1045_v30 = vadd.f32 %v5898_v44, %v1016_v19  ;;  %v1064_v37 = vadd.f32 %v1063_v27, %v6026_v25  ;;  %v5047_v27 = vld [vmem:[%s7997_s1 + $0x308] sm:$0xf0] }
  0xcb   :  { %v989_v32 = vadd.f32 %v5910_v57, %v960_v21  ;;  %v4160_v57 = vld [vmem:[%s7997_s1 + $0x1d8] sm:$0xf]  ;;  %v4292_v21 = vld [vmem:[%s7997_s1 + $0x2e0] sm:$0xf] }
  0xcc   :  { %1294 = vmatmul.bf16.vlgmr.msrb.gmra.mxu1 %v5472_v29  ;;  %v4161_v45 = vor.u32 %v5014_v41, %v4160_v57  ;;  %v1621_v54 = vmax.f32 %v1045_v30, 0.0 }
  0xcd   :  { %v1631_v36 = vmax.f32 %v989_v32, 0.0  ;;  %4370 = vmatmul.msk.bf16.vlgmr.msrb.gmra.mxu3 %vm925_vm0, %v5334_v28 }
  0xce   :  { %1404 = vmatpush.bf16.msra.mxu1 %v4161_v45  ;;  %v1857_v1 = vsel %vm1681_vm3, %v1621_v54, 0.0 }
  0xcf   :  { %v1867_v40 = vsel %vm1691_vm2, %v1631_v36, 0.0  ;;  %v1017_v44 = vpop.f32.mrf.mxu2 }
  0xd0   :  { %v1999_v42 = vmax.f32 %v1856_v38, %v1867_v40  ;;  %v1018_v55 = vadd.f32 %v1017_v44, %v5830_v2  ;;  %v1092_v43 = vpop.f32.mrf.mxu3  ;;  %v962_v59 = vpop.f32.mrf.mxu0  ;;  %v4072_v38 = vld [vmem:[%s7997_s1 + $0x128] sm:$0xf]  ;;  %v4992_v40 = vld [vmem:[%s7997_s1 + $0x150] sm:$0xf0] }
  0xd1   :  { %v1093_v46 = vadd.f32 %v1092_v43, %v1064_v37  ;;  %v963_v49 = vadd.f32 %v962_v59, %v5804_v52  ;;  %v1065_v53 = vpop.f32.mrf.mxu1  ;;  %v4293_v37 = vor.u32 %v5047_v27, %v4292_v21  ;;  %v5031_v21 = vld [vmem:[%s7997_s1 + $0x28c] sm:$0xf]  ;;  %v4250_v27 = vld [vmem:[%s7997_s1 + $0x2b4] sm:$0xf0] }
  0xd2   :  { %v1047_v58 = vadd.f32 %v5948_v23, %v1018_v55  ;;  %v6060_v23 = vperm.slane %v5838_v5, 2  ;;  %v1066_v6 = vadd.f32 %v1065_v53, %v6026_v25  ;;  %1405 = vmatpush.bf16.msra.mxu1 %v4117_v22  ;;  %v4981_v53 = vld [vmem:[%s7997_s1 + $0xf8] sm:$0xf0] }
  0xd3   :  { %v992_v62 = vadd.f32 %v5960_v33, %v963_v49  ;;  %1251 = vmatmul.bf16.gmra.mxu0 %v5643_v39  ;;  %v1903_v33 = vrot.slane %v5989_v56, 4  ;;  %v1578_v30 = vmax.f32 %v1093_v46, 0.0  ;;  %1438 = vmatpush.bf16.msra.mxu3 %v4293_v37  ;;  %v4028_v49 = vld [vmem:[%s7997_s1 + $0xd0] sm:$0xf] }
  0xd4   :  { %v1632_v63 = vmax.f32 %v1047_v58, 0.0  ;;  %4369 = vmatmul.msk.bf16.gmra.mxu2 %vm925_vm0, %v5576_v10  ;;  %vm1682_vm9 = vcmp.lt.s32.totalorder %v5840_v7, %v6060_v23  ;;  %vm1693_vm10 = vcmp.lt.s32.totalorder %v5855_v17, %v6060_v23  ;;  %vm1704_vm11 = vcmp.lt.s32.totalorder %v5883_v35, %v6060_v23 }
  0xd5   :  { %v1642_v0 = vmax.f32 %v992_v62, 0.0  ;;  %v1814_v43 = vsel %vm1682_vm9, %v1578_v30, 0.0  ;;  %vm1715_vm12 = vcmp.lt.s32.totalorder %v5951_v26, %v6060_v23 }
  0xd6   :  { %v1868_v3 = vsel %vm1692_vm4, %v1632_v63, 0.0 }
  0xd7   :  { %v2008_v48 = vmax.f32 %v1857_v1, %v1868_v3  ;;  %v1878_v50 = vsel %vm1702_vm5, %v1642_v0, 0.0  ;;  %v1020_v8 = vpop.f32.mrf.mxu2  ;;  %v4029_v0 = vor.u32 %v4981_v53, %v4028_v49 }
  0xd8   :  { %v2000_v14 = vmax.f32 %v1999_v42, %v1878_v50  ;;  %v1021_v16 = vadd.f32 %v1020_v8, %v5830_v2  ;;  %v1094_v18 = vpop.f32.mrf.mxu3  ;;  %v964_v19 = vpop.f32.mrf.mxu0  ;;  %v4073_v42 = vor.u32 %v4992_v40, %v4072_v38  ;;  %v6119_v50 = vperm.slane %v5798_v51, 3 }
  0xd9   :  { %v1095_v31 = vadd.f32 %v1094_v18, %v1066_v6  ;;  %v965_v32 = vadd.f32 %v964_v19, %v5804_v52  ;;  %v1068_v36 = vpop.f32.mrf.mxu1  ;;  %v1904_v52 = vmax.f32 %v5989_v56, %v1903_v33  ;;  %v1912_v56 = vrot.slane %v6019_v15, 4  ;;  %v4970_v18 = vld [vmem:[%s7997_s1 + $0xa0] sm:$0xf0] }
  0xda   :  { %v1050_v44 = vadd.f32 %v5992_v61, %v1021_v16  ;;  %v1069_v45 = vadd.f32 %v1068_v36, %v6026_v25  ;;  %1406 = vmatpush.bf16.msra.mxu1 %v4073_v42 }
  0xdb   :  { %v1589_v57 = vmax.f32 %v1095_v31, 0.0  ;;  %v994_v41 = vadd.f32 %v6004_v4, %v965_v32  ;;  %v1905_v54 = vrot.slane %v1904_v52, 2  ;;  %v1913_v11 = vmax.f32 %v6019_v15, %v1912_v56 }
  0xdc   :  { %v1643_v55 = vmax.f32 %v1050_v44, 0.0  ;;  %1299 = vmatmul.bf16.gmra.mxu1 %v5548_v60  ;;  %v4253_v31 = vor.u32 %v5031_v21, %v4250_v27 }
  0xdd   :  { %v1825_v61 = vsel %vm1693_vm10, %v1589_v57, 0.0  ;;  %v1653_v59 = vmax.f32 %v994_v41, 0.0  ;;  %4371 = vmatmul.msk.bf16.gmra.mxu3 %vm925_vm0, %v5442_v13  ;;  %v1906_v12 = vmax.f32 %v1904_v52, %v1905_v54  ;;  %v1914_v32 = vrot.slane %v1913_v11, 2  ;;  %v3940_v57 = vld [vmem:[%s7997_s1 + $0x20] sm:$0xf] }
  0xde   :  { %v1879_v4 = vsel %vm1703_vm6, %v1643_v55, 0.0  ;;  %v1918_v46 = vmax.f32 %v1814_v43, %v1825_v61  ;;  %1407 = vmatpush.bf16.msra.mxu1 %v4029_v0  ;;  %1460 = vmatpush.bf16.msra.mxu0 %v4253_v31  ;;  %v4959_v41 = vld [vmem:[%s7997_s1 + $0x48] sm:$0xf0]  ;;  %v6163_v0 = vperm.slane %v5838_v5, 3 }
  0xdf   :  { %v2009_v58 = vmax.f32 %v2008_v48, %v1879_v4  ;;  %v1889_v62 = vsel %vm1713_vm7, %v1653_v59, 0.0  ;;  %v1022_v63 = vpop.f32.mrf.mxu2  ;;  %v3941_v59 = vor.u32 %v4959_v41, %v3940_v57  ;;  %v1907_v56 = vrot.slane %v1906_v12, 1 }
  0xe0   :  { %v2001_v1 = vmax.f32 %v2000_v14, %v1889_v62  ;;  %v1023_v3 = vadd.f32 %v1022_v63, %v5830_v2  ;;  %v1097_v33 = vpop.f32.mrf.mxu3  ;;  %v1121_v6 = vpop.f32.mrf.mxu0  ;;  %v3984_v2 = vld [vmem:[%s7997_s1 + $0x78] sm:$0xf]  ;;  %vm1683_vm14 = vcmp.lt.s32.totalorder %v5840_v7, %v6163_v0  ;;  %vm1694_vm15 = vcmp.lt.s32.totalorder %v5855_v17, %v6163_v0 }
  0xe1   :  { %v1098_v8 = vadd.f32 %v1097_v33, %v1069_v45  ;;  %v1070_v9 = vpop.f32.mrf.mxu1  ;;  %v3985_v22 = vor.u32 %v4970_v18, %v3984_v2  ;;  %v4206_v45 = vld [vmem:[%s7997_s1 + $0x25c] sm:$0xf0]  ;;  %vm1705_vm1 = vcmp.lt.s32.totalorder %v5883_v35, %v6163_v0  ;;  %vm1716_vm2 = vcmp.lt.s32.totalorder %v5951_v26, %v6163_v0 }
  0xe2   :  { %v2002_v16 = vrot.slane %v2001_v1, 4  ;;  %v1052_v48 = vadd.f32 %v6022_v20, %v1023_v3  ;;  %v1122_v20 = vadd.f32 %v1121_v6, %v6119_v50  ;;  %v1071_v44 = vadd.f32 %v1070_v9, %v6026_v25  ;;  %v4162_v3 = vld [vmem:[%s7997_s1 + $0x204] sm:$0xf0] }
  0xe3   :  { %v1600_v14 = vmax.f32 %v1098_v8, 0.0  ;;  %1352 = vmatmul.bf16.vlgmr.msrb.gmra.mxu0 %v5472_v29  ;;  %1408 = vmatpush.bf16.msra.mxu1 %v3985_v22  ;;  %v4209_v53 = vor.u32 %v5020_v34, %v4206_v45  ;;  %v1908_v8 = vmax.f32 %v1906_v12, %v1907_v56  ;;  %v4976_v56 = vld [vmem:[%s7997_s1 + $0xd4] sm:$0xf] }
  0xe4   :  { %v2003_v15 = vmax.f32 %v2001_v1, %v2002_v16  ;;  %v1654_v19 = vmax.f32 %v1052_v48, 0.0  ;;  %4374 = vmatmul.msk.bf16.vlgmr.msrb.gmra.mxu2 %vm925_vm0, %v5334_v28  ;;  %v5009_v1 = vld [vmem:[%s7997_s1 + $0x1dc] sm:$0xf] }
  0xe5   :  { %v1836_v30 = vsel %vm1704_vm11, %v1600_v14, 0.0  ;;  %1461 = vmatpush.bf16.msra.mxu0 %v4209_v53  ;;  %v4165_v6 = vor.u32 %v5009_v1, %v4162_v3 }
  0xe6   :  { %v2004_v36 = vrot.slane %v2003_v15, 2  ;;  %v1890_v37 = vsel %vm1714_vm8, %v1654_v19, 0.0  ;;  %v1919_v38 = vmax.f32 %v1918_v46, %v1836_v30  ;;  %v4998_v19 = vld [vmem:[%s7997_s1 + $0x184] sm:$0xf] }
  0xe7   :  { %v2010_v40 = vmax.f32 %v2009_v58, %v1890_v37  ;;  %v1150_v52 = vpop.f32.mrf.mxu2  ;;  %1409 = vmatpush.bf16.msra.mxu1 %v3941_v59  ;;  %v1915_v58 = vmax.f32 %v1913_v11, %v1914_v32 }
  0xe8   :  { %v2005_v42 = vmax.f32 %v2003_v15, %v2004_v36  ;;  %v1099_v55 = vpop.f32.mrf.mxu3  ;;  %v1151_v43 = vadd.f32 %v1150_v52, %v1122_v20  ;;  %v1123_v61 = vpop.f32.mrf.mxu0  ;;  %v4118_v20 = vld [vmem:[%s7997_s1 + $0x1ac] sm:$0xf0]  ;;  %v4074_v52 = vld [vmem:[%s7997_s1 + $0x154] sm:$0xf0] }
  0xe9   :  { %v2011_v4 = vrot.slane %v2010_v40, 4  ;;  %v1100_v46 = vadd.f32 %v1099_v55, %v1071_v44  ;;  %v1073_v49 = vpop.f32.mrf.mxu1  ;;  %v1124_v33 = vadd.f32 %v1123_v61, %v6119_v50  ;;  %1462 = vmatpush.bf16.msra.mxu0 %v4165_v6  ;;  %v1916_v22 = vrot.slane %v1915_v58, 1  ;;  %v4987_v44 = vld [vmem:[%s7997_s1 + $0x12c] sm:$0xf] }
  0xea   :  { %v2006_v54 = vrot.slane %v2005_v42, 1  ;;  %v1074_v48 = vadd.f32 %v1073_v49, %v6026_v25  ;;  %v1579_v2 = vmax.f32 %v1151_v43, 0.0  ;;  %v4121_v31 = vor.u32 %v4998_v19, %v4118_v20  ;;  %v5059_v6 = vld [vmem:[%s7997_s1 + $0x368] sm:$0xf0]  ;;  %v3986_v19 = vld [vmem:[%s7997_s1 + $0xa4] sm:$0xf0] }
  0xeb   :  { %v2012_v62 = vmax.f32 %v2010_v40, %v2011_v4  ;;  %v1611_v63 = vmax.f32 %v1100_v46, 0.0  ;;  %v1917_v57 = vmax.f32 %v1915_v58, %v1916_v22  ;;  %v4077_v55 = vor.u32 %v4987_v44, %v4074_v52  ;;  %v4030_v4 = vld [vmem:[%s7997_s1 + $0xfc] sm:$0xf0]  ;;  %v5053_v58 = vld [vmem:[%s7997_s1 + $0x33c] sm:$0xf] }
  0xec   :  { %1304 = vmatmul.bf16.gmra.mxu1 %v5612_v24  ;;  %v2007_v9 = vmax.f32 %v2005_v42, %v2006_v54  ;;  %v4954_v52 = vld [vmem:[%s7997_s1 + $0x24] sm:$0xf] }
  0xed   :  { %v2013_v11 = vrot.slane %v2012_v62, 2  ;;  %v1847_v16 = vsel %vm1715_vm12, %v1611_v63, 0.0  ;;  %4372 = vmatmul.msk.bf16.gmra.mxu3 %vm925_vm0, %v5512_v47  ;;  %1463 = vmatpush.bf16.msra.mxu0 %v4121_v31 }
  0xee   :  { %v6179_v14 = vmax.f32 %v1919_v38, %v1847_v16  ;;  %v6182_v18 = vsel %vm3457_vm13, %v2007_v9, %v1908_v8  ;;  %v1815_v38 = vsel %vm1683_vm14, %v1579_v2, 0.0  ;;  %v4256_v8 = vld [vmem:[%s7997_s1 + $0x290] sm:$0xf]  ;;  %v5037_v16 = vld [vmem:[%s7997_s1 + $0x2b8] sm:$0xf0] }
  0xef   :  { %v2014_v15 = vmax.f32 %v2012_v62, %v2013_v11  ;;  %v1152_v12 = vpop.f32.mrf.mxu2  ;;  %v4338_v62 = vld [vmem:[%s7997_s1 + $0x364] sm:$0xf0] }
  0xf0   :  { %v1102_v21 = vpop.f32.mrf.mxu3  ;;  %v1153_v27 = vadd.f32 %v1152_v12, %v1124_v33  ;;  %v1126_v30 = vpop.f32.mrf.mxu0  ;;  %v4341_v3 = vor.u32 %v5053_v58, %v4338_v62  ;;  %v4344_v33 = vld [vmem:[%s7997_s1 + $0x340] sm:$0xf]  ;;  %v4965_v12 = vld [vmem:[%s7997_s1 + $0x7c] sm:$0xf] }
  0xf1   :  { %v1103_v32 = vadd.f32 %v1102_v21, %v1074_v48  ;;  %v1075_v36 = vpop.f32.mrf.mxu1  ;;  %v2015_v37 = vrot.slane %v2014_v15, 1  ;;  %v1127_v42 = vadd.f32 %v1126_v30, %v6119_v50  ;;  %1464 = vmatpush.bf16.msra.mxu0 %v4077_v55  ;;  %v4345_v11 = vor.u32 %v5059_v6, %v4344_v33 }
  0xf2   :  { %v1590_v40 = vmax.f32 %v1153_v27, 0.0  ;;  %v1076_v59 = vadd.f32 %v1075_v36, %v6026_v25  ;;  %v4033_v48 = vor.u32 %v4976_v56, %v4030_v4  ;;  %1495 = vmatpush.bf16.msra.mxu2 %v4341_v3  ;;  %v4212_v36 = vld [vmem:[%s7997_s1 + $0x238] sm:$0xf] }
  0xf3   :  { %1357 = vmatmul.bf16.gmra.mxu0 %v5548_v60  ;;  %v2016_v41 = vmax.f32 %v2014_v15, %v2015_v37  ;;  %v1622_v46 = vmax.f32 %v1103_v32, 0.0  ;;  %v4257_v15 = vor.u32 %v5037_v16, %v4256_v8  ;;  %1553 = vmatpush.bf16.msrb.mxu3 %v4345_v11  ;;  %v5026_v37 = vld [vmem:[%s7997_s1 + $0x260] sm:$0xf0]  ;;  %v6295_v16 = vperm.slane %v5798_v51, 4 }
  0xf4   :  { %v1826_v34 = vsel %vm1694_vm15, %v1590_v40, 0.0  ;;  %4375 = vmatmul.msk.bf16.gmra.mxu2 %vm925_vm0, %v5442_v13  ;;  %v4213_v44 = vor.u32 %v5026_v37, %v4212_v36 }
  0xf5   :  { %v1927_v43 = vmax.f32 %v1815_v38, %v1826_v34  ;;  %v6211_v61 = vsel %vm3457_vm13, %v2016_v41, %v1917_v57  ;;  %v1858_v21 = vsel %vm1682_vm9, %v1622_v46, 0.0  ;;  %1518 = vmatpush.bf16.msrb.mxu1 %v4257_v15  ;;  %1465 = vmatpush.bf16.msra.mxu0 %v4033_v48  ;;  %v3989_v38 = vor.u32 %v4965_v12, %v3986_v19  ;;  %v3942_v57 = vld [vmem:[%s7997_s1 + $0x4c] sm:$0xf0]  ;;  %v5042_v41 = vld [vmem:[%s7997_s1 + $0x2e4] sm:$0xf] }
  0xf6   :  { %8007 = vst [vmem:[#allocation5_spill] sm:$0xff] %v6211_v61  ;;  %v3945_v46 = vor.u32 %v4954_v52, %v3942_v57  ;;  %v5093_v61 = vld [vmem:[%s8001_s5 + $0x10c] sm:$0xf] }
  0xf7   :  { %v1155_v45 = vpop.f32.mrf.mxu2 }
  0xf8   :  { %v1104_v49 = vpop.f32.mrf.mxu3  ;;  %v1156_v53 = vadd.f32 %v1155_v45, %v1127_v42  ;;  %v1128_v54 = vpop.f32.mrf.mxu0 }
  0xf9   :  { %v1105_v63 = vadd.f32 %v1104_v49, %v1076_v59  ;;  %v1078_v1 = vpop.f32.mrf.mxu1  ;;  %v1129_v22 = vadd.f32 %v1128_v54, %v6119_v50  ;;  %1519 = vmatpush.bf16.msrb.mxu1 %v4213_v44  ;;  %1466 = vmatpush.bf16.msra.mxu0 %v3989_v38 }
  0xfa   :  { %v1601_v9 = vmax.f32 %v1156_v53, 0.0  ;;  %v1079_v31 = vadd.f32 %v1078_v1, %v6026_v25  ;;  %v1921_v1 = vrot.slane %v6179_v14, 4 }
  0xfb   :  { %v1633_v2 = vmax.f32 %v1105_v63, 0.0 }
  0xfc   :  { %v1837_v20 = vsel %vm1705_vm1, %v1601_v9, 0.0  ;;  %1309 = vmatmul.bf16.gmra.mxu1 %v5643_v39 }
  0xfd   :  { %v1869_v27 = vsel %vm1693_vm10, %v1633_v2, 0.0  ;;  %v1928_v30 = vmax.f32 %v1927_v43, %v1837_v20  ;;  %4373 = vmatmul.msk.bf16.gmra.mxu3 %vm925_vm0, %v5576_v10  ;;  %v4294_v43 = vld [vmem:[%s7997_s1 + $0x30c] sm:$0xf0]  ;;  %1467 = vmatpush.bf16.msra.mxu0 %v3945_v46  ;;  %v1922_v2 = vmax.f32 %v6179_v14, %v1921_v1  ;;  %v4168_v14 = vld [vmem:[%s7997_s1 + $0x1e0] sm:$0xf] }
  0xfe   :  { %v2017_v32 = vmax.f32 %v1858_v21, %v1869_v27  ;;  %v4297_v56 = vor.u32 %v5042_v41, %v4294_v43 }
  0xff   :  { %v1157_v40 = vpop.f32.mrf.mxu2  ;;  %v1923_v21 = vrot.slane %v1922_v2, 2 }
 0x100   :  { %v1107_v34 = vpop.f32.mrf.mxu3  ;;  %v1158_v42 = vadd.f32 %v1157_v40, %v1129_v22  ;;  %v1131_v55 = vpop.f32.mrf.mxu0  ;;  %1496 = vmatpush.bf16.msra.mxu2 %v4297_v56 }
 0x101   :  { %v1108_v59 = vadd.f32 %v1107_v34, %v1079_v31  ;;  %v1080_v45 = vpop.f32.mrf.mxu1  ;;  %v1132_v54 = vadd.f32 %v1131_v55, %v6119_v50  ;;  %v1924_v41 = vmax.f32 %v1922_v2, %v1923_v21  ;;  %v4993_v2 = vld [vmem:[%s7997_s1 + $0x158] sm:$0xf0] }
 0x102   :  { %v1612_v4 = vmax.f32 %v1158_v42, 0.0  ;;  %v1081_v3 = vadd.f32 %v1080_v45, %v6026_v25 }
 0x103   :  { %v1644_v49 = vmax.f32 %v1108_v59, 0.0  ;;  %1362 = vmatmul.bf16.gmra.mxu0 %v5612_v24  ;;  %v6323_v59 = vperm.slane %v5838_v5, 4  ;;  %v1925_v56 = vrot.slane %v1924_v41, 1 }
 0x104   :  { %v1848_v53 = vsel %vm1716_vm2, %v1612_v4, 0.0  ;;  %4376 = vmatmul.msk.bf16.gmra.mxu2 %vm925_vm0, %v5512_v47 }
 0x105   :  { %v1880_v58 = vsel %vm1704_vm11, %v1644_v49, 0.0  ;;  %v6290_v62 = vmax.f32 %v1928_v30, %v1848_v53  ;;  %v5015_v30 = vld [vmem:[%s7997_s1 + $0x208] sm:$0xf0]  ;;  %v4124_v49 = vld [vmem:[%s7997_s1 + $0x188] sm:$0xf]  ;;  %vm1684_vm3 = vcmp.lt.s32.totalorder %v5840_v7, %v6323_v59  ;;  %vm1695_vm4 = vcmp.lt.s32.totalorder %v5855_v17, %v6323_v59 }
 0x106   :  { %v2018_v63 = vmax.f32 %v2017_v32, %v1880_v58  ;;  %v4169_v37 = vor.u32 %v5015_v30, %v4168_v14  ;;  %v5004_v53 = vld [vmem:[%s7997_s1 + $0x1b0] sm:$0xf0]  ;;  %vm1706_vm5 = vcmp.lt.s32.totalorder %v5883_v35, %v6323_v59  ;;  %vm1717_vm6 = vcmp.lt.s32.totalorder %v5951_v26, %v6323_v59 }
 0x107   :  { %v1160_v33 = vpop.f32.mrf.mxu2  ;;  %v4125_v5 = vor.u32 %v5004_v53, %v4124_v49  ;;  %v4536_v49 = vld [vmem:[%s8001_s5 + $0xe0] sm:$0xf]  ;;  %v5090_v53 = vld [vmem:[%s8001_s5 + $0xec] sm:$0xf0] }
 0x108   :  { %v1109_v6 = vpop.f32.mrf.mxu3  ;;  %v1161_v8 = vadd.f32 %v1160_v33, %v1132_v54  ;;  %v1133_v9 = vpop.f32.mrf.mxu0  ;;  %1520 = vmatpush.bf16.msrb.mxu1 %v4169_v37  ;;  %v4300_v33 = vld [vmem:[%s7997_s1 + $0x2e8] sm:$0xf]  ;;  %v4982_v37 = vld [vmem:[%s7997_s1 + $0x100] sm:$0xf0] }
 0x109   :  { %v1110_v11 = vadd.f32 %v1109_v6, %v1081_v3  ;;  %v1179_v48 = vpop.f32.mrf.mxu1  ;;  %v1134_v12 = vadd.f32 %v1133_v9, %v6119_v50  ;;  %v5048_v6 = vld [vmem:[%s7997_s1 + $0x310] sm:$0xf0] }
 0x10a   :  { %v1180_v19 = vadd.f32 %v1179_v48, %v6295_v16  ;;  %v1623_v22 = vmax.f32 %v1161_v8, 0.0  ;;  %v4080_v48 = vld [vmem:[%s7997_s1 + $0x130] sm:$0xf] }
 0x10b   :  { %v1655_v15 = vmax.f32 %v1110_v11, 0.0  ;;  %v4301_v11 = vor.u32 %v5048_v6, %v4300_v33  ;;  %v3948_v6 = vld [vmem:[%s7997_s1 + $0x28] sm:$0xf] }
 0x10c   :  { %1410 = vmatmul.bf16.vlgmr.msra.gmra.mxu1 %v5472_v29  ;;  %v1859_v52 = vsel %vm1683_vm14, %v1623_v22, 0.0  ;;  %v1930_v22 = vrot.slane %v6290_v62, 4 }
 0x10d   :  { %v1891_v25 = vsel %vm1715_vm12, %v1655_v15, 0.0  ;;  %4378 = vmatmul.msk.bf16.vlgmr.msra.gmra.mxu3 %vm925_vm0, %v5334_v28  ;;  %1521 = vmatpush.bf16.msrb.mxu1 %v4125_v5 }
 0x10e   :  { %v2019_v20 = vmax.f32 %v2018_v63, %v1891_v25  ;;  %1554 = vmatpush.bf16.msrb.mxu3 %v4301_v11  ;;  %v4081_v25 = vor.u32 %v4993_v2, %v4080_v48 }
 0x10f   :  { %v1162_v27 = vpop.f32.mrf.mxu2 }
 0x110   :  { %v2020_v31 = vrot.slane %v2019_v20, 4  ;;  %v1163_v23 = vadd.f32 %v1162_v27, %v1134_v12  ;;  %v1208_v32 = vpop.f32.mrf.mxu3  ;;  %v1136_v36 = vpop.f32.mrf.mxu0 }
 0x111   :  { %v1209_v38 = vadd.f32 %v1208_v32, %v1180_v19  ;;  %v1181_v40 = vpop.f32.mrf.mxu1  ;;  %v1137_v55 = vadd.f32 %v1136_v36, %v6119_v50  ;;  %v1926_v19 = vmax.f32 %v1924_v41, %v1925_v56  ;;  %1522 = vmatpush.bf16.msrb.mxu1 %v4081_v25  ;;  %v3992_v56 = vld [vmem:[%s7997_s1 + $0x80] sm:$0xf] }
 0x112   :  { %v2021_v44 = vmax.f32 %v2019_v20, %v2020_v31  ;;  %v1634_v57 = vmax.f32 %v1163_v23, 0.0  ;;  %v1182_v4 = vadd.f32 %v1181_v40, %v6295_v16 }
 0x113   :  { %1367 = vmatmul.bf16.gmra.mxu0 %v5643_v39  ;;  %v1580_v58 = vmax.f32 %v1209_v38, 0.0 }
 0x114   :  { %v2022_v34 = vrot.slane %v2021_v44, 2  ;;  %v1870_v42 = vsel %vm1694_vm15, %v1634_v57, 0.0  ;;  %4377 = vmatmul.msk.bf16.gmra.mxu2 %vm925_vm0, %v5576_v10  ;;  %v6373_v57 = vperm.slane %v5798_v51, 5  ;;  %v4971_v51 = vld [vmem:[%s7997_s1 + $0xa8] sm:$0xf0] }
 0x115   :  { %v2026_v43 = vmax.f32 %v1859_v52, %v1870_v42  ;;  %v1816_v21 = vsel %vm1684_vm3, %v1580_v58, 0.0 }
 0x116   :  { %v2023_v45 = vmax.f32 %v2021_v44, %v2022_v34  ;;  %v1931_v34 = vmax.f32 %v6290_v62, %v1930_v22 }
 0x117   :  { %v1165_v46 = vpop.f32.mrf.mxu2 }
 0x118   :  { %v2024_v54 = vrot.slane %v2023_v45, 1  ;;  %v1166_v63 = vadd.f32 %v1165_v46, %v1137_v55  ;;  %v1210_v1 = vpop.f32.mrf.mxu3  ;;  %v1138_v3 = vpop.f32.mrf.mxu0  ;;  %v3993_v46 = vor.u32 %v4971_v51, %v3992_v56 }
 0x119   :  { %v1211_v8 = vadd.f32 %v1210_v1, %v1182_v4  ;;  %v1184_v9 = vpop.f32.mrf.mxu1  ;;  %v1139_v14 = vadd.f32 %v1138_v3, %v6119_v50  ;;  %v4036_v50 = vld [vmem:[%s7997_s1 + $0xd8] sm:$0xf] }
 0x11a   :  { %v1645_v15 = vmax.f32 %v1166_v63, 0.0  ;;  %v2025_v20 = vmax.f32 %v2023_v45, %v2024_v54  ;;  %v1185_v23 = vadd.f32 %v1184_v9, %v6295_v16  ;;  %v4037_v40 = vor.u32 %v4982_v37, %v4036_v50 }
 0x11b   :  { %v1591_v12 = vmax.f32 %v1211_v8, 0.0  ;;  %v1932_v54 = vrot.slane %v1931_v34, 2  ;;  %v4537_v63 = vor.u32 %v5090_v53, %v4536_v49  ;;  %v4960_v8 = vld [vmem:[%s7997_s1 + $0x50] sm:$0xf0] }
 0x11c   :  { %v1881_v27 = vsel %vm1705_vm1, %v1645_v15, 0.0  ;;  %1415 = vmatmul.bf16.gmra.mxu1 %v5548_v60  ;;  %v6364_v32 = vsel %vm3457_vm13, %v2025_v20, %v1926_v19  ;;  %v3949_v2 = vor.u32 %v4960_v8, %v3948_v6  ;;  %v4520_v15 = vld [vmem:[%s8001_s5 + $0xc0] sm:$0xf] }
 0x11d   :  { %v2027_v30 = vmax.f32 %v2026_v43, %v1881_v27  ;;  %v1827_v31 = vsel %vm1695_vm4, %v1591_v12, 0.0  ;;  %4379 = vmatmul.msk.bf16.gmra.mxu3 %vm925_vm0, %v5442_v13  ;;  %1523 = vmatpush.bf16.msrb.mxu1 %v4037_v40  ;;  %v5086_v12 = vld [vmem:[%s8001_s5 + $0xcc] sm:$0xf0]  ;;  %v1933_v25 = vmax.f32 %v1931_v34, %v1932_v54  ;;  %v6418_v27 = vld [vmem:[%s7999_s3] sm:$0xff] }
 0x11e   :  { %v1936_v36 = vmax.f32 %v1816_v21, %v1827_v31  ;;  %2793 = vmatpush.bf16.msrb.mxu0 %v4537_v63  ;;  %v4521_v21 = vor.u32 %v5086_v12, %v4520_v15  ;;  %v4472_v63 = vld [vmem:[%s8001_s5 + $0x60] sm:$0xf] }
 0x11f   :  { %v1167_v38 = vpop.f32.mrf.mxu2 }
 0x120   :  { %v1168_v44 = vadd.f32 %v1167_v38, %v1139_v14  ;;  %v1213_v52 = vpop.f32.mrf.mxu3  ;;  %v1237_v41 = vpop.f32.mrf.mxu0  ;;  %v6421_v14 = vperm.slane %v6418_v27, 5  ;;  %v1934_v38 = vrot.slane %v1933_v25, 1 }
 0x121   :  { %v1214_v42 = vadd.f32 %v1213_v52, %v1185_v23  ;;  %v1186_v55 = vpop.f32.mrf.mxu1  ;;  %v1238_v4 = vadd.f32 %v1237_v41, %v6373_v57  ;;  %1524 = vmatpush.bf16.msrb.mxu1 %v3993_v46  ;;  %v4504_v23 = vld [vmem:[%s8001_s5 + $0xa0] sm:$0xf] }
 0x122   :  { %v1656_v43 = vmax.f32 %v1168_v44, 0.0  ;;  %v1187_v5 = vadd.f32 %v1186_v55, %v6295_v16  ;;  %2794 = vmatpush.bf16.msrb.mxu0 %v4521_v21  ;;  %vm1685_vm7 = vcmp.lt.s32.totalorder %v5840_v7, %v6421_v14  ;;  %vm1696_vm8 = vcmp.lt.s32.totalorder %v5855_v17, %v6421_v14 }
 0x123   :  { %v1602_v45 = vmax.f32 %v1214_v42, 0.0  ;;  %1468 = vmatmul.bf16.vlgmr.msra.gmra.mxu0 %v5472_v29  ;;  %v1935_v53 = vmax.f32 %v1933_v25, %v1934_v38  ;;  %vm1707_vm9 = vcmp.lt.s32.totalorder %v5883_v35, %v6421_v14  ;;  %vm1718_vm10 = vcmp.lt.s32.totalorder %v5951_v26, %v6421_v14 }
 0x124   :  { %v1892_v62 = vsel %vm1716_vm2, %v1656_v43, 0.0  ;;  %4382 = vmatmul.msk.bf16.vlgmr.msra.gmra.mxu2 %vm925_vm0, %v5334_v28  ;;  %v4488_v43 = vld [vmem:[%s8001_s5 + $0x80] sm:$0xf] }
 0x125   :  { %v2028_v58 = vmax.f32 %v2027_v30, %v1892_v62  ;;  %v1838_v0 = vsel %vm1706_vm5, %v1602_v45, 0.0  ;;  %1525 = vmatpush.bf16.msrb.mxu1 %v3949_v2  ;;  %v5078_v45 = vld [vmem:[%s8001_s5 + $0x8c] sm:$0xf0] }
 0x126   :  { %v1937_v1 = vmax.f32 %v1936_v36, %v1838_v0  ;;  %v5082_v36 = vld [vmem:[%s8001_s5 + $0xac] sm:$0xf0] }
 0x127   :  { %v2029_v3 = vrot.slane %v2028_v58, 4  ;;  %v1266_v33 = vpop.f32.mrf.mxu2  ;;  %v4505_v37 = vor.u32 %v5082_v36, %v4504_v23  ;;  %v5070_v2 = vld [vmem:[%s8001_s5 + $0x4c] sm:$0xf0]  ;;  %v4920_v23 = vld [vmem:[%s8001_s5 + $0x3e0] sm:$0xf] }
 0x128   :  { %v1215_v9 = vpop.f32.mrf.mxu3  ;;  %v1267_v11 = vadd.f32 %v1266_v33, %v1238_v4  ;;  %v1239_v48 = vpop.f32.mrf.mxu0  ;;  %v4489_v4 = vor.u32 %v5078_v45, %v4488_v43  ;;  %v5186_v36 = vld [vmem:[%s8001_s5 + $0x3ec] sm:$0xf0]  ;;  %v4904_v43 = vld [vmem:[%s8001_s5 + $0x3c0] sm:$0xf] }
 0x129   :  { %v2030_v19 = vmax.f32 %v2028_v58, %v2029_v3  ;;  %v1216_v20 = vadd.f32 %v1215_v9, %v1187_v5  ;;  %v1189_v22 = vpop.f32.mrf.mxu1  ;;  %v1240_v50 = vadd.f32 %v1239_v48, %v6373_v57  ;;  %2795 = vmatpush.bf16.msrb.mxu0 %v4505_v37  ;;  %v4456_v48 = vld [vmem:[%s8001_s5 + $0x40] sm:$0xf] }
 0x12a   :  { %v1190_v52 = vadd.f32 %v1189_v22, %v6295_v16  ;;  %v1581_v34 = vmax.f32 %v1267_v11, 0.0  ;;  %v5122_v22 = vld [vmem:[%s8001_s5 + $0x1ec] sm:$0xf0]  ;;  %v4457_v37 = vor.u32 %v5070_v2, %v4456_v48  ;;  %v4888_v48 = vld [vmem:[%s8001_s5 + $0x3a0] sm:$0xf] }
 0x12b   :  { %v2031_v30 = vrot.slane %v2030_v19, 2  ;;  %v1613_v31 = vmax.f32 %v1216_v20, 0.0  ;;  %v4664_v20 = vld [vmem:[%s8001_s5 + $0x1e0] sm:$0xf]  ;;  %v5178_v2 = vld [vmem:[%s8001_s5 + $0x3ac] sm:$0xf0] }
 0x12c   :  { %1420 = vmatmul.bf16.gmra.mxu1 %v5612_v24  ;;  %v1817_v58 = vsel %vm1685_vm7, %v1581_v34, 0.0 }
 0x12d   :  { %v2032_v40 = vmax.f32 %v2030_v19, %v2031_v30  ;;  %v1849_v44 = vsel %vm1717_vm6, %v1613_v31, 0.0  ;;  %4380 = vmatmul.msk.bf16.gmra.mxu3 %vm925_vm0, %v5512_v47  ;;  %2796 = vmatpush.bf16.msrb.mxu0 %v4489_v4  ;;  %v4665_v31 = vor.u32 %v5122_v22, %v4664_v20  ;;  %v5182_v4 = vld [vmem:[%s8001_s5 + $0x3cc] sm:$0xf0]  ;;  %v4889_v20 = vor.u32 %v5178_v2, %v4888_v48  ;;  %v4424_v22 = vld [vmem:[%s8001_s5] sm:$0xf] }
 0x12e   :  { %v6437_v41 = vmax.f32 %v1937_v1, %v1849_v44  ;;  %v5074_v1 = vld [vmem:[%s8001_s5 + $0x6c] sm:$0xf0] }
 0x12f   :  { %v2033_v42 = vrot.slane %v2032_v40, 1  ;;  %v1268_v55 = vpop.f32.mrf.mxu2  ;;  %v4473_v6 = vor.u32 %v5074_v1, %v4472_v63  ;;  %v5118_v44 = vld [vmem:[%s8001_s5 + $0x1cc] sm:$0xf0]  ;;  %2822 = vmatpush.bf16.msrb.mxu2 %v4665_v31  ;;  %v4632_v1 = vld [vmem:[%s8001_s5 + $0x1a0] sm:$0xf] }
 0x130   :  { %v1218_v56 = vpop.f32.mrf.mxu3  ;;  %v1269_v51 = vadd.f32 %v1268_v55, %v1240_v50  ;;  %v1242_v62 = vpop.f32.mrf.mxu0  ;;  %v4648_v50 = vld [vmem:[%s8001_s5 + $0x1c0] sm:$0xf]  ;;  %v5154_v55 = vld [vmem:[%s8001_s5 + $0x2ec] sm:$0xf0] }
 0x131   :  { %v1219_v46 = vadd.f32 %v1218_v56, %v1190_v52  ;;  %v1191_v49 = vpop.f32.mrf.mxu1  ;;  %v2034_v54 = vmax.f32 %v2032_v40, %v2033_v42  ;;  %v1243_v33 = vadd.f32 %v1242_v62, %v6373_v57  ;;  %2797 = vmatpush.bf16.msrb.mxu0 %v4473_v6  ;;  %v4921_v40 = vor.u32 %v5186_v36, %v4920_v23  ;;  %v4792_v52 = vld [vmem:[%s8001_s5 + $0x2e0] sm:$0xf] }
 0x132   :  { %v1592_v0 = vmax.f32 %v1269_v51, 0.0  ;;  %v1192_v9 = vadd.f32 %v1191_v49, %v6295_v16  ;;  %v4649_v42 = vor.u32 %v5118_v44, %v4648_v50  ;;  %v4793_v62 = vor.u32 %v5154_v55, %v4792_v52 }
 0x133   :  { %1473 = vmatmul.bf16.gmra.mxu0 %v5548_v60  ;;  %v6460_v3 = vsel %vm3457_vm13, %v2034_v54, %v1935_v53  ;;  %v1624_v15 = vmax.f32 %v1219_v46, 0.0  ;;  %2880 = vmatpush.bf16.msra.mxu3 %v4921_v40  ;;  %v4440_v46 = vld [vmem:[%s8001_s5 + $0x20] sm:$0xf]  ;;  %v1939_v40 = vrot.slane %v6437_v41, 4 }
 0x134   :  { %8008 = vst [vmem:[#allocation6_spill] sm:$0xff] %v6460_v3  ;;  %v1828_v5 = vsel %vm1696_vm8, %v1592_v0, 0.0  ;;  %4383 = vmatmul.msk.bf16.gmra.mxu2 %vm925_vm0, %v5442_v13  ;;  %v5066_v0 = vld [vmem:[%s8001_s5 + $0x2c] sm:$0xf0]  ;;  %2851 = vmatpush.bf16.msra.mxu1 %v4793_v62 }
 0x135   :  { %v1945_v8 = vmax.f32 %v1817_v58, %v1828_v5  ;;  %v1860_v45 = vsel %vm1684_vm3, %v1624_v15, 0.0  ;;  %v4905_v58 = vor.u32 %v5182_v4, %v4904_v43  ;;  %2798 = vmatpush.bf16.msrb.mxu0 %v4457_v37  ;;  %v5114_v5 = vld [vmem:[%s8001_s5 + $0x1ac] sm:$0xf0]  ;;  %v4441_v6 = vor.u32 %v5066_v0, %v4440_v46  ;;  %2823 = vmatpush.bf16.msrb.mxu2 %v4649_v42  ;;  %v6571_v4 = vld [vmem:[%s7998_s2] sm:$0xff] }
 0x136   :  { %v6574_v46 = vperm.slane %v6571_v4, 6 }
 0x137   :  { %v1271_v11 = vpop.f32.mrf.mxu2  ;;  %2881 = vmatpush.bf16.msra.mxu3 %v4905_v58 }
 0x138   :  { %v1220_v12 = vpop.f32.mrf.mxu3  ;;  %v1272_v25 = vadd.f32 %v1271_v11, %v1243_v33  ;;  %v1244_v19 = vpop.f32.mrf.mxu0  ;;  %v4776_v33 = vld [vmem:[%s8001_s5 + $0x2c0] sm:$0xf]  ;;  %v5150_v11 = vld [vmem:[%s8001_s5 + $0x2cc] sm:$0xf0] }
 0x139   :  { %v1221_v21 = vadd.f32 %v1220_v12, %v1192_v9  ;;  %v1194_v30 = vpop.f32.mrf.mxu1  ;;  %v1245_v51 = vadd.f32 %v1244_v19, %v6373_v57  ;;  %v4633_v9 = vor.u32 %v5114_v5, %v4632_v1  ;;  %v4777_v19 = vor.u32 %v5150_v11, %v4776_v33  ;;  %2799 = vmatpush.bf16.msrb.mxu0 %v4441_v6 }
 0x13a   :  { %v1603_v38 = vmax.f32 %v1272_v25, 0.0  ;;  %v1195_v54 = vadd.f32 %v1194_v30, %v6295_v16 }
 0x13b   :  { %v1635_v34 = vmax.f32 %v1221_v21, 0.0  ;;  %v5062_v21 = vld [vmem:[%s8001_s5 + $0xc] sm:$0xf0]  ;;  %2852 = vmatpush.bf16.msra.mxu1 %v4777_v19  ;;  %2824 = vmatpush.bf16.msrb.mxu2 %v4633_v9 }
 0x13c   :  { %v1839_v56 = vsel %vm1707_vm9, %v1603_v38, 0.0  ;;  %1425 = vmatmul.bf16.gmra.mxu1 %v5643_v39  ;;  %v4425_v23 = vor.u32 %v5062_v21, %v4424_v22  ;;  %2882 = vmatpush.bf16.msra.mxu3 %v4889_v20  ;;  %v5146_v9 = vld [vmem:[%s8001_s5 + $0x2ac] sm:$0xf0] }
 0x13d   :  { %v1871_v49 = vsel %vm1695_vm4, %v1635_v34, 0.0  ;;  %v1946_v53 = vmax.f32 %v1945_v8, %v1839_v56  ;;  %4381 = vmatmul.msk.bf16.gmra.mxu3 %vm925_vm0, %v5576_v10 }
 0x13e   :  { %v2035_v63 = vmax.f32 %v1860_v45, %v1871_v49  ;;  %2800 = vmatpush.bf16.msrb.mxu0 %v4425_v23 }
 0x13f   :  { %v1273_v8 = vpop.f32.mrf.mxu2 }
 0x140   :  { %v1223_v15 = vpop.f32.mrf.mxu3  ;;  %v1274_v12 = vadd.f32 %v1273_v8, %v1245_v51  ;;  %v1247_v25 = vpop.f32.mrf.mxu0  ;;  %v1940_v51 = vmax.f32 %v6437_v41, %v1939_v40  ;;  %v4760_v8 = vld [vmem:[%s8001_s5 + $0x2a0] sm:$0xf]  ;;  %v5102_v40 = vld [vmem:[%s8001_s5 + $0x14c] sm:$0xf0] }
 0x141   :  { %v1224_v30 = vadd.f32 %v1223_v15, %v1195_v54  ;;  %v1196_v31 = vpop.f32.mrf.mxu1  ;;  %v1248_v38 = vadd.f32 %v1247_v25, %v6373_v57  ;;  %v5110_v54 = vld [vmem:[%s8001_s5 + $0x18c] sm:$0xf0]  ;;  %v4761_v15 = vor.u32 %v5146_v9, %v4760_v8 }
 0x142   :  { %v1614_v36 = vmax.f32 %v1274_v12, 0.0  ;;  %v1197_v42 = vadd.f32 %v1196_v31, %v6295_v16  ;;  %v4616_v16 = vld [vmem:[%s8001_s5 + $0x180] sm:$0xf]  ;;  %v1941_v0 = vrot.slane %v1940_v51, 2  ;;  %v5174_v25 = vld [vmem:[%s8001_s5 + $0x38c] sm:$0xf0] }
 0x143   :  { %v1646_v50 = vmax.f32 %v1224_v30, 0.0  ;;  %1478 = vmatmul.bf16.gmra.mxu0 %v5612_v24  ;;  %v4617_v58 = vor.u32 %v5110_v54, %v4616_v16  ;;  %v4872_v12 = vld [vmem:[%s8001_s5 + $0x380] sm:$0xf]  ;;  %v5106_v31 = vld [vmem:[%s8001_s5 + $0x16c] sm:$0xf0]  ;;  %2853 = vmatpush.bf16.msra.mxu1 %v4761_v15 }
 0x144   :  { %v1850_v37 = vsel %vm1718_vm10, %v1614_v36, 0.0  ;;  %4384 = vmatmul.msk.bf16.gmra.mxu2 %vm925_vm0, %v5512_v47  ;;  %v1942_v19 = vmax.f32 %v1940_v51, %v1941_v0  ;;  %v4873_v21 = vor.u32 %v5174_v25, %v4872_v12  ;;  %v4600_v30 = vld [vmem:[%s8001_s5 + $0x160] sm:$0xf]  ;;  %v5142_v16 = vld [vmem:[%s8001_s5 + $0x28c] sm:$0xf0] }
 0x145   :  { %v1882_v44 = vsel %vm1706_vm5, %v1646_v50, 0.0  ;;  %v6564_v52 = vmax.f32 %v1946_v53, %v1850_v37  ;;  %2825 = vmatpush.bf16.msrb.mxu2 %v4617_v58  ;;  %v4601_v37 = vor.u32 %v5106_v31, %v4600_v30  ;;  %v4568_v54 = vld [vmem:[%s8001_s5 + $0x120] sm:$0xf]  ;;  %v5166_v25 = vld [vmem:[%s8001_s5 + $0x34c] sm:$0xf0] }
 0x146   :  { %v2036_v34 = vmax.f32 %v2035_v63, %v1882_v44  ;;  %2883 = vmatpush.bf16.msra.mxu3 %v4873_v21 }
 0x147   :  { %v1276_v55 = vpop.f32.mrf.mxu2  ;;  %v1948_v15 = vrot.slane %v6564_v52, 4 }
 0x148   :  { %v1225_v43 = vpop.f32.mrf.mxu3  ;;  %v1277_v45 = vadd.f32 %v1276_v55, %v1248_v38  ;;  %v1249_v56 = vpop.f32.mrf.mxu0  ;;  %v4584_v38 = vld [vmem:[%s8001_s5 + $0x140] sm:$0xf] }
 0x149   :  { %v1226_v62 = vadd.f32 %v1225_v43, %v1197_v42  ;;  %v1295_v49 = vpop.f32.mrf.mxu1  ;;  %v1250_v41 = vadd.f32 %v1249_v56, %v6373_v57  ;;  %v6625_v43 = vperm.slane %v6418_v27, 6  ;;  %2826 = vmatpush.bf16.msrb.mxu2 %v4601_v37  ;;  %v1943_v56 = vrot.slane %v1942_v19, 1 }
 0x14a   :  { %v1296_v1 = vadd.f32 %v1295_v49, %v6574_v46  ;;  %v1625_v33 = vmax.f32 %v1277_v45, 0.0  ;;  %v4585_v45 = vor.u32 %v5102_v40, %v4584_v38 }
 0x14b   :  { %v1657_v53 = vmax.f32 %v1226_v62, 0.0  ;;  %vm1686_vm11 = vcmp.lt.s32.totalorder %v5840_v7, %v6625_v43  ;;  %vm1697_vm12 = vcmp.lt.s32.totalorder %v5855_v17, %v6625_v43  ;;  %vm1708_vm14 = vcmp.lt.s32.totalorder %v5883_v35, %v6625_v43 }
 0x14c   :  { %1526 = vmatmul.bf16.vlgmr.msrb.gmra.mxu1 %v5472_v29  ;;  %v1861_v36 = vsel %vm1685_vm7, %v1625_v33, 0.0  ;;  %v4856_v33 = vld [vmem:[%s8001_s5 + $0x360] sm:$0xf]  ;;  %vm1719_vm15 = vcmp.lt.s32.totalorder %v5951_v26, %v6625_v43 }
 0x14d   :  { %v1893_v63 = vsel %vm1717_vm6, %v1657_v53, 0.0  ;;  %4386 = vmatmul.msk.bf16.vlgmr.msrb.gmra.mxu3 %vm925_vm0, %v5334_v28  ;;  %v4744_v53 = vld [vmem:[%s8001_s5 + $0x280] sm:$0xf]  ;;  %2827 = vmatpush.bf16.msrb.mxu2 %v4585_v45 }
 0x14e   :  { %v2037_v5 = vmax.f32 %v2036_v34, %v1893_v63 }
 0x14f   :  { %v1278_v6 = vpop.f32.mrf.mxu2 }
 0x150   :  { %v2038_v11 = vrot.slane %v2037_v5, 4  ;;  %v1279_v59 = vadd.f32 %v1278_v6, %v1250_v41  ;;  %v1324_v48 = vpop.f32.mrf.mxu3  ;;  %v1252_v2 = vpop.f32.mrf.mxu0  ;;  %v5170_v6 = vld [vmem:[%s8001_s5 + $0x36c] sm:$0xf0] }
 0x151   :  { %v1325_v20 = vadd.f32 %v1324_v48, %v1296_v1  ;;  %v1297_v22 = vpop.f32.mrf.mxu1  ;;  %v1253_v42 = vadd.f32 %v1252_v2, %v6373_v57  ;;  %v5138_v48 = vld [vmem:[%s8001_s5 + $0x26c] sm:$0xf0]  ;;  %v4840_v2 = vld [vmem:[%s8001_s5 + $0x340] sm:$0xf] }
 0x152   :  { %v2039_v23 = vmax.f32 %v2037_v5, %v2038_v11  ;;  %v1636_v50 = vmax.f32 %v1279_v59, 0.0  ;;  %v1298_v62 = vadd.f32 %v1297_v22, %v6574_v46  ;;  %v4745_v5 = vor.u32 %v5142_v16, %v4744_v53  ;;  %v4728_v59 = vld [vmem:[%s8001_s5 + $0x260] sm:$0xf]  ;;  %v5162_v16 = vld [vmem:[%s8001_s5 + $0x32c] sm:$0xf0] }
 0x153   :  { %1483 = vmatmul.bf16.gmra.mxu0 %v5643_v39  ;;  %v1582_v58 = vmax.f32 %v1325_v20, 0.0  ;;  %v4857_v11 = vor.u32 %v5170_v6, %v4856_v33  ;;  %v5098_v20 = vld [vmem:[%s8001_s5 + $0x12c] sm:$0xf0]  ;;  %v1944_v22 = vmax.f32 %v1942_v19, %v1943_v56  ;;  %v4729_v30 = vor.u32 %v5138_v48, %v4728_v59  ;;  %v5088_v48 = vld [vmem:[%s8001_s5 + $0xe4] sm:$0xf] }
 0x154   :  { %v2040_v44 = vrot.slane %v2039_v23, 2  ;;  %v1872_v34 = vsel %vm1696_vm8, %v1636_v50, 0.0  ;;  %4385 = vmatmul.msk.bf16.gmra.mxu2 %vm925_vm0, %v5576_v10  ;;  %2854 = vmatpush.bf16.msra.mxu1 %v4745_v5  ;;  %v4841_v31 = vor.u32 %v5166_v25, %v4840_v2  ;;  %v5094_v50 = vld [vmem:[%s8001_s5 + $0x10c] sm:$0xf0]  ;;  %v4538_v2 = vld [vmem:[%s8001_s5 + $0xf0] sm:$0xf0] }
 0x155   :  { %v2044_v55 = vmax.f32 %v1861_v36, %v1872_v34  ;;  %2884 = vmatpush.bf16.msra.mxu3 %v4857_v11  ;;  %v4552_v36 = vld [vmem:[%s8001_s5 + $0x100] sm:$0xf]  ;;  %v1818_v37 = vsel %vm1686_vm11, %v1582_v58, 0.0  ;;  %v6699_v58 = vperm.slane %v6571_v4, 7  ;;  %v4541_v25 = vor.u32 %v5088_v48, %v4538_v2 }
 0x156   :  { %v2041_v51 = vmax.f32 %v2039_v23, %v2040_v44  ;;  %v4569_v23 = vor.u32 %v5098_v20, %v4568_v54  ;;  %v4553_v45 = vor.u32 %v5094_v50, %v4552_v36  ;;  %v4696_v4 = vld [vmem:[%s8001_s5 + $0x220] sm:$0xf] }
 0x157   :  { %v1281_v49 = vpop.f32.mrf.mxu2  ;;  %2909 = vmatpush.bf16.msra.mxu0 %v4541_v25 }
 0x158   :  { %v2042_v41 = vrot.slane %v2041_v51, 1  ;;  %v1282_v0 = vadd.f32 %v1281_v49, %v1253_v42  ;;  %v1326_v63 = vpop.f32.mrf.mxu3  ;;  %v1254_v1 = vpop.f32.mrf.mxu0  ;;  %2828 = vmatpush.bf16.msrb.mxu2 %v4569_v23  ;;  %2855 = vmatpush.bf16.msra.mxu1 %v4729_v30  ;;  %v5158_v23 = vld [vmem:[%s8001_s5 + $0x30c] sm:$0xf0] }
 0x159   :  { %v1327_v8 = vadd.f32 %v1326_v63, %v1298_v62  ;;  %v1300_v9 = vpop.f32.mrf.mxu1  ;;  %v1255_v38 = vadd.f32 %v1254_v1, %v6373_v57  ;;  %v4712_v57 = vld [vmem:[%s8001_s5 + $0x240] sm:$0xf]  ;;  %2885 = vmatpush.bf16.msra.mxu3 %v4841_v31  ;;  %v1949_v1 = vmax.f32 %v6564_v52, %v1948_v15  ;;  %v5130_v52 = vld [vmem:[%s8001_s5 + $0x22c] sm:$0xf0] }
 0x15a   :  { %v1647_v12 = vmax.f32 %v1282_v0, 0.0  ;;  %v2043_v40 = vmax.f32 %v2041_v51, %v2042_v41  ;;  %v1301_v42 = vadd.f32 %v1300_v9, %v6574_v46  ;;  %v4824_v51 = vld [vmem:[%s8001_s5 + $0x320] sm:$0xf]  ;;  %v4697_v59 = vor.u32 %v5130_v52, %v4696_v4 }
 0x15b   :  { %v1593_v21 = vmax.f32 %v1327_v8, 0.0  ;;  %v4825_v63 = vor.u32 %v5162_v16, %v4824_v51  ;;  %v1950_v15 = vrot.slane %v1949_v1, 2  ;;  %v4808_v31 = vld [vmem:[%s8001_s5 + $0x300] sm:$0xf]  ;;  %v6747_v16 = vperm.slane %v6418_v27, 7 }
 0x15c   :  { %v1883_v19 = vsel %vm1707_vm9, %v1647_v12, 0.0  ;;  %1531 = vmatmul.bf16.gmra.mxu1 %v5548_v60  ;;  %v6693_v62 = vsel %vm3457_vm13, %v2043_v40, %v1944_v22  ;;  %2829 = vmatpush.bf16.msrb.mxu2 %v4553_v45  ;;  %v5126_v40 = vld [vmem:[%s8001_s5 + $0x20c] sm:$0xf0]  ;;  %v4506_v27 = vld [vmem:[%s8001_s5 + $0xb0] sm:$0xf0] }
 0x15d   :  { %v2045_v44 = vmax.f32 %v2044_v55, %v1883_v19  ;;  %v1829_v34 = vsel %vm1697_vm12, %v1593_v21, 0.0  ;;  %4387 = vmatmul.msk.bf16.gmra.mxu3 %vm925_vm0, %v5442_v13  ;;  %v5134_v55 = vld [vmem:[%s8001_s5 + $0x24c] sm:$0xf0]  ;;  %8009 = vst [vmem:[#allocation7_spill] sm:$0xff] %v6693_v62  ;;  %v4809_v19 = vor.u32 %v5158_v23, %v4808_v31  ;;  %vm1687_vm1 = vcmp.lt.s32.totalorder %v5840_v7, %v6747_v16  ;;  %v4474_v31 = vld [vmem:[%s8001_s5 + $0x70] sm:$0xf0] }
 0x15e   :  { %v1954_v56 = vmax.f32 %v1818_v37, %v1829_v34  ;;  %v4713_v53 = vor.u32 %v5134_v55, %v4712_v57  ;;  %2886 = vmatpush.bf16.msra.mxu3 %v4825_v63  ;;  %v1951_v34 = vmax.f32 %v1949_v1, %v1950_v15  ;;  %v4522_v55 = vld [vmem:[%s8001_s5 + $0xd0] sm:$0xf0]  ;;  %vm1698_vm2 = vcmp.lt.s32.totalorder %v5855_v17, %v6747_v16 }
 0x15f   :  { %v1283_v49 = vpop.f32.mrf.mxu2  ;;  %vm1709_vm3 = vcmp.lt.s32.totalorder %v5883_v35, %v6747_v16 }
 0x160   :  { %v1284_v54 = vadd.f32 %v1283_v49, %v1255_v38  ;;  %v1329_v41 = vpop.f32.mrf.mxu3  ;;  %v1353_v0 = vpop.f32.mrf.mxu0  ;;  %2856 = vmatpush.bf16.msra.mxu1 %v4713_v53  ;;  %v4680_v38 = vld [vmem:[%s8001_s5 + $0x200] sm:$0xf] }
 0x161   :  { %v1330_v5 = vadd.f32 %v1329_v41, %v1301_v42  ;;  %v1302_v33 = vpop.f32.mrf.mxu1  ;;  %v1354_v11 = vadd.f32 %v1353_v0, %v6699_v58  ;;  %v4681_v57 = vor.u32 %v5126_v40, %v4680_v38  ;;  %v5080_v41 = vld [vmem:[%s8001_s5 + $0xa4] sm:$0xf]  ;;  %v1952_v0 = vrot.slane %v1951_v34, 1 }
 0x162   :  { %v1658_v6 = vmax.f32 %v1284_v54, 0.0  ;;  %v1303_v21 = vadd.f32 %v1302_v33, %v6574_v46  ;;  %2887 = vmatpush.bf16.msra.mxu3 %v4809_v19 }
 0x163   :  { %v1604_v8 = vmax.f32 %v1330_v5, 0.0  ;;  %2801 = vmatmul.bf16.vlgmr.msrb.gmra.mxu0 %v5472_v29  ;;  %v1953_v25 = vmax.f32 %v1951_v34, %v1952_v0  ;;  %v4458_v34 = vld [vmem:[%s8001_s5 + $0x50] sm:$0xf0] }
 0x164   :  { %v1894_v9 = vsel %vm1718_vm10, %v1658_v6, 0.0  ;;  %2830 = vmatmul.bf16.vlgmr.msrb.gmra.mxu2 %v5334_v28  ;;  %2857 = vmatpush.bf16.msra.mxu1 %v4697_v59  ;;  %v4922_v0 = vld [vmem:[%s8001_s5 + $0x3f0] sm:$0xf0] }
 0x165   :  { %v2046_v12 = vmax.f32 %v2045_v44, %v1894_v9  ;;  %v1840_v14 = vsel %vm1708_vm14, %v1604_v8, 0.0  ;;  %v5084_v44 = vld [vmem:[%s8001_s5 + $0xc4] sm:$0xf]  ;;  %v4509_v8 = vor.u32 %v5080_v41, %v4506_v27 }
 0x166   :  { %v1955_v20 = vmax.f32 %v1954_v56, %v1840_v14  ;;  %v4525_v51 = vor.u32 %v5084_v44, %v4522_v55  ;;  %v5076_v9 = vld [vmem:[%s8001_s5 + $0x84] sm:$0xf] }
 0x167   :  { %v2047_v22 = vrot.slane %v2046_v12, 4  ;;  %v1382_v30 = vpop.f32.mrf.mxu2  ;;  %v5068_v44 = vld [vmem:[%s8001_s5 + $0x44] sm:$0xf] }
 0x168   :  { %v1331_v36 = vpop.f32.mrf.mxu3  ;;  %v1383_v50 = vadd.f32 %v1382_v30, %v1354_v11  ;;  %v1355_v37 = vpop.f32.mrf.mxu0  ;;  %2858 = vmatpush.bf16.msra.mxu1 %v4681_v57  ;;  %2910 = vmatpush.bf16.msra.mxu0 %v4525_v51  ;;  %v4490_v11 = vld [vmem:[%s8001_s5 + $0x90] sm:$0xf0]  ;;  %v5072_v30 = vld [vmem:[%s8001_s5 + $0x64] sm:$0xf] }
 0x169   :  { %v2048_v42 = vmax.f32 %v2046_v12, %v2047_v22  ;;  %v1332_v45 = vadd.f32 %v1331_v36, %v1303_v21  ;;  %v1305_v56 = vpop.f32.mrf.mxu1  ;;  %v1356_v54 = vadd.f32 %v1355_v37, %v6699_v58  ;;  %v4493_v15 = vor.u32 %v5076_v9, %v4490_v11  ;;  %v5120_v55 = vld [vmem:[%s8001_s5 + $0x1e4] sm:$0xf]  ;;  %v4666_v51 = vld [vmem:[%s8001_s5 + $0x1f0] sm:$0xf0] }
 0x16a   :  { %v1306_v5 = vadd.f32 %v1305_v56, %v6574_v46  ;;  %v1583_v6 = vmax.f32 %v1383_v50, 0.0  ;;  %v4477_v37 = vor.u32 %v5072_v30, %v4474_v31  ;;  %v5184_v41 = vld [vmem:[%s8001_s5 + $0x3e4] sm:$0xf]  ;;  %v4794_v9 = vld [vmem:[%s8001_s5 + $0x2f0] sm:$0xf0] }
 0x16b   :  { %v2049_v49 = vrot.slane %v2048_v42, 2  ;;  %v1615_v53 = vmax.f32 %v1332_v45, 0.0  ;;  %v4925_v27 = vor.u32 %v5184_v41, %v4922_v0  ;;  %v5180_v11 = vld [vmem:[%s8001_s5 + $0x3c4] sm:$0xf]  ;;  %v4634_v31 = vld [vmem:[%s8001_s5 + $0x1b0] sm:$0xf0] }
 0x16c   :  { %1536 = vmatmul.bf16.gmra.mxu1 %v5612_v24  ;;  %2911 = vmatpush.bf16.msra.mxu0 %v4509_v8  ;;  %v1819_v22 = vsel %vm1687_vm1, %v1583_v6, 0.0  ;;  %v4650_v6 = vld [vmem:[%s8001_s5 + $0x1d0] sm:$0xf0]  ;;  %v5152_v8 = vld [vmem:[%s8001_s5 + $0x2e4] sm:$0xf] }
 0x16d   :  { %v2050_v63 = vmax.f32 %v2048_v42, %v2049_v49  ;;  %v1851_v1 = vsel %vm1719_vm15, %v1615_v53, 0.0  ;;  %4388 = vmatmul.msk.bf16.gmra.mxu3 %vm925_vm0, %v5512_v47  ;;  %v5112_v30 = vld [vmem:[%s8001_s5 + $0x1a4] sm:$0xf]  ;;  %v4426_v41 = vld [vmem:[%s8001_s5 + $0x10] sm:$0xf0] }
 0x16e   :  { %v6763_v33 = vmax.f32 %v1955_v20, %v1851_v1  ;;  %v4461_v1 = vor.u32 %v5068_v44, %v4458_v34  ;;  %2996 = vmatpush.bf16.msrb.mxu3 %v4925_v27 }
 0x16f   :  { %v2051_v4 = vrot.slane %v2050_v63, 1  ;;  %v1384_v52 = vpop.f32.mrf.mxu2 }
 0x170   :  { %v1334_v59 = vpop.f32.mrf.mxu3  ;;  %v1385_v48 = vadd.f32 %v1384_v52, %v1356_v54  ;;  %v1358_v2 = vpop.f32.mrf.mxu0  ;;  %2912 = vmatpush.bf16.msra.mxu0 %v4493_v15  ;;  %v4669_v54 = vor.u32 %v5120_v55, %v4666_v51  ;;  %v4797_v15 = vor.u32 %v5152_v8, %v4794_v9  ;;  %v1957_v8 = vrot.slane %v6763_v33, 4  ;;  %v4392_v9 = vld [vmem:[%s7996_s0 + $0x8] sm:$0xf] }
 0x171   :  { %v1335_v12 = vadd.f32 %v1334_v59, %v1306_v5  ;;  %v1307_v14 = vpop.f32.mrf.mxu1  ;;  %v2052_v20 = vmax.f32 %v2050_v63, %v2051_v4  ;;  %v1359_v50 = vadd.f32 %v1358_v2, %v6699_v58  ;;  %v5116_v63 = vld [vmem:[%s8001_s5 + $0x1c4] sm:$0xf] }
 0x172   :  { %v1594_v21 = vmax.f32 %v1385_v48, 0.0  ;;  %v1308_v38 = vadd.f32 %v1307_v14, %v6574_v46  ;;  %2938 = vmatpush.bf16.msra.mxu2 %v4669_v54  ;;  %v4653_v52 = vor.u32 %v5116_v63, %v4650_v6  ;;  %2967 = vmatpush.bf16.msrb.mxu1 %v4797_v15  ;;  %v5060_v54 = vld [vmem:[%s8001_s5 + $0x4] sm:$0xf]  ;;  %v4394_v15 = vld [vmem:[%s7996_s0 + $0x18] sm:$0xf0] }
 0x173   :  { %2806 = vmatmul.bf16.gmra.mxu0 %v5548_v60  ;;  %v6786_v23 = vsel %vm3457_vm13, %v2052_v20, %v1953_v25  ;;  %v1626_v42 = vmax.f32 %v1335_v12, 0.0  ;;  %v4906_v12 = vld [vmem:[%s8001_s5 + $0x3d0] sm:$0xf0]  ;;  %v4429_v6 = vor.u32 %v5060_v54, %v4426_v41 }
 0x174   :  { %8010 = vst [vmem:[#allocation8_spill] sm:$0xff] %v6786_v23  ;;  %v1830_v36 = vsel %vm1698_vm2, %v1594_v21, 0.0  ;;  %2835 = vmatmul.bf16.gmra.mxu2 %v5442_v13  ;;  %2913 = vmatpush.bf16.msra.mxu0 %v4477_v37  ;;  %v4637_v37 = vor.u32 %v5112_v30, %v4634_v31 }
 0x175   :  { %v1963_v19 = vmax.f32 %v1819_v22, %v1830_v36  ;;  %v1862_v59 = vsel %vm1686_vm11, %v1626_v42, 0.0  ;;  %v4909_v22 = vor.u32 %v5180_v11, %v4906_v12  ;;  %v5148_v36 = vld [vmem:[%s8001_s5 + $0x2c4] sm:$0xf]  ;;  %v4937_v11 = vld [vmem:[%s7996_s0 + $0x14] sm:$0xf0] }
 0x176   :  { %2939 = vmatpush.bf16.msra.mxu2 %v4653_v52  ;;  %v6911_v30 = vor.u32 %v4937_v11, %v4392_v9  ;;  %v5104_v11 = vld [vmem:[%s8001_s5 + $0x164] sm:$0xf] }
 0x177   :  { %v1387_v40 = vpop.f32.mrf.mxu2  ;;  %2997 = vmatpush.bf16.msrb.mxu3 %v4909_v22 }
 0x178   :  { %v1336_v45 = vpop.f32.mrf.mxu3  ;;  %v1388_v56 = vadd.f32 %v1387_v40, %v1359_v50  ;;  %v1360_v57 = vpop.f32.mrf.mxu0  ;;  %2914 = vmatpush.bf16.msra.mxu0 %v4461_v1  ;;  %v6882_v1 = vld [vmem:[%s7998_s2 + $0x8] sm:$0x7] }
 0x179   :  { %v1337_v49 = vadd.f32 %v1336_v45, %v1308_v38  ;;  %v1310_v53 = vpop.f32.mrf.mxu1  ;;  %v1361_v2 = vadd.f32 %v1360_v57, %v6699_v58  ;;  %v5176_v38 = vld [vmem:[%s8001_s5 + $0x3a4] sm:$0xf]  ;;  %v4890_v45 = vld [vmem:[%s8001_s5 + $0x3b0] sm:$0xf0] }
 0x17a   :  { %v1605_v5 = vmax.f32 %v1388_v56, 0.0  ;;  %v1311_v20 = vadd.f32 %v1310_v53, %v6574_v46  ;;  %v5064_v56 = vld [vmem:[%s8001_s5 + $0x24] sm:$0xf]  ;;  %v4442_v57 = vld [vmem:[%s8001_s5 + $0x30] sm:$0xf0]  ;;  %2940 = vmatpush.bf16.msra.mxu2 %v4637_v37 }
 0x17b   :  { %v1637_v4 = vmax.f32 %v1337_v49, 0.0  ;;  %v4893_v49 = vor.u32 %v5176_v38, %v4890_v45  ;;  %v4445_v53 = vor.u32 %v5064_v56, %v4442_v57  ;;  %v6919_v37 = vld [vmem:[%s7999_s3 + $0x8] sm:$0x7]  ;;  %v5108_v38 = vld [vmem:[%s8001_s5 + $0x184] sm:$0xf] }
 0x17c   :  { %v1841_v48 = vsel %vm1709_vm3, %v1605_v5, 0.0  ;;  %1541 = vmatmul.bf16.gmra.mxu1 %v5643_v39 }
 0x17d   :  { %v1873_v14 = vsel %vm1697_vm12, %v1637_v4, 0.0  ;;  %v1964_v25 = vmax.f32 %v1963_v19, %v1841_v48  ;;  %4389 = vmatmul.msk.bf16.gmra.mxu3 %vm925_vm0, %v5576_v10  ;;  %v4778_v19 = vld [vmem:[%s8001_s5 + $0x2d0] sm:$0xf0]  ;;  %vm1720_vm0 = vcmp.lt.s32.totalorder %v5951_v26, %v6747_v16  ;;  %2915 = vmatpush.bf16.msra.mxu0 %v4445_v53  ;;  %v6902_v48 = vperm.slane %v6882_v1, 0  ;;  %v4408_v16 = vld [vmem:[%s7996_s0 + $0x48] sm:$0xf] }
 0x17e   :  { %v2053_v21 = vmax.f32 %v1862_v59, %v1873_v14  ;;  %v4781_v42 = vor.u32 %v5148_v36, %v4778_v19  ;;  %2998 = vmatpush.bf16.msrb.mxu3 %v4893_v49  ;;  %v4762_v49 = vld [vmem:[%s8001_s5 + $0x2b0] sm:$0xf0] }
 0x17f   :  { %v1389_v50 = vpop.f32.mrf.mxu2 }
 0x180   :  { %v1339_v40 = vpop.f32.mrf.mxu3  ;;  %v1390_v44 = vadd.f32 %v1389_v50, %v1361_v2  ;;  %v1363_v34 = vpop.f32.mrf.mxu0  ;;  %2968 = vmatpush.bf16.msrb.mxu1 %v4781_v42  ;;  %v4935_v2 = vld [vmem:[%s7996_s0 + $0xc] sm:$0xf] }
 0x181   :  { %v1340_v55 = vadd.f32 %v1339_v40, %v1311_v20  ;;  %v1312_v51 = vpop.f32.mrf.mxu1  ;;  %v1364_v27 = vadd.f32 %v1363_v34, %v6699_v58  ;;  %2916 = vmatpush.bf16.msra.mxu0 %v4429_v6  ;;  %v6914_v50 = vor.u32 %v4935_v2, %v4394_v15 }
 0x182   :  { %v1616_v0 = vmax.f32 %v1390_v44, 0.0  ;;  %v1313_v12 = vadd.f32 %v1312_v51, %v6574_v46  ;;  %v6931_v44 = vperm.slane %v6919_v37, 0  ;;  %v5144_v51 = vld [vmem:[%s8001_s5 + $0x2a4] sm:$0xf] }
 0x183   :  { %v1648_v63 = vmax.f32 %v1340_v55, 0.0  ;;  %2811 = vmatmul.bf16.gmra.mxu0 %v5612_v24 }
 0x184   :  { %v1852_v5 = vsel %vm1720_vm0, %v1616_v0, 0.0  ;;  %2840 = vmatmul.bf16.gmra.mxu2 %v5512_v47  ;;  %vm1688_vm4 = vcmp.lt.s32.totalorder %v5840_v7, %v6931_v44  ;;  %v4765_v0 = vor.u32 %v5144_v51, %v4762_v49  ;;  %v4746_v51 = vld [vmem:[%s8001_s5 + $0x290] sm:$0xf0]  ;;  %v5096_v49 = vld [vmem:[%s8001_s5 + $0x124] sm:$0xf]  ;;  %vm1699_vm5 = vcmp.lt.s32.totalorder %v5855_v17, %v6931_v44 }
 0x185   :  { %v1884_v4 = vsel %vm1708_vm14, %v1648_v63, 0.0  ;;  %v6892_v52 = vmax.f32 %v1964_v25, %v1852_v5  ;;  %v5172_v63 = vld [vmem:[%s8001_s5 + $0x384] sm:$0xf]  ;;  %v4874_v5 = vld [vmem:[%s8001_s5 + $0x390] sm:$0xf0]  ;;  %vm1710_vm6 = vcmp.lt.s32.totalorder %v5883_v35, %v6931_v44  ;;  %vm1721_vm7 = vcmp.lt.s32.totalorder %v5951_v26, %v6931_v44 }
 0x186   :  { %v2054_v59 = vmax.f32 %v2053_v21, %v1884_v4  ;;  %v1958_v21 = vmax.f32 %v6763_v33, %v1957_v8  ;;  %v4618_v33 = vld [vmem:[%s8001_s5 + $0x190] sm:$0xf0]  ;;  %v4877_v9 = vor.u32 %v5172_v63, %v4874_v5  ;;  %2969 = vmatpush.bf16.msrb.mxu1 %v4765_v0  ;;  %v5168_v5 = vld [vmem:[%s8001_s5 + $0x364] sm:$0xf] }
 0x187   :  { %v1392_v14 = vpop.f32.mrf.mxu2  ;;  %v4621_v34 = vor.u32 %v5108_v38, %v4618_v33  ;;  %v4400_v33 = vld [vmem:[%s7996_s0 + $0x28] sm:$0xf] }
 0x188   :  { %v1341_v25 = vpop.f32.mrf.mxu3  ;;  %v1393_v20 = vadd.f32 %v1392_v14, %v1364_v27  ;;  %v1365_v22 = vpop.f32.mrf.mxu0  ;;  %v1959_v42 = vrot.slane %v1958_v21, 2  ;;  %2999 = vmatpush.bf16.msrb.mxu3 %v4877_v9 }
 0x189   :  { %v1342_v31 = vadd.f32 %v1341_v25, %v1313_v12  ;;  %v1411_v36 = vpop.f32.mrf.mxu1  ;;  %v1366_v40 = vadd.f32 %v1365_v22, %v6699_v58  ;;  %2941 = vmatpush.bf16.msra.mxu2 %v4621_v34  ;;  %v4586_v22 = vld [vmem:[%s8001_s5 + $0x150] sm:$0xf0] }
 0x18a   :  { %v1412_v46 = vadd.f32 %v1411_v36, %v6902_v48  ;;  %v1627_v56 = vmax.f32 %v1393_v20, 0.0  ;;  %v1960_v27 = vmax.f32 %v1958_v21, %v1959_v42  ;;  %v5100_v20 = vld [vmem:[%s8001_s5 + $0x144] sm:$0xf] }
 0x18b   :  { %v1659_v19 = vmax.f32 %v1342_v31, 0.0 }
 0x18c   :  { %2859 = vmatmul.bf16.vlgmr.msra.gmra.mxu1 %v6911_v30  ;;  %v6954_v6 = vsel %vm1687_vm1, %v1627_v56, 0.0  ;;  %v1961_v34 = vrot.slane %v1960_v27, 1  ;;  %v4402_v56 = vld [vmem:[%s7996_s0 + $0x38] sm:$0xf0] }
 0x18d   :  { %v1895_v45 = vsel %vm1719_vm15, %v1659_v19, 0.0  ;;  %2888 = vmatmul.bf16.vlgmr.msra.gmra.mxu3 %v6914_v50 }
 0x18e   :  { %v2055_v57 = vmax.f32 %v2054_v59, %v1895_v45  ;;  %v4602_v59 = vld [vmem:[%s8001_s5 + $0x170] sm:$0xf0]  ;;  %v4939_v45 = vld [vmem:[%s7996_s0 + $0x2c] sm:$0xf] }
 0x18f   :  { %v1394_v55 = vpop.f32.mrf.mxu2  ;;  %v4605_v14 = vor.u32 %v5104_v11, %v4602_v59  ;;  %v7010_v9 = vor.u32 %v4939_v45, %v4402_v56  ;;  %v5136_v59 = vld [vmem:[%s8001_s5 + $0x264] sm:$0xf] }
 0x190   :  { %v2056_v53 = vrot.slane %v2055_v57, 4  ;;  %v1395_v54 = vadd.f32 %v1394_v55, %v1366_v40  ;;  %v1440_v41 = vpop.f32.mrf.mxu3  ;;  %v1368_v43 = vpop.f32.mrf.mxu0  ;;  %v4941_v40 = vld [vmem:[%s7996_s0 + $0x34] sm:$0xf0]  ;;  %v5140_v55 = vld [vmem:[%s8001_s5 + $0x284] sm:$0xf] }
 0x191   :  { %v1441_v8 = vadd.f32 %v1440_v41, %v1412_v46  ;;  %v1413_v4 = vpop.f32.mrf.mxu1  ;;  %v1369_v36 = vadd.f32 %v1368_v43, %v6699_v58  ;;  %2942 = vmatpush.bf16.msra.mxu2 %v4605_v14  ;;  %v4589_v46 = vor.u32 %v5100_v20, %v4586_v22  ;;  %v7002_v0 = vor.u32 %v4941_v40, %v4400_v33  ;;  %v4570_v20 = vld [vmem:[%s8001_s5 + $0x130] sm:$0xf0] }
 0x192   :  { %v2057_v2 = vmax.f32 %v2055_v57, %v2056_v53  ;;  %v1638_v15 = vmax.f32 %v1395_v54, 0.0  ;;  %v1414_v12 = vadd.f32 %v1413_v4, %v6902_v48  ;;  %v4749_v63 = vor.u32 %v5140_v55, %v4746_v51  ;;  %v4554_v55 = vld [vmem:[%s8001_s5 + $0x110] sm:$0xf0]  ;;  %v5160_v51 = vld [vmem:[%s8001_s5 + $0x324] sm:$0xf] }
 0x193   :  { %v1584_v25 = vmax.f32 %v1441_v8, 0.0  ;;  %2816 = vmatmul.bf16.gmra.mxu0 %v5643_v39  ;;  %v1962_v22 = vmax.f32 %v1960_v27, %v1961_v34  ;;  %v1966_v33 = vrot.slane %v6892_v52, 4  ;;  %v5092_v34 = vld [vmem:[%s8001_s5 + $0x104] sm:$0xf] }
 0x194   :  { %v2058_v21 = vrot.slane %v2057_v2, 2  ;;  %v1874_v31 = vsel %vm1698_vm2, %v1638_v15, 0.0  ;;  %2845 = vmatmul.bf16.gmra.mxu2 %v5576_v10  ;;  %v5164_v15 = vld [vmem:[%s8001_s5 + $0x344] sm:$0xf]  ;;  %2970 = vmatpush.bf16.msrb.mxu1 %v4749_v63 }
 0x195   :  { %v2062_v19 = vmax.f32 %v6954_v6, %v1874_v31  ;;  %v6978_v38 = vsel %vm1688_vm4, %v1584_v25, 0.0  ;;  %v4858_v6 = vld [vmem:[%s8001_s5 + $0x370] sm:$0xf0]  ;;  %2943 = vmatpush.bf16.msra.mxu2 %v4589_v46  ;;  %v4573_v46 = vor.u32 %v5096_v49, %v4570_v20  ;;  %v4557_v49 = vor.u32 %v5092_v34, %v4554_v55 }
 0x196   :  { %v2059_v42 = vmax.f32 %v2057_v2, %v2058_v21  ;;  %v4861_v11 = vor.u32 %v5168_v5, %v4858_v6  ;;  %v4730_v2 = vld [vmem:[%s8001_s5 + $0x270] sm:$0xf0]  ;;  %v7064_v6 = vperm.slane %v6882_v1, 1 }
 0x197   :  { %v1397_v57 = vpop.f32.mrf.mxu2  ;;  %v4842_v25 = vld [vmem:[%s8001_s5 + $0x350] sm:$0xf0]  ;;  %v4733_v31 = vor.u32 %v5136_v59, %v4730_v2 }
 0x198   :  { %v2060_v53 = vrot.slane %v2059_v42, 1  ;;  %v1398_v54 = vadd.f32 %v1397_v57, %v1369_v36  ;;  %v1442_v41 = vpop.f32.mrf.mxu3  ;;  %v1370_v43 = vpop.f32.mrf.mxu0  ;;  %3000 = vmatpush.bf16.msrb.mxu3 %v4861_v11  ;;  %v4845_v36 = vor.u32 %v5164_v15, %v4842_v25 }
 0x199   :  { %v1443_v8 = vadd.f32 %v1442_v41, %v1414_v12  ;;  %v1416_v4 = vpop.f32.mrf.mxu1  ;;  %v1371_v45 = vadd.f32 %v1370_v43, %v6699_v58  ;;  %2944 = vmatpush.bf16.msra.mxu2 %v4573_v46  ;;  %2971 = vmatpush.bf16.msrb.mxu1 %v4733_v31  ;;  %v4826_v41 = vld [vmem:[%s8001_s5 + $0x330] sm:$0xf0]  ;;  %v1967_v43 = vmax.f32 %v6892_v52, %v1966_v33  ;;  %v5128_v52 = vld [vmem:[%s8001_s5 + $0x224] sm:$0xf]  ;;  %v4544_v31 = vld [vmem:[%s8001_s5 + $0xe8] sm:$0xf] }
 0x19a   :  { %v1649_v14 = vmax.f32 %v1398_v54, 0.0  ;;  %v1417_v12 = vadd.f32 %v1416_v4, %v6902_v48  ;;  %v2061_v56 = vmax.f32 %v2059_v42, %v2060_v53  ;;  %v4714_v42 = vld [vmem:[%s8001_s5 + $0x250] sm:$0xf0]  ;;  %v4829_v4 = vor.u32 %v5160_v51, %v4826_v41 }
 0x19b   :  { %v1595_v21 = vmax.f32 %v1443_v8, 0.0  ;;  %v1968_v25 = vrot.slane %v1967_v43, 2 }
 0x19c   :  { %v1885_v40 = vsel %vm1709_vm3, %v1649_v14, 0.0  ;;  %2864 = vmatmul.bf16.gmra.mxu1 %v7002_v0  ;;  %v7057_v53 = vsel %vm3457_vm13, %v2061_v56, %v1962_v22  ;;  %3001 = vmatpush.bf16.msrb.mxu3 %v4845_v36  ;;  %v5091_v36 = vld [vmem:[%s8001_s5 + $0xf4] sm:$0xf0] }
 0x19d   :  { %v2063_v57 = vmax.f32 %v2062_v19, %v1885_v40  ;;  %v1831_v27 = vsel %vm1699_vm5, %v1595_v21, 0.0  ;;  %2893 = vmatmul.bf16.gmra.mxu3 %v7010_v9  ;;  %v5132_v19 = vld [vmem:[%s8001_s5 + $0x244] sm:$0xf]  ;;  %8011 = vst [vmem:[#allocation9_spill] sm:$0xff] %v7057_v53  ;;  %2945 = vmatpush.bf16.msra.mxu2 %v4557_v49  ;;  %v4945_v40 = vld [vmem:[%s7996_s0 + $0x54] sm:$0xf0] }
 0x19e   :  { %v1972_v58 = vmax.f32 %v6978_v38, %v1831_v27  ;;  %v4717_v38 = vor.u32 %v5132_v19, %v4714_v42  ;;  %v4410_v27 = vld [vmem:[%s7996_s0 + $0x58] sm:$0xf0]  ;;  %v5156_v19 = vld [vmem:[%s8001_s5 + $0x304] sm:$0xf]  ;;  %v4810_v42 = vld [vmem:[%s8001_s5 + $0x310] sm:$0xf0] }
 0x19f   :  { %v1399_v54 = vpop.f32.mrf.mxu2  ;;  %v4813_v41 = vor.u32 %v5156_v19, %v4810_v42 }
 0x1a0   :  { %v1400_v63 = vadd.f32 %v1399_v54, %v1371_v45  ;;  %v1445_v5 = vpop.f32.mrf.mxu3  ;;  %v1469_v8 = vpop.f32.mrf.mxu0  ;;  %2972 = vmatpush.bf16.msrb.mxu1 %v4717_v38  ;;  %3002 = vmatpush.bf16.msrb.mxu3 %v4829_v4  ;;  %v4545_v45 = vor.u32 %v5091_v36, %v4544_v31  ;;  %v7108_v38 = vor.u32 %v4945_v40, %v4408_v16 }
 0x1a1   :  { %v1446_v11 = vadd.f32 %v1445_v5, %v1417_v12  ;;  %v1418_v59 = vpop.f32.mrf.mxu1  ;;  %v4698_v12 = vld [vmem:[%s8001_s5 + $0x230] sm:$0xf0]  ;;  %v1470_v22 = vadd.f32 %v1469_v8, %v7064_v6  ;;  %v4528_v8 = vld [vmem:[%s8001_s5 + $0xc8] sm:$0xf] }
 0x1a2   :  { %v1660_v2 = vmax.f32 %v1400_v63, 0.0  ;;  %v1419_v15 = vadd.f32 %v1418_v59, %v6902_v48  ;;  %v4701_v21 = vor.u32 %v5128_v52, %v4698_v12  ;;  %3025 = vmatpush.bf16.msrb.mxu0 %v4545_v45  ;;  %v5124_v63 = vld [vmem:[%s8001_s5 + $0x204] sm:$0xf]  ;;  %v4682_v5 = vld [vmem:[%s8001_s5 + $0x210] sm:$0xf0]  ;;  %v7127_v52 = vperm.slane %v6919_v37, 1 }
 0x1a3   :  { %v1606_v14 = vmax.f32 %v1446_v11, 0.0  ;;  %2917 = vmatmul.bf16.vlgmr.msra.gmra.mxu0 %v5472_v29 }
 0x1a4   :  { %v1896_v20 = vsel %vm1720_vm0, %v1660_v2, 0.0  ;;  %2946 = vmatmul.bf16.vlgmr.msra.gmra.mxu2 %v5334_v28  ;;  %2973 = vmatpush.bf16.msrb.mxu1 %v4701_v21  ;;  %v4685_v2 = vor.u32 %v5124_v63, %v4682_v5  ;;  %v5083_v21 = vld [vmem:[%s8001_s5 + $0xb4] sm:$0xf0]  ;;  %vm1689_vm8 = vcmp.lt.s32.totalorder %v5840_v7, %v7127_v52  ;;  %vm1700_vm9 = vcmp.lt.s32.totalorder %v5855_v17, %v7127_v52 }
 0x1a5   :  { %v2064_v46 = vmax.f32 %v2063_v57, %v1896_v20  ;;  %v1842_v33 = vsel %vm1710_vm6, %v1606_v14, 0.0  ;;  %v4943_v57 = vld [vmem:[%s7996_s0 + $0x4c] sm:$0xf]  ;;  %v5087_v14 = vld [vmem:[%s8001_s5 + $0xd4] sm:$0xf0]  ;;  %3003 = vmatpush.bf16.msrb.mxu3 %v4813_v41  ;;  %vm1711_vm10 = vcmp.lt.s32.totalorder %v5883_v35, %v7127_v52  ;;  %vm1722_vm11 = vcmp.lt.s32.totalorder %v5951_v26, %v7127_v52 }
 0x1a6   :  { %v1973_v56 = vmax.f32 %v1972_v58, %v1842_v33  ;;  %v1969_v58 = vmax.f32 %v1967_v43, %v1968_v25  ;;  %v7119_v59 = vor.u32 %v4943_v57, %v4410_v27  ;;  %v4529_v25 = vor.u32 %v5087_v14, %v4528_v8  ;;  %v4816_v52 = vld [vmem:[%s8001_s5 + $0x308] sm:$0xf] }
 0x1a7   :  { %v2065_v34 = vrot.slane %v2064_v46, 4  ;;  %v1498_v55 = vpop.f32.mrf.mxu2 }
 0x1a8   :  { %v1447_v51 = vpop.f32.mrf.mxu3  ;;  %v1499_v49 = vadd.f32 %v1498_v55, %v1470_v22  ;;  %v1471_v54 = vpop.f32.mrf.mxu0  ;;  %2974 = vmatpush.bf16.msrb.mxu1 %v4685_v2  ;;  %v4512_v22 = vld [vmem:[%s8001_s5 + $0xa8] sm:$0xf]  ;;  %3026 = vmatpush.bf16.msrb.mxu0 %v4529_v25  ;;  %v5079_v55 = vld [vmem:[%s8001_s5 + $0x94] sm:$0xf0] }
 0x1a9   :  { %v2066_v4 = vmax.f32 %v2064_v46, %v2065_v34  ;;  %v1448_v43 = vadd.f32 %v1447_v51, %v1419_v15  ;;  %v1421_v11 = vpop.f32.mrf.mxu1  ;;  %v1472_v31 = vadd.f32 %v1471_v54, %v7064_v6  ;;  %v4513_v36 = vor.u32 %v5083_v21, %v4512_v22  ;;  %v4496_v34 = vld [vmem:[%s8001_s5 + $0x88] sm:$0xf]  ;;  %v5075_v2 = vld [vmem:[%s8001_s5 + $0x74] sm:$0xf0] }
 0x1aa   :  { %v1422_v12 = vadd.f32 %v1421_v11, %v6902_v48  ;;  %v1970_v46 = vrot.slane %v1969_v58, 1  ;;  %v1585_v45 = vmax.f32 %v1499_v49, 0.0  ;;  %v4480_v11 = vld [vmem:[%s8001_s5 + $0x68] sm:$0xf] }
 0x1ab   :  { %v2067_v20 = vrot.slane %v2066_v4, 2  ;;  %v1617_v15 = vmax.f32 %v1448_v43, 0.0  ;;  %v4416_v25 = vld [vmem:[%s7996_s0 + $0x68] sm:$0xf] }
 0x1ac   :  { %2869 = vmatmul.bf16.gmra.mxu1 %v7108_v38  ;;  %3027 = vmatpush.bf16.msrb.mxu0 %v4513_v36  ;;  %v1971_v41 = vmax.f32 %v1969_v58, %v1970_v46  ;;  %v1821_v5 = vsel %vm1689_vm8, %v1585_v45, 0.0  ;;  %v4418_v36 = vld [vmem:[%s7996_s0 + $0x78] sm:$0xf0] }
 0x1ad   :  { %v2068_v33 = vmax.f32 %v2066_v4, %v2067_v20  ;;  %v1853_v16 = vsel %vm1721_vm7, %v1617_v15, 0.0  ;;  %2898 = vmatmul.bf16.gmra.mxu3 %v7119_v59  ;;  %v4949_v20 = vld [vmem:[%s7996_s0 + $0x74] sm:$0xf0]  ;;  %v4481_v15 = vor.u32 %v5075_v2, %v4480_v11  ;;  %v4800_v2 = vld [vmem:[%s8001_s5 + $0x2e8] sm:$0xf] }
 0x1ae   :  { %v7142_v40 = vmax.f32 %v1973_v56, %v1853_v16  ;;  %v4497_v56 = vor.u32 %v5079_v55, %v4496_v34  ;;  %v5071_v16 = vld [vmem:[%s8001_s5 + $0x54] sm:$0xf0]  ;;  %v7196_v34 = vor.u32 %v4949_v20, %v4416_v25  ;;  %v4912_v20 = vld [vmem:[%s8001_s5 + $0x3c8] sm:$0xf] }
 0x1af   :  { %v2069_v57 = vrot.slane %v2068_v33, 1  ;;  %v1500_v27 = vpop.f32.mrf.mxu2  ;;  %v5119_v11 = vld [vmem:[%s8001_s5 + $0x1d4] sm:$0xf0] }
 0x1b0   :  { %v1450_v19 = vpop.f32.mrf.mxu3  ;;  %v1501_v42 = vadd.f32 %v1500_v27, %v1472_v31  ;;  %v1474_v51 = vpop.f32.mrf.mxu0  ;;  %3028 = vmatpush.bf16.msrb.mxu0 %v4497_v56  ;;  %v4947_v31 = vld [vmem:[%s7996_s0 + $0x6c] sm:$0xf]  ;;  %v5155_v25 = vld [vmem:[%s8001_s5 + $0x2f4] sm:$0xf0] }
 0x1b1   :  { %v1451_v54 = vadd.f32 %v1450_v19, %v1422_v12  ;;  %v1423_v49 = vpop.f32.mrf.mxu1  ;;  %v2070_v63 = vmax.f32 %v2068_v33, %v2069_v57  ;;  %v1475_v12 = vadd.f32 %v1474_v51, %v7064_v6  ;;  %v4464_v33 = vld [vmem:[%s8001_s5 + $0x48] sm:$0xf]  ;;  %v7198_v55 = vor.u32 %v4947_v31, %v4418_v36 }
 0x1b2   :  { %v1596_v8 = vmax.f32 %v1501_v42, 0.0  ;;  %v1424_v4 = vadd.f32 %v1423_v49, %v6902_v48  ;;  %v4672_v19 = vld [vmem:[%s8001_s5 + $0x1e8] sm:$0xf]  ;;  %v5123_v42 = vld [vmem:[%s8001_s5 + $0x1f4] sm:$0xf0]  ;;  %v4801_v36 = vor.u32 %v5155_v25, %v4800_v2 }
 0x1b3   :  { %v1628_v43 = vmax.f32 %v1451_v54, 0.0  ;;  %2922 = vmatmul.bf16.gmra.mxu0 %v5548_v60  ;;  %v7166_v58 = vsel %vm3457_vm13, %v2070_v63, %v1971_v41  ;;  %v4673_v54 = vor.u32 %v5123_v42, %v4672_v19  ;;  %v4928_v49 = vld [vmem:[%s8001_s5 + $0x3e8] sm:$0xf]  ;;  %v5187_v41 = vld [vmem:[%s8001_s5 + $0x3f4] sm:$0xf0] }
 0x1b4   :  { %v1832_v14 = vsel %vm1700_vm9, %v1596_v8, 0.0  ;;  %2951 = vmatmul.bf16.gmra.mxu2 %v5442_v13  ;;  %3029 = vmatpush.bf16.msrb.mxu0 %v4481_v15  ;;  %v4656_v63 = vld [vmem:[%s8001_s5 + $0x1c8] sm:$0xf] }
 0x1b5   :  { %v7181_v22 = vsel %vm1688_vm4, %v1628_v43, 0.0  ;;  %v1981_v21 = vmax.f32 %v1821_v5, %v1832_v14  ;;  %v4465_v5 = vor.u32 %v5071_v16, %v4464_v33  ;;  %v4929_v43 = vor.u32 %v5187_v41, %v4928_v49  ;;  %3054 = vmatpush.bf16.msrb.mxu2 %v4673_v54  ;;  %v4448_v33 = vld [vmem:[%s8001_s5 + $0x28] sm:$0xf]  ;;  %3083 = vmatpush.bf16.msra.mxu1 %v4801_v36 }
 0x1b6   :  { %v4640_v42 = vld [vmem:[%s8001_s5 + $0x1a8] sm:$0xf] }
 0x1b7   :  { %v1503_v46 = vpop.f32.mrf.mxu2  ;;  %3112 = vmatpush.bf16.msra.mxu3 %v4929_v43  ;;  %v4896_v41 = vld [vmem:[%s8001_s5 + $0x3a8] sm:$0xf] }
 0x1b8   :  { %v1452_v45 = vpop.f32.mrf.mxu3  ;;  %v1504_v57 = vadd.f32 %v1503_v46, %v1475_v12  ;;  %v1476_v27 = vpop.f32.mrf.mxu0  ;;  %v4657_v12 = vor.u32 %v5119_v11, %v4656_v63  ;;  %v5183_v46 = vld [vmem:[%s8001_s5 + $0x3d4] sm:$0xf0]  ;;  %3030 = vmatpush.bf16.msrb.mxu0 %v4465_v5 }
 0x1b9   :  { %v1453_v51 = vadd.f32 %v1452_v45, %v1424_v4  ;;  %v1426_v56 = vpop.f32.mrf.mxu1  ;;  %v1477_v31 = vadd.f32 %v1476_v27, %v7064_v6  ;;  %v5067_v27 = vld [vmem:[%s8001_s5 + $0x34] sm:$0xf0] }
 0x1ba   :  { %v1607_v8 = vmax.f32 %v1504_v57, 0.0  ;;  %v1427_v4 = vadd.f32 %v1426_v56, %v6902_v48  ;;  %v4913_v57 = vor.u32 %v5183_v46, %v4912_v20  ;;  %v4449_v56 = vor.u32 %v5067_v27, %v4448_v33  ;;  %3055 = vmatpush.bf16.msrb.mxu2 %v4657_v12  ;;  %v5179_v63 = vld [vmem:[%s8001_s5 + $0x3b4] sm:$0xf0] }
 0x1bb   :  { %v1639_v14 = vmax.f32 %v1453_v51, 0.0  ;;  %v5115_v51 = vld [vmem:[%s8001_s5 + $0x1b4] sm:$0xf0]  ;;  %v4897_v2 = vor.u32 %v5179_v63, %v4896_v41 }
 0x1bc   :  { %v1843_v15 = vsel %vm1711_vm10, %v1607_v8, 0.0  ;;  %2874 = vmatmul.bf16.gmra.mxu1 %v7196_v34  ;;  %v4641_v49 = vor.u32 %v5115_v51, %v4640_v42  ;;  %3113 = vmatpush.bf16.msra.mxu3 %v4913_v57  ;;  %v5063_v12 = vld [vmem:[%s8001_s5 + $0x14] sm:$0xf0]  ;;  %v7289_v42 = vperm.slane %v6882_v1, 2 }
 0x1bd   :  { %v1875_v16 = vsel %vm1699_vm5, %v1639_v14, 0.0  ;;  %v1982_v45 = vmax.f32 %v1981_v21, %v1843_v15  ;;  %2903 = vmatmul.bf16.gmra.mxu3 %v7198_v55  ;;  %v4784_v21 = vld [vmem:[%s8001_s5 + $0x2c8] sm:$0xf]  ;;  %3031 = vmatpush.bf16.msrb.mxu0 %v4449_v56  ;;  %v5111_v1 = vld [vmem:[%s8001_s5 + $0x194] sm:$0xf0] }
 0x1be   :  { %v2071_v19 = vmax.f32 %v7181_v22, %v1875_v16  ;;  %v5151_v22 = vld [vmem:[%s8001_s5 + $0x2d4] sm:$0xf0]  ;;  %v4432_v14 = vld [vmem:[%s8001_s5 + $0x8] sm:$0xf]  ;;  %3056 = vmatpush.bf16.msrb.mxu2 %v4641_v49  ;;  %v1975_v16 = vrot.slane %v7142_v40, 4 }
 0x1bf   :  { %v1505_v54 = vpop.f32.mrf.mxu2  ;;  %v4785_v11 = vor.u32 %v5151_v22, %v4784_v21  ;;  %v4433_v15 = vor.u32 %v5063_v12, %v4432_v14 }
 0x1c0   :  { %v1455_v5 = vpop.f32.mrf.mxu3  ;;  %v1506_v8 = vadd.f32 %v1505_v54, %v1477_v31  ;;  %v1479_v43 = vpop.f32.mrf.mxu0  ;;  %3114 = vmatpush.bf16.msra.mxu3 %v4897_v2  ;;  %v1976_v49 = vmax.f32 %v7142_v40, %v1975_v16  ;;  %v7306_v2 = vperm.slane %v6919_v37, 2  ;;  %v4880_v37 = vld [vmem:[%s8001_s5 + $0x388] sm:$0xf] }
 0x1c1   :  { %v1456_v25 = vadd.f32 %v1455_v5, %v1427_v4  ;;  %v1428_v20 = vpop.f32.mrf.mxu1  ;;  %3084 = vmatpush.bf16.msra.mxu1 %v4785_v11  ;;  %v1480_v4 = vadd.f32 %v1479_v43, %v7064_v6  ;;  %3032 = vmatpush.bf16.msrb.mxu0 %v4433_v15 }
 0x1c2   :  { %v1618_v31 = vmax.f32 %v1506_v8, 0.0  ;;  %v1429_v36 = vadd.f32 %v1428_v20, %v6902_v48  ;;  %v1977_v43 = vrot.slane %v1976_v49, 2  ;;  %v5147_v20 = vld [vmem:[%s8001_s5 + $0x2b4] sm:$0xf0]  ;;  %vm1690_vm12 = vcmp.lt.s32.totalorder %v5840_v7, %v7306_v2 }
 0x1c3   :  { %v1650_v46 = vmax.f32 %v1456_v25, 0.0  ;;  %2927 = vmatmul.bf16.gmra.mxu0 %v5612_v24  ;;  %v4768_v25 = vld [vmem:[%s8001_s5 + $0x2a8] sm:$0xf]  ;;  %vm1701_vm14 = vcmp.lt.s32.totalorder %v5855_v17, %v7306_v2  ;;  %vm1712_vm15 = vcmp.lt.s32.totalorder %v5883_v35, %v7306_v2  ;;  %vm1723_vm1 = vcmp.lt.s32.totalorder %v5951_v26, %v7306_v2 }
 0x1c4   :  { %v1854_v33 = vsel %vm1722_vm11, %v1618_v31, 0.0  ;;  %2956 = vmatmul.bf16.gmra.mxu2 %v5512_v47 }
 0x1c5   :  { %v1886_v57 = vsel %vm1710_vm6, %v1650_v46, 0.0  ;;  %v7285_v27 = vmax.f32 %v1982_v45, %v1854_v33  ;;  %v4624_v45 = vld [vmem:[%s8001_s5 + $0x188] sm:$0xf]  ;;  %v4769_v46 = vor.u32 %v5147_v20, %v4768_v25  ;;  %v1978_v33 = vmax.f32 %v1976_v49, %v1977_v43 }
 0x1c6   :  { %v2072_v48 = vmax.f32 %v2071_v19, %v1886_v57  ;;  %v4625_v8 = vor.u32 %v5111_v1, %v4624_v45  ;;  %v5103_v45 = vld [vmem:[%s8001_s5 + $0x154] sm:$0xf0]  ;;  %v4752_v20 = vld [vmem:[%s8001_s5 + $0x288] sm:$0xf] }
 0x1c7   :  { %v1508_v51 = vpop.f32.mrf.mxu2  ;;  %3085 = vmatpush.bf16.msra.mxu1 %v4769_v46  ;;  %v1979_v43 = vrot.slane %v1978_v33, 1 }
 0x1c8   :  { %v1457_v21 = vpop.f32.mrf.mxu3  ;;  %v1509_v56 = vadd.f32 %v1508_v51, %v1480_v4  ;;  %v1481_v54 = vpop.f32.mrf.mxu0  ;;  %3057 = vmatpush.bf16.msrb.mxu2 %v4625_v8  ;;  %v4608_v51 = vld [vmem:[%s8001_s5 + $0x168] sm:$0xf] }
 0x1c9   :  { %v1458_v22 = vadd.f32 %v1457_v21, %v1429_v36  ;;  %v1527_v41 = vpop.f32.mrf.mxu1  ;;  %v1482_v19 = vadd.f32 %v1481_v54, %v7064_v6 }
 0x1ca   :  { %v1528_v63 = vadd.f32 %v1527_v41, %v7289_v42  ;;  %v1629_v11 = vmax.f32 %v1509_v56, 0.0 }
 0x1cb   :  { %v1661_v5 = vmax.f32 %v1458_v22, 0.0  ;;  %v5107_v22 = vld [vmem:[%s8001_s5 + $0x174] sm:$0xf0] }
 0x1cc   :  { %2975 = vmatmul.bf16.vlgmr.msrb.gmra.mxu1 %v6911_v30  ;;  %v7320_v4 = vsel %vm1689_vm8, %v1629_v11, 0.0 }
 0x1cd   :  { %v1897_v40 = vsel %vm1721_vm7, %v1661_v5, 0.0  ;;  %3004 = vmatmul.bf16.vlgmr.msrb.gmra.mxu3 %v6914_v50  ;;  %v4592_v5 = vld [vmem:[%s8001_s5 + $0x148] sm:$0xf] }
 0x1ce   :  { %v2073_v14 = vmax.f32 %v2072_v48, %v1897_v40  ;;  %v5175_v48 = vld [vmem:[%s8001_s5 + $0x394] sm:$0xf0] }
 0x1cf   :  { %v1510_v12 = vpop.f32.mrf.mxu2  ;;  %v4881_v49 = vor.u32 %v5175_v48, %v4880_v37 }
 0x1d0   :  { %v2074_v15 = vrot.slane %v2073_v14, 4  ;;  %v1511_v44 = vadd.f32 %v1510_v12, %v1482_v19  ;;  %v1556_v31 = vpop.f32.mrf.mxu3  ;;  %v1484_v36 = vpop.f32.mrf.mxu0 }
 0x1d1   :  { %v1557_v16 = vadd.f32 %v1556_v31, %v1528_v63  ;;  %v1529_v57 = vpop.f32.mrf.mxu1  ;;  %v4609_v63 = vor.u32 %v5107_v22, %v4608_v51  ;;  %v1485_v8 = vadd.f32 %v1484_v36, %v7064_v6  ;;  %3115 = vmatpush.bf16.msra.mxu3 %v4881_v49  ;;  %v5139_v49 = vld [vmem:[%s8001_s5 + $0x274] sm:$0xf0]  ;;  %v4848_v22 = vld [vmem:[%s8001_s5 + $0x348] sm:$0xf] }
 0x1d2   :  { %v2075_v21 = vmax.f32 %v2073_v14, %v2074_v15  ;;  %v1640_v56 = vmax.f32 %v1511_v44, 0.0  ;;  %v1530_v54 = vadd.f32 %v1529_v57, %v7289_v42  ;;  %v4593_v14 = vor.u32 %v5103_v45, %v4592_v5  ;;  %v5143_v15 = vld [vmem:[%s8001_s5 + $0x294] sm:$0xf0]  ;;  %v4576_v44 = vld [vmem:[%s8001_s5 + $0x128] sm:$0xf] }
 0x1d3   :  { %v1586_v41 = vmax.f32 %v1557_v16, 0.0  ;;  %2932 = vmatmul.bf16.gmra.mxu0 %v5643_v39  ;;  %3058 = vmatpush.bf16.msrb.mxu2 %v4609_v63  ;;  %v4864_v16 = vld [vmem:[%s8001_s5 + $0x368] sm:$0xf]  ;;  %v5171_v57 = vld [vmem:[%s8001_s5 + $0x374] sm:$0xf0] }
 0x1d4   :  { %v2076_v1 = vrot.slane %v2075_v21, 2  ;;  %v1876_v19 = vsel %vm1700_vm9, %v1640_v56, 0.0  ;;  %2961 = vmatmul.bf16.gmra.mxu2 %v5576_v10  ;;  %v4736_v56 = vld [vmem:[%s8001_s5 + $0x268] sm:$0xf]  ;;  %v5167_v45 = vld [vmem:[%s8001_s5 + $0x354] sm:$0xf0] }
 0x1d5   :  { %v2080_v40 = vmax.f32 %v7320_v4, %v1876_v19  ;;  %v7349_v11 = vsel %vm1690_vm12, %v1586_v41, 0.0  ;;  %v4753_v4 = vor.u32 %v5143_v15, %v4752_v20  ;;  %v1980_v41 = vmax.f32 %v1978_v33, %v1979_v43  ;;  %v4560_v33 = vld [vmem:[%s8001_s5 + $0x108] sm:$0xf]  ;;  %v5095_v43 = vld [vmem:[%s8001_s5 + $0x114] sm:$0xf0] }
 0x1d6   :  { %v2077_v12 = vmax.f32 %v2075_v21, %v2076_v1  ;;  %v4865_v21 = vor.u32 %v5171_v57, %v4864_v16  ;;  %v4737_v5 = vor.u32 %v5139_v49, %v4736_v56  ;;  %v5099_v1 = vld [vmem:[%s8001_s5 + $0x134] sm:$0xf0] }
 0x1d7   :  { %v1513_v25 = vpop.f32.mrf.mxu2  ;;  %3059 = vmatpush.bf16.msrb.mxu2 %v4593_v14  ;;  %3086 = vmatpush.bf16.msra.mxu1 %v4753_v4  ;;  %v4849_v14 = vor.u32 %v5167_v45, %v4848_v22 }
 0x1d8   :  { %v2078_v31 = vrot.slane %v2077_v12, 1  ;;  %v1514_v36 = vadd.f32 %v1513_v25, %v1485_v8  ;;  %v1558_v46 = vpop.f32.mrf.mxu3  ;;  %v1486_v37 = vpop.f32.mrf.mxu0  ;;  %3116 = vmatpush.bf16.msra.mxu3 %v4865_v21  ;;  %v4577_v25 = vor.u32 %v5099_v1, %v4576_v44  ;;  %v1984_v44 = vrot.slane %v7285_v27, 4  ;;  %v4704_v1 = vld [vmem:[%s8001_s5 + $0x228] sm:$0xf] }
 0x1d9   :  { %v1559_v48 = vadd.f32 %v1558_v46, %v1530_v54  ;;  %v1532_v51 = vpop.f32.mrf.mxu1  ;;  %v1487_v15 = vadd.f32 %v1486_v37, %v7064_v6  ;;  %v4561_v46 = vor.u32 %v5095_v43, %v4560_v33  ;;  %v4720_v6 = vld [vmem:[%s8001_s5 + $0x248] sm:$0xf]  ;;  %v5135_v37 = vld [vmem:[%s8001_s5 + $0x254] sm:$0xf0] }
 0x1da   :  { %v1651_v54 = vmax.f32 %v1514_v36, 0.0  ;;  %v1533_v63 = vadd.f32 %v1532_v51, %v7289_v42  ;;  %v2079_v19 = vmax.f32 %v2077_v12, %v2078_v31  ;;  %v4721_v57 = vor.u32 %v5135_v37, %v4720_v6  ;;  %v5127_v6 = vld [vmem:[%s8001_s5 + $0x214] sm:$0xf0] }
 0x1db   :  { %v1597_v8 = vmax.f32 %v1559_v48, 0.0  ;;  %3060 = vmatpush.bf16.msrb.mxu2 %v4577_v25  ;;  %3087 = vmatpush.bf16.msra.mxu1 %v4737_v5  ;;  %v1985_v49 = vmax.f32 %v7285_v27, %v1984_v44  ;;  %v5131_v27 = vld [vmem:[%s8001_s5 + $0x234] sm:$0xf0] }
 0x1dc   :  { %v1887_v20 = vsel %vm1711_vm10, %v1651_v54, 0.0  ;;  %2980 = vmatmul.bf16.gmra.mxu1 %v7002_v0  ;;  %v7397_v12 = vsel %vm3457_vm13, %v2079_v19, %v1980_v41  ;;  %3117 = vmatpush.bf16.msra.mxu3 %v4849_v14  ;;  %v4705_v19 = vor.u32 %v5131_v27, %v4704_v1  ;;  %v4546_v14 = vld [vmem:[%s8001_s5 + $0xf8] sm:$0xf0]  ;;  %v5159_v44 = vld [vmem:[%s8001_s5 + $0x314] sm:$0xf0] }
 0x1dd   :  { %8012 = vst [vmem:[#allocation10_spill] sm:$0xff] %v7397_v12  ;;  %v2081_v31 = vmax.f32 %v2080_v40, %v1887_v20  ;;  %v1833_v36 = vsel %vm1701_vm14, %v1597_v8, 0.0  ;;  %3009 = vmatmul.bf16.gmra.mxu3 %v7010_v9  ;;  %v4832_v40 = vld [vmem:[%s8001_s5 + $0x328] sm:$0xf]  ;;  %v5089_v8 = vld [vmem:[%s8001_s5 + $0xec] sm:$0xf] }
 0x1de   :  { %v1990_v4 = vmax.f32 %v7349_v11, %v1833_v36  ;;  %v5163_v11 = vld [vmem:[%s8001_s5 + $0x334] sm:$0xf0]  ;;  %v1986_v25 = vrot.slane %v1985_v49, 2  ;;  %v4549_v20 = vor.u32 %v5089_v8, %v4546_v14  ;;  %v5081_v27 = vld [vmem:[%s8001_s5 + $0xac] sm:$0xf] }
 0x1df   :  { %v1515_v16 = vpop.f32.mrf.mxu2  ;;  %v4833_v56 = vor.u32 %v5163_v11, %v4832_v40  ;;  %3061 = vmatpush.bf16.msrb.mxu2 %v4561_v46  ;;  %3088 = vmatpush.bf16.msra.mxu1 %v4721_v57  ;;  %v5085_v57 = vld [vmem:[%s8001_s5 + $0xcc] sm:$0xf]  ;;  %v4530_v11 = vld [vmem:[%s8001_s5 + $0xd8] sm:$0xf0] }
 0x1e0   :  { %v1516_v48 = vadd.f32 %v1515_v16, %v1487_v15  ;;  %v1561_v51 = vpop.f32.mrf.mxu3  ;;  %v7417_v21 = vpop.f32.mrf.mxu0  ;;  %3141 = vmatpush.bf16.msra.mxu0 %v4549_v20  ;;  %v4498_v20 = vld [vmem:[%s8001_s5 + $0x98] sm:$0xf0] }
 0x1e1   :  { %v1562_v22 = vadd.f32 %v1561_v51, %v1533_v63  ;;  %v1534_v41 = vpop.f32.mrf.mxu1  ;;  %3118 = vmatpush.bf16.msra.mxu3 %v4833_v56 }
 0x1e2   :  { %v1662_v54 = vmax.f32 %v1516_v48, 0.0  ;;  %v1535_v5 = vadd.f32 %v1534_v41, %v7289_v42  ;;  %v1987_v48 = vmax.f32 %v1985_v49, %v1986_v25  ;;  %v4533_v41 = vor.u32 %v5085_v57, %v4530_v11  ;;  %v4514_v49 = vld [vmem:[%s8001_s5 + $0xb8] sm:$0xf0]  ;;  %v5073_v57 = vld [vmem:[%s8001_s5 + $0x6c] sm:$0xf] }
 0x1e3   :  { %v1608_v45 = vmax.f32 %v1562_v22, 0.0  ;;  %3033 = vmatmul.bf16.vlgmr.msrb.gmra.mxu0 %v5472_v29  ;;  %3089 = vmatpush.bf16.msra.mxu1 %v4705_v19  ;;  %v4482_v11 = vld [vmem:[%s8001_s5 + $0x78] sm:$0xf0] }
 0x1e4   :  { %v1898_v63 = vsel %vm1722_vm11, %v1662_v54, 0.0  ;;  %3062 = vmatmul.bf16.vlgmr.msrb.gmra.mxu2 %v5334_v28  ;;  %3142 = vmatpush.bf16.msra.mxu0 %v4533_v41  ;;  %v5069_v41 = vld [vmem:[%s8001_s5 + $0x4c] sm:$0xf] }
 0x1e5   :  { %v2082_v33 = vmax.f32 %v2081_v31, %v1898_v63  ;;  %v1844_v43 = vsel %vm1712_vm15, %v1608_v45, 0.0  ;;  %v4817_v31 = vor.u32 %v5159_v44, %v4816_v52  ;;  %v1988_v63 = vrot.slane %v1987_v48, 1 }
 0x1e6   :  { %v1991_v15 = vmax.f32 %v1990_v4, %v1844_v43  ;;  %v4688_v4 = vld [vmem:[%s8001_s5 + $0x208] sm:$0xf]  ;;  %v5077_v43 = vld [vmem:[%s8001_s5 + $0x8c] sm:$0xf] }
 0x1e7   :  { %v2083_v36 = vrot.slane %v2082_v33, 4  ;;  %v7449_v46 = vpop.f32.mrf.mxu2  ;;  %v4689_v16 = vor.u32 %v5127_v6, %v4688_v4  ;;  %3119 = vmatpush.bf16.msra.mxu3 %v4817_v31 }
 0x1e8   :  { %v1563_v37 = vpop.f32.mrf.mxu3  ;;  %v7457_v40 = vpop.f32.mrf.mxu0 }
 0x1e9   :  { %v2084_v51 = vmax.f32 %v2082_v33, %v2083_v36  ;;  %v1564_v56 = vadd.f32 %v1563_v37, %v1535_v5  ;;  %v1537_v22 = vpop.f32.mrf.mxu1  ;;  %3090 = vmatpush.bf16.msra.mxu1 %v4689_v16  ;;  %v4517_v5 = vor.u32 %v5081_v27, %v4514_v49  ;;  %v4501_v36 = vor.u32 %v5077_v43, %v4498_v20  ;;  %v5121_v27 = vld [vmem:[%s8001_s5 + $0x1ec] sm:$0xf]  ;;  %v4674_v49 = vld [vmem:[%s8001_s5 + $0x1f8] sm:$0xf0] }
 0x1ea   :  { %v1538_v54 = vadd.f32 %v1537_v22, %v7289_v42  ;;  %v5117_v43 = vld [vmem:[%s8001_s5 + $0x1cc] sm:$0xf] }
 0x1eb   :  { %v2085_v45 = vrot.slane %v2084_v51, 2  ;;  %v1619_v1 = vmax.f32 %v1564_v56, 0.0  ;;  %3143 = vmatpush.bf16.msra.mxu0 %v4517_v5  ;;  %v4485_v56 = vor.u32 %v5073_v57, %v4482_v11  ;;  %v5181_v57 = vld [vmem:[%s8001_s5 + $0x3cc] sm:$0xf]  ;;  %v4914_v11 = vld [vmem:[%s8001_s5 + $0x3d8] sm:$0xf0] }
 0x1ec   :  { %2985 = vmatmul.bf16.gmra.mxu1 %v7108_v38 }
 0x1ed   :  { %v2086_v19 = vmax.f32 %v2084_v51, %v2085_v45  ;;  %v1855_v8 = vsel %vm1723_vm1, %v1619_v1, 0.0  ;;  %3014 = vmatmul.bf16.gmra.mxu3 %v7119_v59 }
 0x1ee   :  { %v7479_v14 = vmax.f32 %v1991_v15, %v1855_v8  ;;  %v1989_v15 = vmax.f32 %v1987_v48, %v1988_v63  ;;  %v5185_v8 = vld [vmem:[%s8001_s5 + $0x3ec] sm:$0xf] }
 0x1ef   :  { %v2087_v25 = vrot.slane %v2086_v19, 1  ;;  %v7481_v33 = vpop.f32.mrf.mxu2  ;;  %3144 = vmatpush.bf16.msra.mxu0 %v4501_v36  ;;  %v4658_v36 = vld [vmem:[%s8001_s5 + $0x1d8] sm:$0xf0] }
 0x1f0   :  { %v1566_v52 = vpop.f32.mrf.mxu3  ;;  %v7489_v44 = vpop.f32.mrf.mxu0 }
 0x1f1   :  { %v1567_v31 = vadd.f32 %v1566_v52, %v1538_v54  ;;  %v1539_v4 = vpop.f32.mrf.mxu1  ;;  %v2088_v6 = vmax.f32 %v2086_v19, %v2087_v25  ;;  %v4466_v54 = vld [vmem:[%s8001_s5 + $0x58] sm:$0xf0]  ;;  %v4677_v19 = vor.u32 %v5121_v27, %v4674_v49  ;;  %v5113_v49 = vld [vmem:[%s8001_s5 + $0x1ac] sm:$0xf] }
 0x1f2   :  { %v1540_v37 = vadd.f32 %v1539_v4, %v7289_v42  ;;  %v4930_v25 = vld [vmem:[%s8001_s5 + $0x3f8] sm:$0xf0] }
 0x1f3   :  { %v1630_v16 = vmax.f32 %v1567_v31, 0.0  ;;  %3038 = vmatmul.bf16.gmra.mxu0 %v5548_v60  ;;  %v7500_v51 = vsel %vm3457_vm13, %v2088_v6, %v1989_v15  ;;  %v4933_v52 = vor.u32 %v5185_v8, %v4930_v25  ;;  %v5153_v31 = vld [vmem:[%s8001_s5 + $0x2ec] sm:$0xf]  ;;  %v4802_v4 = vld [vmem:[%s8001_s5 + $0x2f8] sm:$0xf0]  ;;  %v4469_v15 = vor.u32 %v5069_v41, %v4466_v54  ;;  %3170 = vmatpush.bf16.msra.mxu2 %v4677_v19 }
 0x1f4   :  { %3067 = vmatmul.bf16.gmra.mxu2 %v5442_v13  ;;  %3145 = vmatpush.bf16.msra.mxu0 %v4485_v56  ;;  %v4917_v56 = vor.u32 %v5181_v57, %v4914_v11  ;;  %v5065_v41 = vld [vmem:[%s8001_s5 + $0x2c] sm:$0xf]  ;;  %v4450_v54 = vld [vmem:[%s8001_s5 + $0x38] sm:$0xf0] }
 0x1f5   :  { %v7505_v48 = vsel %vm1690_vm12, %v1630_v16, 0.0  ;;  %v4805_v16 = vor.u32 %v5153_v31, %v4802_v4  ;;  %3228 = vmatpush.bf16.msrb.mxu3 %v4933_v52  ;;  %v4453_v19 = vor.u32 %v5065_v41, %v4450_v54  ;;  %v4898_v52 = vld [vmem:[%s8001_s5 + $0x3b8] sm:$0xf0] }
 0x1f7   :  { %v7508_v22 = vpop.f32.mrf.mxu2  ;;  %3199 = vmatpush.bf16.msrb.mxu1 %v4805_v16 }
 0x1f8   :  { %v1568_v45 = vpop.f32.mrf.mxu3  ;;  %v7516_v1 = vpop.f32.mrf.mxu0  ;;  %3146 = vmatpush.bf16.msra.mxu0 %v4469_v15 }
 0x1f9   :  { %v1569_v5 = vadd.f32 %v1568_v45, %v1540_v37  ;;  %v1542_v63 = vpop.f32.mrf.mxu1  ;;  %v4661_v37 = vor.u32 %v5117_v43, %v4658_v36  ;;  %v5177_v43 = vld [vmem:[%s8001_s5 + $0x3ac] sm:$0xf]  ;;  %3229 = vmatpush.bf16.msrb.mxu3 %v4917_v56  ;;  %v1993_v56 = vrot.slane %v7479_v14, 4 }
 0x1fa   :  { %v1543_v20 = vadd.f32 %v1542_v63, %v7289_v42  ;;  %v5149_v63 = vld [vmem:[%s8001_s5 + $0x2cc] sm:$0xf]  ;;  %v4901_v15 = vor.u32 %v5177_v43, %v4898_v52  ;;  %v4882_v52 = vld [vmem:[%s8001_s5 + $0x398] sm:$0xf0] }
 0x1fb   :  { %v1641_v6 = vmax.f32 %v1569_v5, 0.0  ;;  %v4642_v5 = vld [vmem:[%s8001_s5 + $0x1b8] sm:$0xf0]  ;;  %3171 = vmatpush.bf16.msra.mxu2 %v4661_v37 }
 0x1fc   :  { %2990 = vmatmul.bf16.gmra.mxu1 %v7196_v34  ;;  %v4645_v8 = vor.u32 %v5113_v49, %v4642_v5  ;;  %v4434_v37 = vld [vmem:[%s8001_s5 + $0x18] sm:$0xf0]  ;;  %3147 = vmatpush.bf16.msra.mxu0 %v4453_v19  ;;  %v5145_v5 = vld [vmem:[%s8001_s5 + $0x2ac] sm:$0xf] }
 0x1fd   :  { %v1877_v45 = vsel %vm1701_vm14, %v1641_v6, 0.0  ;;  %3019 = vmatmul.bf16.gmra.mxu3 %v7198_v55  ;;  %v5061_v6 = vld [vmem:[%s8001_s5 + $0xc] sm:$0xf] }
 0x1fe   :  { %v2089_v27 = vmax.f32 %v7505_v48, %v1877_v45  ;;  %v4786_v48 = vld [vmem:[%s8001_s5 + $0x2d8] sm:$0xf0]  ;;  %v4437_v41 = vor.u32 %v5061_v6, %v4434_v37  ;;  %3230 = vmatpush.bf16.msrb.mxu3 %v4901_v15  ;;  %v5173_v19 = vld [vmem:[%s8001_s5 + $0x38c] sm:$0xf]  ;;  %v1994_v37 = vmax.f32 %v7479_v14, %v1993_v56 }
 0x1ff   :  { %v7573_v25 = vpop.f32.mrf.mxu2  ;;  %v4789_v4 = vor.u32 %v5149_v63, %v4786_v48  ;;  %3172 = vmatpush.bf16.msra.mxu2 %v4645_v8  ;;  %v4885_v6 = vor.u32 %v5173_v19, %v4882_v52  ;;  %v4610_v14 = vld [vmem:[%s8001_s5 + $0x178] sm:$0xf0] }
 0x200   :  { %v1571_v36 = vpop.f32.mrf.mxu3  ;;  %v7581_v31 = vpop.f32.mrf.mxu0  ;;  %3148 = vmatpush.bf16.msra.mxu0 %v4437_v41  ;;  %v4594_v19 = vld [vmem:[%s8001_s5 + $0x158] sm:$0xf0] }
 0x201   :  { %v1572_v16 = vadd.f32 %v1571_v36, %v1543_v20  ;;  %v1544_v57 = vpop.f32.mrf.mxu1  ;;  %3200 = vmatpush.bf16.msrb.mxu1 %v4789_v4  ;;  %v4626_v20 = vld [vmem:[%s8001_s5 + $0x198] sm:$0xf0] }
 0x202   :  { %v1545_v11 = vadd.f32 %v1544_v57, %v7289_v42  ;;  %v5109_v42 = vld [vmem:[%s8001_s5 + $0x18c] sm:$0xf]  ;;  %3231 = vmatpush.bf16.msrb.mxu3 %v4885_v6 }
 0x203   :  { %v1652_v54 = vmax.f32 %v1572_v16, 0.0  ;;  %3043 = vmatmul.bf16.gmra.mxu0 %v5612_v24  ;;  %v4629_v63 = vor.u32 %v5109_v42, %v4626_v20  ;;  %v5141_v6 = vld [vmem:[%s8001_s5 + $0x28c] sm:$0xf] }
 0x204   :  { %3072 = vmatmul.bf16.gmra.mxu2 %v5512_v47 }
 0x205   :  { %v1888_v45 = vsel %vm1712_vm15, %v1652_v54, 0.0  ;;  %3173 = vmatpush.bf16.msra.mxu2 %v4629_v63  ;;  %v5105_v54 = vld [vmem:[%s8001_s5 + $0x16c] sm:$0xf] }
 0x206   :  { %v2090_v49 = vmax.f32 %v2089_v27, %v1888_v45  ;;  %v4770_v27 = vld [vmem:[%s8001_s5 + $0x2b8] sm:$0xf0]  ;;  %v4613_v20 = vor.u32 %v5105_v54, %v4610_v14  ;;  %v5169_v14 = vld [vmem:[%s8001_s5 + $0x36c] sm:$0xf] }
 0x207   :  { %v4773_v43 = vor.u32 %v5145_v5, %v4770_v27  ;;  %v7618_v15 = vpop.f32.mrf.mxu2  ;;  %v5101_v27 = vld [vmem:[%s8001_s5 + $0x14c] sm:$0xf] }
 0x208   :  { %v1573_v8 = vpop.f32.mrf.mxu3  ;;  %v7611_v48 = vpop.f32.mrf.mxu0 }
 0x209   :  { %v1574_v36 = vadd.f32 %v1573_v8, %v1545_v11  ;;  %v7616_v4 = vpop.f32.mrf.mxu1  ;;  %3201 = vmatpush.bf16.msrb.mxu1 %v4773_v43  ;;  %v1995_v11 = vrot.slane %v1994_v37, 2  ;;  %3174 = vmatpush.bf16.msra.mxu2 %v4613_v20  ;;  %v4597_v43 = vor.u32 %v5101_v27, %v4594_v19  ;;  %v5137_v27 = vld [vmem:[%s8001_s5 + $0x26c] sm:$0xf]  ;;  %v4738_v19 = vld [vmem:[%s8001_s5 + $0x278] sm:$0xf0] }
 0x20b   :  { %v1663_v16 = vmax.f32 %v1574_v36, 0.0  ;;  %v1996_v63 = vmax.f32 %v1994_v37, %v1995_v11  ;;  %v4754_v37 = vld [vmem:[%s8001_s5 + $0x298] sm:$0xf0] }
 0x20c   :  { %3091 = vmatmul.bf16.vlgmr.msra.gmra.mxu1 %v6911_v30  ;;  %v4757_v54 = vor.u32 %v5141_v6, %v4754_v37  ;;  %v4741_v6 = vor.u32 %v5137_v27, %v4738_v19  ;;  %v4850_v37 = vld [vmem:[%s8001_s5 + $0x358] sm:$0xf0] }
 0x20d   :  { %v1899_v57 = vsel %vm1723_vm1, %v1663_v16, 0.0  ;;  %3120 = vmatmul.bf16.vlgmr.msra.gmra.mxu3 %v6914_v50  ;;  %v1997_v52 = vrot.slane %v1996_v63, 1  ;;  %3175 = vmatpush.bf16.msra.mxu2 %v4597_v43  ;;  %v5097_v16 = vld [vmem:[%s8001_s5 + $0x12c] sm:$0xf] }
 0x20e   :  { %v2091_v41 = vmax.f32 %v2090_v49, %v1899_v57  ;;  %v5165_v43 = vld [vmem:[%s8001_s5 + $0x34c] sm:$0xf]  ;;  %3202 = vmatpush.bf16.msrb.mxu1 %v4757_v54  ;;  %v4562_v54 = vld [vmem:[%s8001_s5 + $0x118] sm:$0xf0] }
 0x20f   :  { %v7638_v5 = vpop.f32.mrf.mxu2  ;;  %v4853_v23 = vor.u32 %v5165_v43, %v4850_v37 }
 0x210   :  { %v2092_v56 = vrot.slane %v2091_v41, 4  ;;  %v7632_v45 = vpop.f32.mrf.mxu3  ;;  %v7634_v42 = vpop.f32.mrf.mxu0 }
 0x211   :  { %v7636_v2 = vpop.f32.mrf.mxu1 }
 0x212   :  { %v2093_v49 = vmax.f32 %v2091_v41, %v2092_v56  ;;  %v4866_v56 = vld [vmem:[%s8001_s5 + $0x378] sm:$0xf0]  ;;  %3203 = vmatpush.bf16.msrb.mxu1 %v4741_v6 }
 0x213   :  { %3048 = vmatmul.bf16.gmra.mxu0 %v5643_v39  ;;  %v4706_v6 = vld [vmem:[%s8001_s5 + $0x238] sm:$0xf0] }
 0x214   :  { %v2094_v8 = vrot.slane %v2093_v49, 2  ;;  %3077 = vmatmul.bf16.gmra.mxu2 %v5576_v10 }
 0x216   :  { %v2095_v36 = vmax.f32 %v2093_v49, %v2094_v8  ;;  %v4869_v49 = vor.u32 %v5169_v14, %v4866_v56  ;;  %v4578_v14 = vld [vmem:[%s8001_s5 + $0x138] sm:$0xf0]  ;;  %v1998_v56 = vmax.f32 %v1996_v63, %v1997_v52  ;;  %v4565_v63 = vor.u32 %v5093_v61, %v4562_v54  ;;  %v5133_v52 = vld [vmem:[%s8001_s5 + $0x24c] sm:$0xf] }
 0x217   :  { %v7675_v8 = vpop.f32.mrf.mxu2  ;;  %v4581_v3 = vor.u32 %v5097_v16, %v4578_v14  ;;  %v5161_v16 = vld [vmem:[%s8001_s5 + $0x32c] sm:$0xf] }
 0x218   :  { %v2096_v57 = vrot.slane %v2095_v36, 1  ;;  %v7657_v11 = vpop.f32.mrf.mxu3  ;;  %v7659_v41 = vpop.f32.mrf.mxu0  ;;  %3232 = vmatpush.bf16.msrb.mxu3 %v4869_v49  ;;  %v5157_v14 = vld [vmem:[%s8001_s5 + $0x30c] sm:$0xf] }
 0x219   :  { %v7667_v20 = vpop.f32.mrf.mxu1  ;;  %3176 = vmatpush.bf16.msra.mxu2 %v4581_v3  ;;  %v4834_v3 = vld [vmem:[%s8001_s5 + $0x338] sm:$0xf0]  ;;  %v5125_v54 = vld [vmem:[%s8001_s5 + $0x20c] sm:$0xf] }
 0x21a   :  { %v2097_v12 = vmax.f32 %v2095_v36, %v2096_v57  ;;  %v4722_v36 = vld [vmem:[%s8001_s5 + $0x258] sm:$0xf0]  ;;  %v4837_v49 = vor.u32 %v5161_v16, %v4834_v3 }
 0x21c   :  { %3096 = vmatmul.bf16.gmra.mxu1 %v7002_v0  ;;  %v7694_v27 = vsel %vm3457_vm13, %v2097_v12, %v1998_v56  ;;  %3233 = vmatpush.bf16.msrb.mxu3 %v4853_v23  ;;  %v4725_v12 = vor.u32 %v5133_v52, %v4722_v36  ;;  %v5129_v23 = vld [vmem:[%s8001_s5 + $0x22c] sm:$0xf] }
 0x21d   :  { %8013 = vst [vmem:[#allocation11_spill] sm:$0xff] %v7694_v27  ;;  %3125 = vmatmul.bf16.gmra.mxu3 %v7010_v9  ;;  %3177 = vmatpush.bf16.msra.mxu2 %v4565_v63  ;;  %v4709_v37 = vor.u32 %v5129_v23, %v4706_v6  ;;  %v4690_v63 = vld [vmem:[%s8001_s5 + $0x218] sm:$0xf0] }
 0x21e   :  { %3204 = vmatpush.bf16.msrb.mxu1 %v4725_v12  ;;  %v4693_v16 = vor.u32 %v5125_v54, %v4690_v63 }
 0x21f   :  { %v7711_v43 = vpop.f32.mrf.mxu2 }
 0x220   :  { %v2894_v61 = vpop.f32.mrf.mxu3  ;;  %v7709_v57 = vpop.f32.mrf.mxu0  ;;  %3234 = vmatpush.bf16.msrb.mxu3 %v4837_v49 }
 0x221   :  { %v2867_v19 = vpop.f32.mrf.mxu1 }
 0x222   :  { %3205 = vmatpush.bf16.msrb.mxu1 %v4709_v37 }
 0x223   :  { %3149 = vmatmul.bf16.vlgmr.msra.gmra.mxu0 %v5472_v29  ;;  %v4818_v29 = vld [vmem:[%s8001_s5 + $0x318] sm:$0xf0] }
 0x224   :  { %3178 = vmatmul.bf16.vlgmr.msra.gmra.mxu2 %v5334_v28  ;;  %v4821_v56 = vor.u32 %v5157_v14, %v4818_v29  ;;  %v7736_v28 = vld [vmem:[%s8002_s6] sm:$0xf] }
 0x225   :  { %v2101_v49 = vperm.slane %v7736_v28, 0 }
 0x226   :  { %3235 = vmatpush.bf16.msrb.mxu3 %v4821_v56  ;;  %3206 = vmatpush.bf16.msrb.mxu1 %v4693_v16 }
 0x227   :  { %v7740_v3 = vpop.f32.mrf.mxu2  ;;  %v2803_v23 = vadd.f32 %v7417_v21, %v2101_v49  ;;  %v2808_v6 = vadd.f32 %v7489_v44, %v2101_v49  ;;  %v2805_v29 = vadd.f32 %v7457_v40, %v2101_v49  ;;  %v2810_v27 = vadd.f32 %v7516_v1, %v2101_v49  ;;  %v7769_v1 = vld [vmem:[%s8003_s7] sm:$0xf] }
 0x228   :  { %v2896_v52 = vpop.f32.mrf.mxu3  ;;  %v7738_v36 = vpop.f32.mrf.mxu0  ;;  %v2813_v21 = vadd.f32 %v7581_v31, %v2101_v49  ;;  %v2818_v53 = vadd.f32 %v7634_v42, %v2101_v49  ;;  %v2815_v62 = vadd.f32 %v7611_v48, %v2101_v49 }
 0x229   :  { %v2870_v12 = vpop.f32.mrf.mxu1  ;;  %v2832_v56 = vadd.f32 %v7449_v46, %v2803_v23  ;;  %v2837_v16 = vadd.f32 %v7508_v22, %v2808_v6  ;;  %v2834_v44 = vadd.f32 %v7481_v33, %v2805_v29  ;;  %v2839_v31 = vadd.f32 %v7573_v25, %v2810_v27 }
 0x22a   :  { %v2847_v48 = vadd.f32 %v7675_v8, %v2818_v53  ;;  %v3289_v25 = vperm.slane %v7769_v1, 0 }
 0x22b   :  { %v2861_v40 = vadd.f32 %v7616_v4, %v2832_v56  ;;  %v2863_v46 = vadd.f32 %v7636_v2, %v2834_v44  ;;  %v2866_v22 = vadd.f32 %v7667_v20, %v2837_v16  ;;  %v3448_v2 = vld [vmem:[%s8004_s8] sm:$0xff]  ;;  %v2844_v20 = vadd.f32 %v7638_v5, %v2815_v62 }
 0x22c   :  { %3101 = vmatmul.bf16.gmra.mxu1 %v7108_v38  ;;  %3467 = vst [vmem:[#allocation1] ss:$4 sm:$0xff] %v3448_v2  ;;  %vm3297_vm2 = vcmp.lt.s32.totalorder %v5855_v17, %v3289_v25  ;;  %vm3293_vm3 = vcmp.lt.s32.totalorder %v5840_v7, %v3289_v25  ;;  %vm3301_vm0 = vcmp.lt.s32.totalorder %v5883_v35, %v3289_v25  ;;  %v3445_v2 = vld [vmem:[%s8000_s4] sm:$0xff] }
 0x22d   :  { %3130 = vmatmul.bf16.gmra.mxu3 %v7119_v59  ;;  %v2892_v33 = vadd.f32 %v7657_v11, %v2863_v46  ;;  %v2890_v6 = vadd.f32 %v7632_v45, %v2861_v40  ;;  %v2895_v29 = vadd.f32 %v2894_v61, %v2866_v22  ;;  %v2868_v11 = vadd.f32 %v2867_v19, %v2839_v31 }
 0x22e   :  { %v2820_v45 = vadd.f32 %v7659_v41, %v2101_v49  ;;  %vm3305_vm4 = vcmp.lt.s32.totalorder %v5951_v26, %v3289_v25 }
 0x22f   :  { %v7750_v63 = vpop.f32.mrf.mxu2  ;;  %v3261_v53 = vmax.f32 %v2892_v33, 0.0  ;;  %v3257_v62 = vmax.f32 %v2890_v6, 0.0  ;;  %v3265_v5 = vmax.f32 %v2895_v29, 0.0 }
 0x230   :  { %v2899_v37 = vpop.f32.mrf.mxu3  ;;  %v7747_v14 = vpop.f32.mrf.mxu0  ;;  %v2849_v31 = vadd.f32 %v7711_v43, %v2820_v45 }
 0x231   :  { %v2872_v54 = vpop.f32.mrf.mxu1  ;;  %v3341_v41 = vsel %vm3293_vm3, %v3257_v62, 0.0  ;;  %v3349_v49 = vsel %vm3301_vm0, %v3265_v5, 0.0 }
 0x232   :  { %v2873_v27 = vadd.f32 %v2872_v54, %v2844_v20 }
 0x233   :  { %3154 = vmatmul.bf16.gmra.mxu0 %v5548_v60  ;;  %v3468_v46 = vld.sshfl [vmem:[#allocation1] sm:$0xff pattern:$0x73625140]  ;;  %v3470_v6 = vld.sshfl [vmem:[#allocation1 + $0x10] sm:$0xff pattern:$0x73625140] }
 0x234   :  { %3183 = vmatmul.bf16.gmra.mxu2 %v5442_v13  ;;  %v2842_v13 = vadd.f32 %v7618_v15, %v2813_v21  ;;  %v2897_v15 = vadd.f32 %v2896_v52, %v2868_v11  ;;  %v3345_v52 = vsel %vm3297_vm2, %v3261_v53, 0.0  ;;  %3491 = vmatpush.xpose.msrb.mxu0 %v3468_v46 }
 0x236   :  { %v2871_v8 = vadd.f32 %v2870_v12, %v2842_v13  ;;  %v3269_v12 = vmax.f32 %v2897_v15, 0.0 }
 0x237   :  { %v7775_v42 = vpop.f32.mrf.mxu2 }
 0x238   :  { %v2901_v23 = vpop.f32.mrf.mxu3  ;;  %v7764_v60 = vpop.f32.mrf.mxu0  ;;  %v2900_v54 = vadd.f32 %v2899_v37, %v2871_v8  ;;  %v3353_v37 = vsel %vm3305_vm4, %v3269_v12, 0.0  ;;  %3531 = vmatpush.xpose.msra.mxu0 %v3470_v6 }
 0x239   :  { %v2875_v4 = vpop.f32.mrf.mxu1  ;;  %v2902_v16 = vadd.f32 %v2901_v23, %v2873_v27  ;;  %v3373_v23 = vmax.f32 %v3341_v41, %v3345_v52  ;;  %v3471_v27 = vld.sshfl [vmem:[#allocation1 + $0x18] sm:$0xff pattern:$0x73625140] }
 0x23a   :  { %v2876_v56 = vadd.f32 %v2875_v4, %v2847_v48  ;;  %v3273_v33 = vmax.f32 %v2900_v54, 0.0 }
 0x23b   :  { %v3277_v22 = vmax.f32 %v2902_v16, 0.0  ;;  %v3374_v48 = vmax.f32 %v3373_v23, %v3349_v49 }
 0x23c   :  { %3106 = vmatmul.bf16.gmra.mxu1 %v7196_v34  ;;  %v3357_v43 = vsel %vm3293_vm3, %v3273_v33, 0.0 }
 0x23d   :  { %3135 = vmatmul.bf16.gmra.mxu3 %v7198_v55  ;;  %v3361_v4 = vsel %vm3297_vm2, %v3277_v22, 0.0  ;;  %v3375_v29 = vmax.f32 %v3374_v48, %v3353_v37 }
 0x23f   :  { %v7793_v40 = vpop.f32.mrf.mxu2  ;;  %v3376_v5 = vrot.slane %v3375_v29, 4 }
 0x240   :  { %v2904_v61 = vpop.f32.mrf.mxu3  ;;  %v7789_v19 = vpop.f32.mrf.mxu0 }
 0x241   :  { %v2905_v21 = vadd.f32 %v2904_v61, %v2876_v56  ;;  %v2877_v44 = vpop.f32.mrf.mxu1  ;;  %v3409_v56 = vmax.f32 %v3357_v43, %v3361_v4  ;;  %v3377_v12 = vmax.f32 %v3375_v29, %v3376_v5 }
 0x242   :  { %v2878_v20 = vadd.f32 %v2877_v44, %v2849_v31  ;;  %v3447_v44 = vld [vmem:[%s8000_s4 + $0x10] sm:$0x3f] }
 0x243   :  { %3159 = vmatmul.bf16.gmra.mxu0 %v5612_v24  ;;  %v3281_v13 = vmax.f32 %v2905_v21, 0.0  ;;  %v3469_v24 = vld.sshfl [vmem:[#allocation1 + $0x8] sm:$0xff pattern:$0x73625140] }
 0x244   :  { %3188 = vmatmul.bf16.gmra.mxu2 %v5512_v47  ;;  %3603 = vst [vmem:[#allocation1] ss:$4 sm:$0xff] %v3445_v2 }
 0x245   :  { %3511 = vmatpush.xpose.msrb.mxu2 %v3469_v24  ;;  %v3365_v53 = vsel %vm3301_vm0, %v3281_v13, 0.0 }
 0x246   :  { %v3410_v45 = vmax.f32 %v3409_v56, %v3365_v53 }
 0x247   :  { %v7816_v8 = vpop.f32.mrf.mxu2 }
 0x248   :  { %v2906_v11 = vpop.f32.mrf.mxu3  ;;  %v7818_v16 = vpop.f32.mrf.mxu0 }
 0x249   :  { %v2907_v15 = vadd.f32 %v2906_v11, %v2878_v20  ;;  %v7814_v47 = vpop.f32.mrf.mxu1  ;;  %3551 = vmatpush.xpose.msra.mxu2 %v3471_v27 }
 0x24b   :  { %v3285_v62 = vmax.f32 %v2907_v15, 0.0  ;;  %v3606_v46 = vld.sshfl [vmem:[#allocation1] sm:$0xff pattern:$0x73625140] }
 0x24c   :  { %3207 = vmatmul.bf16.vlgmr.msrb.gmra.mxu1 %v6911_v30  ;;  %v7827_v41 = vld.sshfl [vmem:[#allocation1 + $0x8] sm:$0xff pattern:$0x73625140]  ;;  %v7829_v49 = vld.sshfl [vmem:[#allocation1 + $0x10] sm:$0xff pattern:$0x73625140] }
 0x24d   :  { %v3369_v61 = vsel %vm3305_vm4, %v3285_v62, 0.0  ;;  %3236 = vmatmul.bf16.vlgmr.msrb.gmra.mxu3 %v6914_v50  ;;  %v7833_v23 = vld.sshfl [vmem:[#allocation1 + $0x18] sm:$0xff pattern:$0x73625140]  ;;  %v3378_v50 = vrot.slane %v3377_v12, 2 }
 0x24e   :  { %v3411_v52 = vmax.f32 %v3410_v45, %v3369_v61  ;;  %3614 = vst [vmem:[#allocation1] ss:$4 sm:$0xff] %v3447_v44 }
 0x24f   :  { %v7831_v30 = vpop.f32.mrf.mxu2  ;;  %v3379_v13 = vmax.f32 %v3377_v12, %v3378_v50 }
 0x250   :  { %v3412_v54 = vrot.slane %v3411_v52, 4  ;;  %v3005_v21 = vpop.f32.mrf.mxu3  ;;  %v2933_v33 = vpop.f32.mrf.mxu0 }
 0x251   :  { %v2978_v22 = vpop.f32.mrf.mxu1  ;;  %v3380_v24 = vrot.slane %v3379_v13, 1 }
 0x252   :  { %v3413_v25 = vmax.f32 %v3411_v52, %v3412_v54 }
 0x253   :  { %3164 = vmatmul.bf16.gmra.mxu0 %v5643_v39  ;;  %v3381_v11 = vmax.f32 %v3379_v13, %v3380_v24 }
 0x254   :  { %v3414_v37 = vrot.slane %v3413_v25, 2  ;;  %3193 = vmatmul.bf16.gmra.mxu2 %v5576_v10  ;;  %v3446_v10 = vld [vmem:[%s8000_s4 + $0x8] sm:$0xff] }
 0x255   :  { %3605 = vst [vmem:[#allocation1 + $0x20] ss:$4 sm:$0xff] %v3446_v10  ;;  %v3616_v61 = vld.sshfl [vmem:[#allocation1 + $0x8] sm:$0xff pattern:$0x73625140] }
 0x256   :  { %v3415_v31 = vmax.f32 %v3413_v25, %v3414_v37  ;;  %3824 = vmatpush.xpose.msra.mxu3 %v3616_v61 }
 0x257   :  { %v2962_v2 = vpop.f32.mrf.mxu2 }
 0x258   :  { %v3007_v48 = vpop.f32.mrf.mxu3  ;;  %v3416_v20 = vrot.slane %v3415_v31, 1  ;;  %v7839_v6 = vpop.f32.mrf.mxu0 }
 0x259   :  { %v2981_v4 = vpop.f32.mrf.mxu1 }
 0x25a   :  { %v3417_v39 = vmax.f32 %v3415_v31, %v3416_v20 }
 0x25c   :  { %3212 = vmatmul.bf16.gmra.mxu1 %v7002_v0  ;;  %v3458_v43 = vsel %vm3457_vm13, %v3417_v39, %v3381_v11  ;;  %v7848_v0 = vperm.slane %v7736_v28, 1  ;;  %v3613_v45 = vld.sshfl [vmem:[#allocation1 + $0x38] sm:$0xff pattern:$0x73625140] }
 0x25d   :  { %3241 = vmatmul.bf16.gmra.mxu3 %v7010_v9  ;;  %3784 = vmatpush.xpose.msra.mxu1 %v3613_v45 }
 0x25e   :  { %v2919_v9 = vadd.f32 %v7709_v57, %v7848_v0  ;;  %v2924_v62 = vadd.f32 %v7747_v14, %v7848_v0  ;;  %v2921_v52 = vadd.f32 %v7738_v36, %v7848_v0  ;;  %v2926_v14 = vadd.f32 %v7764_v60, %v7848_v0 }
 0x25f   :  { %v7845_v53 = vpop.f32.mrf.mxu2  ;;  %v2934_v60 = vadd.f32 %v2933_v33, %v7848_v0 }
 0x260   :  { %v3010_v29 = vpop.f32.mrf.mxu3  ;;  %v7852_v15 = vpop.f32.mrf.mxu0  ;;  %v2948_v12 = vadd.f32 %v7740_v3, %v2919_v9  ;;  %v2953_v57 = vadd.f32 %v7775_v42, %v2924_v62  ;;  %v2950_v44 = vadd.f32 %v7750_v63, %v2921_v52  ;;  %v2955_v31 = vadd.f32 %v7793_v40, %v2926_v14 }
 0x261   :  { %v2983_v27 = vpop.f32.mrf.mxu1  ;;  %v3290_v42 = vperm.slane %v7769_v1, 1  ;;  %v2963_v39 = vadd.f32 %v2962_v2, %v2934_v60 }
 0x262   :  { %v2979_v50 = vadd.f32 %v2978_v22, %v2950_v44  ;;  %v2982_v36 = vadd.f32 %v2981_v4, %v2953_v57  ;;  %v2984_v20 = vadd.f32 %v2983_v27, %v2955_v31  ;;  %v2931_v22 = vadd.f32 %v7818_v16, %v7848_v0 }
 0x263   :  { %3492 = vmatmul.f32.vlgmr.msrb.gmra.mxu0 %v3458_v43  ;;  %vm3298_vm5 = vcmp.lt.s32.totalorder %v5855_v17, %v3290_v42  ;;  %vm3294_vm6 = vcmp.lt.s32.totalorder %v5840_v7, %v3290_v42  ;;  %vm3302_vm7 = vcmp.lt.s32.totalorder %v5883_v35, %v3290_v42  ;;  %vm3306_vm8 = vcmp.lt.s32.totalorder %v5951_v26, %v3290_v42 }
 0x264   :  { %3644 = vmatpush.xpose.msrb.mxu0 %v3606_v46  ;;  %v2977_v46 = vadd.f32 %v7814_v47, %v2948_v12  ;;  %v3011_v63 = vadd.f32 %v3010_v29, %v2982_v36  ;;  %v2960_v16 = vadd.f32 %v7831_v30, %v2931_v22  ;;  %v2936_v12 = vadd.f32 %v7839_v6, %v7848_v0 }
 0x266   :  { %v3006_v13 = vadd.f32 %v3005_v21, %v2977_v46  ;;  %v3266_v21 = vmax.f32 %v3011_v63, 0.0 }
 0x267   :  { %v7860_v54 = vpop.f32.mrf.mxu2 }
 0x268   :  { %v3012_v56 = vpop.f32.mrf.mxu3  ;;  %v7868_v3 = vpop.f32.mrf.mxu0 }
 0x269   :  { %v2986_v5 = vpop.f32.mrf.mxu1  ;;  %v3013_v24 = vadd.f32 %v3012_v56, %v2984_v20 }
 0x26b   :  { %v3270_v11 = vmax.f32 %v3013_v24, 0.0 }
 0x26c   :  { %3217 = vmatmul.bf16.gmra.mxu1 %v7108_v38  ;;  %v3008_v38 = vadd.f32 %v3007_v48, %v2979_v50  ;;  %v3258_v48 = vmax.f32 %v3006_v13, 0.0  ;;  %v2965_v50 = vadd.f32 %v7845_v53, %v2936_v12 }
 0x26d   :  { %3246 = vmatmul.bf16.gmra.mxu3 %v7119_v59  ;;  %v2929_v59 = vadd.f32 %v7789_v19, %v7848_v0  ;;  %v3354_v30 = vsel %vm3306_vm8, %v3270_v11, 0.0 }
 0x26e   :  { %v3262_v4 = vmax.f32 %v3008_v38, 0.0  ;;  %v3342_v27 = vsel %vm3294_vm6, %v3258_v48, 0.0 }
 0x26f   :  { %v7875_v47 = vpop.f32.mrf.mxu2  ;;  %v2958_v19 = vadd.f32 %v7816_v8, %v2929_v59  ;;  %v3350_v8 = vsel %vm3302_vm7, %v3266_v21, 0.0 }
 0x270   :  { %v3015_v25 = vpop.f32.mrf.mxu3  ;;  %v3346_v29 = vsel %vm3298_vm5, %v3262_v4, 0.0  ;;  %v7889_v10 = vpop.f32.mrf.mxu0 }
 0x271   :  { %v2988_v37 = vpop.f32.mrf.mxu1  ;;  %v2987_v2 = vadd.f32 %v2986_v5, %v2958_v19  ;;  %v3382_v56 = vmax.f32 %v3342_v27, %v3346_v29 }
 0x272   :  { %v2989_v43 = vadd.f32 %v2988_v37, %v2960_v16 }
 0x273   :  { %v3383_v45 = vmax.f32 %v3382_v56, %v3350_v8 }
 0x275   :  { %v3384_v44 = vmax.f32 %v3383_v45, %v3354_v30 }
 0x277   :  { %v3068_v52 = vpop.f32.mrf.mxu2  ;;  %v3385_v36 = vrot.slane %v3384_v44, 4 }
 0x278   :  { %v3017_v40 = vpop.f32.mrf.mxu3  ;;  %v3041_v37 = vpop.f32.mrf.mxu0 }
 0x279   :  { %v2991_v33 = vpop.f32.mrf.mxu1  ;;  %v3018_v62 = vadd.f32 %v3017_v40, %v2989_v43  ;;  %v3386_v60 = vmax.f32 %v3384_v44, %v3385_v36 }
 0x27a   :  { %v2992_v9 = vadd.f32 %v2991_v33, %v2963_v39 }
 0x27b   :  { %v3278_v5 = vmax.f32 %v3018_v62, 0.0  ;;  %v3387_v24 = vrot.slane %v3386_v60, 2 }
 0x27c   :  { %3222 = vmatmul.bf16.gmra.mxu1 %v7196_v34  ;;  %v3016_v34 = vadd.f32 %v3015_v25, %v2987_v2 }
 0x27d   :  { %3251 = vmatmul.bf16.gmra.mxu3 %v7198_v55  ;;  %v3362_v38 = vsel %vm3298_vm5, %v3278_v5, 0.0  ;;  %v3388_v33 = vmax.f32 %v3386_v60, %v3387_v24 }
 0x27e   :  { %v3274_v46 = vmax.f32 %v3016_v34, 0.0 }
 0x27f   :  { %v3070_v20 = vpop.f32.mrf.mxu2  ;;  %v3389_v27 = vrot.slane %v3388_v33, 1 }
 0x280   :  { %v3020_v61 = vpop.f32.mrf.mxu3  ;;  %v3358_v59 = vsel %vm3294_vm6, %v3274_v46, 0.0  ;;  %v3044_v40 = vpop.f32.mrf.mxu0 }
 0x281   :  { %v3021_v57 = vadd.f32 %v3020_v61, %v2992_v9  ;;  %v2993_v14 = vpop.f32.mrf.mxu1  ;;  %v3418_v63 = vmax.f32 %v3358_v59, %v3362_v38  ;;  %v3390_v9 = vmax.f32 %v3388_v33, %v3389_v27  ;;  %v2103_v61 = vperm.slane %v7736_v28, 2 }
 0x282   :  { %v2994_v31 = vadd.f32 %v2993_v14, %v2965_v50 }
 0x283   :  { %v3282_v55 = vmax.f32 %v3021_v57, 0.0  ;;  %v3035_v34 = vadd.f32 %v7852_v15, %v2103_v61  ;;  %v3040_v44 = vadd.f32 %v7889_v10, %v2103_v61  ;;  %v3037_v46 = vadd.f32 %v7868_v3, %v2103_v61 }
 0x284   :  { %v3042_v38 = vadd.f32 %v3041_v37, %v2103_v61  ;;  %v3291_v10 = vperm.slane %v7769_v1, 2 }
 0x285   :  { %v3366_v6 = vsel %vm3302_vm7, %v3282_v55, 0.0  ;;  %v3064_v50 = vadd.f32 %v7860_v54, %v3035_v34  ;;  %v3069_v55 = vadd.f32 %v3068_v52, %v3040_v44 }
 0x286   :  { %v3419_v22 = vmax.f32 %v3418_v63, %v3366_v6  ;;  %v3071_v63 = vadd.f32 %v3070_v20, %v3042_v38  ;;  %vm3299_vm9 = vcmp.lt.s32.totalorder %v5855_v17, %v3291_v10  ;;  %vm3295_vm10 = vcmp.lt.s32.totalorder %v5840_v7, %v3291_v10 }
 0x287   :  { %v3073_v16 = vpop.f32.mrf.mxu2  ;;  %vm3303_vm11 = vcmp.lt.s32.totalorder %v5883_v35, %v3291_v10  ;;  %vm3307_vm12 = vcmp.lt.s32.totalorder %v5951_v26, %v3291_v10 }
 0x288   :  { %v3022_v13 = vpop.f32.mrf.mxu3  ;;  %v3046_v56 = vpop.f32.mrf.mxu0 }
 0x289   :  { %v3023_v0 = vadd.f32 %v3022_v13, %v2994_v31  ;;  %v3092_v25 = vpop.f32.mrf.mxu1  ;;  %v3047_v52 = vadd.f32 %v3046_v56, %v2103_v61 }
 0x28a   :  { %v3093_v31 = vadd.f32 %v3092_v25, %v3064_v50 }
 0x28b   :  { %v3286_v53 = vmax.f32 %v3023_v0, 0.0 }
 0x28c   :  { %3785 = vmatmul.f32.vlgmr.msra.gmra.mxu1 %v7166_v58 }
 0x28d   :  { %v3370_v4 = vsel %vm3306_vm8, %v3286_v53, 0.0  ;;  %3825 = vmatmul.f32.vlgmr.msra.gmra.mxu3 %v7500_v51 }
 0x28e   :  { %v3420_v48 = vmax.f32 %v3419_v22, %v3370_v4  ;;  %v3045_v22 = vadd.f32 %v3044_v40, %v2103_v61 }
 0x28f   :  { %v3075_v30 = vpop.f32.mrf.mxu2 }
 0x290   :  { %v3421_v21 = vrot.slane %v3420_v48, 4  ;;  %v3121_v19 = vpop.f32.mrf.mxu3  ;;  %v3049_v12 = vpop.f32.mrf.mxu0  ;;  %v3074_v20 = vadd.f32 %v3073_v16, %v3045_v22 }
 0x291   :  { %v3094_v39 = vpop.f32.mrf.mxu1  ;;  %v3122_v53 = vadd.f32 %v3121_v19, %v3093_v31  ;;  %v3050_v3 = vadd.f32 %v3049_v12, %v2103_v61 }
 0x292   :  { %v3422_v29 = vmax.f32 %v3420_v48, %v3421_v21 }
 0x293   :  { %v3259_v48 = vmax.f32 %v3122_v53, 0.0 }
 0x294   :  { %v3423_v11 = vrot.slane %v3422_v29, 2 }
 0x296   :  { %v3424_v8 = vmax.f32 %v3422_v29, %v3423_v11  ;;  %v3076_v29 = vadd.f32 %v3075_v30, %v3047_v52  ;;  %v3343_v11 = vsel %vm3295_vm10, %v3259_v48, 0.0 }
 0x297   :  { %v3078_v14 = vpop.f32.mrf.mxu2 }
 0x298   :  { %v3425_v2 = vrot.slane %v3424_v8, 1  ;;  %v3123_v43 = vpop.f32.mrf.mxu3  ;;  %v3051_v36 = vpop.f32.mrf.mxu0  ;;  %v3079_v19 = vadd.f32 %v3078_v14, %v3050_v3 }
 0x299   :  { %v3097_v58 = vpop.f32.mrf.mxu1  ;;  %v3052_v30 = vadd.f32 %v3051_v36, %v2103_v61 }
 0x29a   :  { %v3426_v42 = vmax.f32 %v3424_v8, %v3425_v2  ;;  %v3098_v6 = vadd.f32 %v3097_v58, %v3069_v55 }
 0x29c   :  { %v3459_v51 = vsel %vm3457_vm13, %v3426_v42, %v3390_v9 }
 0x29d   :  { %3512 = vmatmul.f32.vlgmr.msrb.gmra.mxu2 %v3459_v51 }
 0x29e   :  { %3664 = vmatpush.xpose.msrb.mxu2 %v7827_v41  ;;  %v3066_v41 = vadd.f32 %v7875_v47, %v3037_v46 }
 0x29f   :  { %v3080_v15 = vpop.f32.mrf.mxu2 }
 0x2a0   :  { %v3126_v62 = vpop.f32.mrf.mxu3  ;;  %v3095_v59 = vadd.f32 %v3094_v39, %v3066_v41  ;;  %v7920_v47 = vpop.f32.mrf.mxu0  ;;  %v3081_v46 = vadd.f32 %v3080_v15, %v3052_v30 }
 0x2a1   :  { %v3099_v45 = vpop.f32.mrf.mxu1  ;;  %v3127_v4 = vadd.f32 %v3126_v62, %v3098_v6 }
 0x2a2   :  { %v3124_v60 = vadd.f32 %v3123_v43, %v3095_v59  ;;  %v3100_v54 = vadd.f32 %v3099_v45, %v3071_v63 }
 0x2a3   :  { %v3267_v21 = vmax.f32 %v3127_v4, 0.0 }
 0x2a4   :  { %v3263_v24 = vmax.f32 %v3124_v60, 0.0 }
 0x2a5   :  { %v3351_v8 = vsel %vm3303_vm11, %v3267_v21, 0.0 }
 0x2a6   :  { %v3347_v40 = vsel %vm3299_vm9, %v3263_v24, 0.0 }
 0x2a7   :  { %v7929_v27 = vpop.f32.mrf.mxu2  ;;  %v3391_v58 = vmax.f32 %v3343_v11, %v3347_v40 }
 0x2a8   :  { %v3128_v57 = vpop.f32.mrf.mxu3 }
 0x2a9   :  { %v3102_v5 = vpop.f32.mrf.mxu1  ;;  %v3129_v37 = vadd.f32 %v3128_v57, %v3100_v54  ;;  %v3392_v56 = vmax.f32 %v3391_v58, %v3351_v8  ;;  %v3152_v57 = vpop.f32.mrf.mxu0  ;;  %v3610_v58 = vld.sshfl [vmem:[#allocation1 + $0x20] sm:$0xff pattern:$0x73625140] }
 0x2aa   :  { %v3103_v16 = vadd.f32 %v3102_v5, %v3074_v20 }
 0x2ab   :  { %v3271_v33 = vmax.f32 %v3129_v37, 0.0 }
 0x2ad   :  { %v3355_v9 = vsel %vm3307_vm12, %v3271_v33, 0.0 }
 0x2ae   :  { %v3393_v34 = vmax.f32 %v3392_v56, %v3355_v9  ;;  %v7946_v9 = vperm.slane %v7736_v28, 3 }
 0x2af   :  { %v3181_v55 = vpop.f32.mrf.mxu2 }
 0x2b0   :  { %v3131_v13 = vpop.f32.mrf.mxu3  ;;  %v3394_v5 = vrot.slane %v3393_v34, 4  ;;  %v3151_v56 = vadd.f32 %v7920_v47, %v7946_v9 }
 0x2b1   :  { %v3104_v0 = vpop.f32.mrf.mxu1  ;;  %v3132_v62 = vadd.f32 %v3131_v13, %v3103_v16  ;;  %v3155_v15 = vpop.f32.mrf.mxu0 }
 0x2b2   :  { %v3105_v2 = vadd.f32 %v3104_v0, %v3076_v29  ;;  %v3395_v6 = vmax.f32 %v3393_v34, %v3394_v5  ;;  %v3156_v30 = vadd.f32 %v3155_v15, %v7946_v9  ;;  %v3180_v34 = vadd.f32 %v7929_v27, %v3151_v56 }
 0x2b3   :  { %v3275_v44 = vmax.f32 %v3132_v62, 0.0 }
 0x2b4   :  { %v3396_v22 = vrot.slane %v3395_v6, 2 }
 0x2b5   :  { %v3359_v59 = vsel %vm3295_vm10, %v3275_v44, 0.0 }
 0x2b6   :  { %v3397_v37 = vmax.f32 %v3395_v6, %v3396_v22 }
 0x2b7   :  { %v3184_v52 = vpop.f32.mrf.mxu2 }
 0x2b8   :  { %v3133_v25 = vpop.f32.mrf.mxu3  ;;  %v3398_v21 = vrot.slane %v3397_v37, 1 }
 0x2b9   :  { %v3107_v39 = vpop.f32.mrf.mxu1  ;;  %v3134_v42 = vadd.f32 %v3133_v25, %v3105_v2  ;;  %v3157_v20 = vpop.f32.mrf.mxu0 }
 0x2ba   :  { %v3108_v43 = vadd.f32 %v3107_v39, %v3079_v19  ;;  %v3399_v29 = vmax.f32 %v3397_v37, %v3398_v21 }
 0x2bb   :  { %v3279_v14 = vmax.f32 %v3134_v42, 0.0 }
 0x2bd   :  { %v3363_v38 = vsel %vm3299_vm9, %v3279_v14, 0.0  ;;  %v3185_v14 = vadd.f32 %v3184_v52, %v3156_v30 }
 0x2be   :  { %v3427_v0 = vmax.f32 %v3359_v59, %v3363_v38  ;;  %v3617_v59 = vld.sshfl [vmem:[#allocation1 + $0x10] sm:$0xff pattern:$0x73625140] }
 0x2bf   :  { %v3186_v8 = vpop.f32.mrf.mxu2 }
 0x2c0   :  { %v3136_v51 = vpop.f32.mrf.mxu3 }
 0x2c1   :  { %v3137_v45 = vadd.f32 %v3136_v51, %v3108_v43  ;;  %v3109_v12 = vpop.f32.mrf.mxu1  ;;  %v3160_v16 = vpop.f32.mrf.mxu0 }
 0x2c2   :  { %v3110_v41 = vadd.f32 %v3109_v12, %v3081_v46  ;;  %v3612_v12 = vld.sshfl [vmem:[#allocation1 + $0x30] sm:$0xff pattern:$0x73625140] }
 0x2c3   :  { %v3283_v50 = vmax.f32 %v3137_v45, 0.0 }
 0x2c5   :  { %v3367_v61 = vsel %vm3303_vm11, %v3283_v50, 0.0 }
 0x2c6   :  { %v3428_v63 = vmax.f32 %v3427_v0, %v3367_v61  ;;  %v3292_v61 = vperm.slane %v7769_v1, 3 }
 0x2c7   :  { %v3189_v42 = vpop.f32.mrf.mxu2 }
 0x2c8   :  { %v3138_v31 = vpop.f32.mrf.mxu3  ;;  %vm3300_vm14 = vcmp.lt.s32.totalorder %v5855_v17, %v3292_v61  ;;  %vm3296_vm15 = vcmp.lt.s32.totalorder %v5840_v7, %v3292_v61  ;;  %vm3304_vm1 = vcmp.lt.s32.totalorder %v5883_v35, %v3292_v61  ;;  %vm3308_vm2 = vcmp.lt.s32.totalorder %v5951_v26, %v3292_v61  ;;  %v3615_v26 = vld.sshfl [vmem:[#allocation1] sm:$0xff pattern:$0x73625140]  ;;  %v8018_v61 = vld [vmem:[#allocation6_spill] sm:$0xff] }
 0x2c9   :  { %v3139_v36 = vadd.f32 %v3138_v31, %v3110_v41  ;;  %v3208_v13 = vpop.f32.mrf.mxu1  ;;  %v3162_v45 = vpop.f32.mrf.mxu0 }
 0x2ca   :  { %v3209_v46 = vadd.f32 %v3208_v13, %v3180_v34 }
 0x2cb   :  { %v3287_v60 = vmax.f32 %v3139_v36, 0.0  ;;  %v3161_v36 = vadd.f32 %v3160_v16, %v7946_v9 }
 0x2cd   :  { %v3371_v53 = vsel %vm3307_vm12, %v3287_v60, 0.0  ;;  %v8014_v60 = vld [vmem:[#allocation7_spill] sm:$0xff] }
 0x2ce   :  { %v3429_v3 = vmax.f32 %v3428_v63, %v3371_v53 }
 0x2cf   :  { %v3191_v28 = vpop.f32.mrf.mxu2 }
 0x2d0   :  { %v3430_v4 = vrot.slane %v3429_v3, 4  ;;  %v3237_v54 = vpop.f32.mrf.mxu3 }
 0x2d1   :  { %v3210_v24 = vpop.f32.mrf.mxu1  ;;  %v3165_v27 = vpop.f32.mrf.mxu0 }
 0x2d2   :  { %v3431_v48 = vmax.f32 %v3429_v3, %v3430_v4  ;;  %v3190_v3 = vadd.f32 %v3189_v42, %v3161_v36 }
 0x2d4   :  { %v3432_v25 = vrot.slane %v3431_v48, 2 }
 0x2d6   :  { %v3433_v19 = vmax.f32 %v3431_v48, %v3432_v25 }
 0x2d7   :  { %v3194_v53 = vpop.f32.mrf.mxu2 }
 0x2d8   :  { %v3434_v39 = vrot.slane %v3433_v19, 1  ;;  %v3239_v40 = vpop.f32.mrf.mxu3 }
 0x2d9   :  { %v3213_v33 = vpop.f32.mrf.mxu1 }
 0x2da   :  { %v3435_v11 = vmax.f32 %v3433_v19, %v3434_v39  ;;  %v3214_v5 = vadd.f32 %v3213_v33, %v3185_v14  ;;  %v8015_v39 = vld [vmem:[#allocation9_spill] sm:$0xff] }
 0x2dc   :  { %v3460_v10 = vsel %vm3457_vm13, %v3435_v11, %v3399_v29  ;;  %v3167_v11 = vpop.f32.mrf.mxu0 }
 0x2dd   :  { %3532 = vmatmul.f32.vlgmr.msra.gmra.mxu0 %v3460_v10  ;;  %v3168_v16 = vadd.f32 %v3167_v11, %v7946_v9 }
 0x2de   :  { %3684 = vmatpush.xpose.msra.mxu0 %v7829_v49  ;;  %v3153_v49 = vadd.f32 %v3152_v57, %v7946_v9  ;;  %v3238_v57 = vadd.f32 %v3237_v54, %v3209_v46 }
 0x2df   :  { %v3196_v42 = vpop.f32.mrf.mxu2 }
 0x2e0   :  { %v3242_v2 = vpop.f32.mrf.mxu3  ;;  %v3182_v44 = vadd.f32 %v3181_v55, %v3153_v49  ;;  %v3163_v55 = vadd.f32 %v3162_v45, %v7946_v9  ;;  %v3260_v63 = vmax.f32 %v3238_v57, 0.0  ;;  %v8016_v49 = vld [vmem:[#allocation11_spill] sm:$0xff] }
 0x2e1   :  { %v3215_v43 = vpop.f32.mrf.mxu1  ;;  %v3243_v6 = vadd.f32 %v3242_v2, %v3214_v5 }
 0x2e2   :  { %v3211_v50 = vadd.f32 %v3210_v24, %v3182_v44  ;;  %v3192_v37 = vadd.f32 %v3191_v28, %v3163_v55  ;;  %v3344_v48 = vsel %vm3296_vm15, %v3260_v63, 0.0  ;;  %v8017_v55 = vld [vmem:[#allocation5_spill] sm:$0xff] }
 0x2e3   :  { %v3268_v1 = vmax.f32 %v3243_v6, 0.0 }
 0x2e4   :  { %v3240_v41 = vadd.f32 %v3239_v40, %v3211_v50  ;;  %v3493_v63 = vpop.f32.mrf.mxu0 }
 0x2e5   :  { %3645 = vmatmul.f32.vlgmr.msrb.gmra.mxu0 %v6182_v18  ;;  %v3158_v18 = vadd.f32 %v3157_v20, %v7946_v9  ;;  %v3352_v25 = vsel %vm3304_vm1, %v3268_v1, 0.0 }
 0x2e6   :  { %3724 = vmatpush.xpose.msrb.mxu0 %v3610_v58  ;;  %v3264_v13 = vmax.f32 %v3240_v41, 0.0 }
 0x2e7   :  { %v3187_v31 = vadd.f32 %v3186_v8, %v3158_v18 }
 0x2e8   :  { %v3244_v51 = vpop.f32.mrf.mxu3  ;;  %v3348_v52 = vsel %vm3300_vm14, %v3264_v13, 0.0  ;;  %v8019_v13 = vld [vmem:[#allocation8_spill] sm:$0xff] }
 0x2e9   :  { %v3218_v62 = vpop.f32.mrf.mxu1  ;;  %v3216_v0 = vadd.f32 %v3215_v43, %v3187_v31  ;;  %v3400_v40 = vmax.f32 %v3344_v48, %v3348_v52 }
 0x2ea   :  { %v3219_v21 = vadd.f32 %v3218_v62, %v3190_v3  ;;  %v3197_v62 = vadd.f32 %v3196_v42, %v3168_v16 }
 0x2eb   :  { %v3245_v15 = vadd.f32 %v3244_v51, %v3216_v0  ;;  %v3401_v8 = vmax.f32 %v3400_v40, %v3352_v25 }
 0x2ed   :  { %3685 = vmatmul.f32.vlgmr.msra.gmra.mxu0 %v6364_v32  ;;  %v3166_v32 = vadd.f32 %v3165_v27, %v7946_v9  ;;  %v3272_v24 = vmax.f32 %v3245_v15, 0.0  ;;  %v8020_v15 = vld [vmem:[#allocation10_spill] sm:$0xff] }
 0x2ee   :  { %3764 = vmatpush.xpose.msra.mxu0 %v3612_v12 }
 0x2ef   :  { %v3195_v4 = vadd.f32 %v3194_v53, %v3166_v32  ;;  %v3356_v33 = vsel %vm3308_vm2, %v3272_v24, 0.0 }
 0x2f0   :  { %v3247_v47 = vpop.f32.mrf.mxu3  ;;  %v3402_v58 = vmax.f32 %v3401_v8, %v3356_v33 }
 0x2f1   :  { %v3220_v38 = vpop.f32.mrf.mxu1  ;;  %v3248_v2 = vadd.f32 %v3247_v47, %v3219_v21 }
 0x2f2   :  { %v3221_v20 = vadd.f32 %v3220_v38, %v3192_v37  ;;  %v3403_v12 = vrot.slane %v3402_v58, 4 }
 0x2f3   :  { %v3276_v30 = vmax.f32 %v3248_v2, 0.0 }
 0x2f4   :  { %v3404_v46 = vmax.f32 %v3402_v58, %v3403_v12 }
 0x2f5   :  { %3725 = vmatmul.f32.vlgmr.msrb.gmra.mxu0 %v8014_v60  ;;  %v3360_v9 = vsel %vm3296_vm15, %v3276_v30, 0.0  ;;  %v3611_v60 = vld.sshfl [vmem:[#allocation1 + $0x28] sm:$0xff pattern:$0x73625140] }
 0x2f6   :  { %3844 = vmatpush.xpose.msrb.mxu0 %v3617_v59  ;;  %v3405_v41 = vrot.slane %v3404_v46, 2 }
 0x2f8   :  { %v3249_v22 = vpop.f32.mrf.mxu3  ;;  %v3406_v59 = vmax.f32 %v3404_v46, %v3405_v41 }
 0x2f9   :  { %v3223_v54 = vpop.f32.mrf.mxu1  ;;  %v3250_v29 = vadd.f32 %v3249_v22, %v3221_v20 }
 0x2fa   :  { %v3224_v19 = vadd.f32 %v3223_v54, %v3195_v4  ;;  %v3407_v36 = vrot.slane %v3406_v59, 1 }
 0x2fb   :  { %v3280_v56 = vmax.f32 %v3250_v29, 0.0 }
 0x2fc   :  { %v3408_v6 = vmax.f32 %v3406_v59, %v3407_v36 }
 0x2fd   :  { %3765 = vmatmul.f32.vlgmr.msra.gmra.mxu0 %v8015_v39  ;;  %v3364_v34 = vsel %vm3300_vm14, %v3280_v56, 0.0 }
 0x2fe   :  { %v3436_v47 = vmax.f32 %v3360_v9, %v3364_v34 }
 0x300   :  { %v3252_v10 = vpop.f32.mrf.mxu3 }
 0x301   :  { %v3253_v43 = vadd.f32 %v3252_v10, %v3224_v19  ;;  %v3225_v51 = vpop.f32.mrf.mxu1 }
 0x302   :  { %v3226_v14 = vadd.f32 %v3225_v51, %v3197_v62 }
 0x303   :  { %v3284_v45 = vmax.f32 %v3253_v43, 0.0 }
 0x305   :  { %3845 = vmatmul.f32.vlgmr.msrb.gmra.mxu0 %v8016_v49  ;;  %v3368_v18 = vsel %vm3304_vm1, %v3284_v45, 0.0 }
 0x306   :  { %v3437_v5 = vmax.f32 %v3436_v47, %v3368_v18 }
 0x308   :  { %v3254_v28 = vpop.f32.mrf.mxu3 }
 0x309   :  { %v3255_v44 = vadd.f32 %v3254_v28, %v3226_v14  ;;  %v3786_v10 = vpop.f32.mrf.mxu1 }
 0x30b   :  { %v3288_v50 = vmax.f32 %v3255_v44, 0.0 }
 0x30d   :  { %v3372_v38 = vsel %vm3308_vm2, %v3288_v50, 0.0 }
 0x30e   :  { %v3438_v31 = vmax.f32 %v3437_v5, %v3372_v38 }
 0x310   :  { %v3439_v17 = vrot.slane %v3438_v31, 4  ;;  %v3826_v58 = vpop.f32.mrf.mxu3 }
 0x312   :  { %v3440_v57 = vmax.f32 %v3438_v31, %v3439_v17 }
 0x314   :  { %v3441_v27 = vrot.slane %v3440_v57, 2 }
 0x316   :  { %v3442_v7 = vmax.f32 %v3440_v57, %v3441_v27 }
 0x318   :  { %v3443_v32 = vrot.slane %v3442_v7, 1 }
 0x31a   :  { %v3444_v35 = vmax.f32 %v3442_v7, %v3443_v32 }
 0x31c   :  { %v3461_v0 = vsel %vm3457_vm13, %v3444_v35, %v3408_v6  ;;  %vm3856_vm13 = vcmask 9216  }
 0x31d   :  { %3552 = vmatmul.f32.vlgmr.msra.gmra.mxu2 %v3461_v0 }
 0x31e   :  { %3704 = vmatpush.xpose.msra.mxu2 %v7833_v23  ;;  %v5189_v23 = vld [vmem:[%s8005_s9] ss:$0 sm:$0xff]  ;;  %s5218_s9 = smov [#allocation2]  }
 0x31f   :  { %3853 = vst [vmem:[#allocation2] sm:$0x3] %v5189_v23  ;;  %s3863_s0 = sshll.u32 %s5218_s9, 4  ;;  %s3864_s0 = int_to_ptr.vmem [resolvable:$true] %s3863_s0 }
 0x320   :  { %v3513_v22 = vpop.f32.mrf.mxu2 }
 0x321   :  { %v3514_v4 = vadd.f32 %v3513_v22, %v3493_v63 }
 0x325   :  { %3665 = vmatmul.f32.vlgmr.msrb.gmra.mxu2 %v8017_v55 }
 0x326   :  { %3744 = vmatpush.xpose.msrb.mxu2 %v3611_v60  ;;  %v3854_v51 = vld [vmem:[#allocation2] sm:$0x3] }
 0x32d   :  { %3705 = vmatmul.f32.vlgmr.msra.gmra.mxu2 %v8018_v61 }
 0x32e   :  { %3804 = vmatpush.xpose.msra.mxu2 %v3615_v26 }
 0x335   :  { %3745 = vmatmul.f32.vlgmr.msrb.gmra.mxu2 %v8019_v13 }
 0x33d   :  { %3805 = vmatmul.f32.vlgmr.msra.gmra.mxu2 %v8020_v15 }
 0x35a   :  { %v3533_v53 = vpop.f32.mrf.mxu0 }
 0x35b   :  { %v3534_v54 = vadd.f32 %v3533_v53, %v3514_v4 }
 0x362   :  { %v3646_v1 = vpop.f32.mrf.mxu0 }
 0x36a   :  { %v3686_v52 = vpop.f32.mrf.mxu0 }
 0x372   :  { %v3726_v21 = vpop.f32.mrf.mxu0 }
 0x37a   :  { %v3766_v11 = vpop.f32.mrf.mxu0 }
 0x382   :  { %v3846_v56 = vpop.f32.mrf.mxu0 }
 0x3a0   :  { %v3553_v3 = vpop.f32.mrf.mxu2 }
 0x3a1   :  { %v3554_v24 = vadd.f32 %v3553_v3, %v3534_v54 }
 0x3a3   :  { %v3647_v48 = vadd.f32 %v3646_v1, %v3554_v24 }
 0x3a8   :  { %v3666_v37 = vpop.f32.mrf.mxu2 }
 0x3a9   :  { %v3667_v25 = vadd.f32 %v3666_v37, %v3647_v48 }
 0x3ab   :  { %v3687_v19 = vadd.f32 %v3686_v52, %v3667_v25 }
 0x3b0   :  { %v3706_v20 = vpop.f32.mrf.mxu2 }
 0x3b1   :  { %v3707_v39 = vadd.f32 %v3706_v20, %v3687_v19 }
 0x3b3   :  { %v3727_v40 = vadd.f32 %v3726_v21, %v3707_v39 }
 0x3b8   :  { %v3746_v33 = vpop.f32.mrf.mxu2 }
 0x3b9   :  { %v3747_v29 = vadd.f32 %v3746_v33, %v3727_v40 }
 0x3bb   :  { %v3767_v8 = vadd.f32 %v3766_v11, %v3747_v29 }
 0x3bd   :  { %v3787_v16 = vadd.f32 %v3786_v10, %v3767_v8 }
 0x3c0   :  { %v3806_v2 = vpop.f32.mrf.mxu2 }
 0x3c1   :  { %v3807_v43 = vadd.f32 %v3806_v2, %v3787_v16 }
 0x3c3   :  { %v3827_v42 = vadd.f32 %v3826_v58, %v3807_v43 }
 0x3c5   :  { %v3847_v30 = vadd.f32 %v3846_v56, %v3827_v42 }
 0x3c7   :  { %v3855_v62 = vadd.f32 %v3854_v51, %v3847_v30 }
 0x3c9   :  { %3857 = vst.msk [vmem:[#allocation2] sm:$0x3] %vm3856_vm13, %v3855_v62 }
 0x3ca   :  { %3868 = dma.vmem_to_hbm [thread:$0]  %s3864_s0, 32, %s3866_s26, [#allocation3]  }
 0x3cb   :  { %5216 = dma.done.wait [#allocation3], 32  }
 0x3cc   :  { %5217 = vsyncadd [#allocation3], 4294967264 }
 0x3cd   :  { %3873 = vsyncpa [#allocation3], 1 }

</bundles_post_ra>
